<compile_context>
chip_gen: v7x
topology: tpu7x:2x2x1
jax: 0.10.0
libtpu: 0.0.40
codegen_flags: <defaults>
</compile_context>

<pallas_src>
import functools

import jax
import jax.numpy as jnp
from jax.experimental import pallas as pl
from jax.experimental.pallas import tpu as pltpu

EPS = 1e-5


# ---------------------------------------------------------------------------
# Fused kernel: all `depth` layers of (LN -> MHSA -> +res -> LN -> MLP -> +res)
# for a batch of TB (b,p) slabs held in VMEM.
# ---------------------------------------------------------------------------
def fused_transformer_kernel(x_ref, ln1_g_ref, ln1_b_ref, wq_ref, wk_ref, wv_ref,
                             wout_ref, bout_ref, ln2_g_ref, ln2_b_ref,
                             w1_ref, b1_ref, w2_ref, b2_ref, o_ref,
                             *, depth, heads, dim_head):
    TB, N, D = x_ref.shape
    M = TB * N
    inner = heads * dim_head
    scale = dim_head ** (-0.5)

    # Token matrix for this grid step, flattened to (M, D); stays in f32.
    x = x_ref[...].reshape(M, D)

    def layernorm(v, g, b):
        mu = jnp.mean(v, axis=-1, keepdims=True)
        var = jnp.mean((v - mu) ** 2, axis=-1, keepdims=True)
        return (v - mu) * jax.lax.rsqrt(var + EPS) * g + b

    def mm(a_f32, w_bf16):
        # bf16 operands, f32 accumulation on the MXU.
        return jax.lax.dot_general(
            a_f32.astype(jnp.bfloat16), w_bf16,
            dimension_numbers=(((1,), (0,)), ((), ())),
            preferred_element_type=jnp.float32)

    # depth is small & static -> Python-unrolled layer loop; x stays in vregs/VMEM.
    for l in range(depth):
        # ---- PreNorm + multi-head self-attention ----
        h = layernorm(x, ln1_g_ref[l], ln1_b_ref[l])           # (M, D) f32
        q = mm(h, wq_ref[l])                                   # (M, inner) f32
        k = mm(h, wk_ref[l])
        v = mm(h, wv_ref[l])

        head_outs = []
        for hd in range(heads):
            s = slice(hd * dim_head, (hd + 1) * dim_head)
            qh = q[:, s].reshape(TB, N, dim_head).astype(jnp.bfloat16)
            kh = k[:, s].reshape(TB, N, dim_head).astype(jnp.bfloat16)
            vh = v[:, s].reshape(TB, N, dim_head).astype(jnp.bfloat16)
            # batched (per-slab) attention scores; contraction on last dims (no .T)
            dots = jnp.einsum("bnd,bmd->bnm", qh, kh,
                              preferred_element_type=jnp.float32) * scale
            dots = dots - jnp.max(dots, axis=-1, keepdims=True)
            e = jnp.exp(dots)
            attn = e * pl.reciprocal(jnp.sum(e, axis=-1, keepdims=True), approx=True)
            oh = jnp.einsum("bnm,bmd->bnd", attn.astype(jnp.bfloat16), vh,
                            preferred_element_type=jnp.float32)   # (TB, N, dh) f32
            head_outs.append(oh.reshape(M, dim_head))

        out_cat = jnp.concatenate(head_outs, axis=-1)          # (M, inner) f32
        x = x + mm(out_cat, wout_ref[l]) + bout_ref[l]         # residual (f32)

        # ---- PreNorm + FeedForward (Linear -> ReLU -> Linear) ----
        h2 = layernorm(x, ln2_g_ref[l], ln2_b_ref[l])
        mid = mm(h2, w1_ref[l]) + b1_ref[l]
        mid = jnp.maximum(mid, 0.0)
        x = x + mm(mid, w2_ref[l]) + b2_ref[l]

    o_ref[...] = x.reshape(TB, N, D)


# ---------------------------------------------------------------------------
# Wrapper: stack per-layer weights, pick TB, launch one fused pallas_call.
# ---------------------------------------------------------------------------
def _pick_tb(BP, N, target_rows=128):
    """Largest divisor of BP with TB*N <= target_rows, keeping >=2 grid steps when possible."""
    divisors = [d for d in range(1, BP + 1) if BP % d == 0]
    cands = [d for d in divisors if d * N <= target_rows and (BP // d >= 2 or BP == 1)]
    if not cands:
        cands = [1]
    return max(cands)


def transformer_forward(x, layer_params, *, heads, dim_head):
    """x: (B, P, N, D) float32.  Returns (B, P, N, D) float32."""
    B, P, N, D = x.shape
    BP = B * P
    depth = len(layer_params)
    inner = heads * dim_head
    mlp_dim = layer_params[0]["w1"].shape[1]

    x_flat = x.reshape(BP, N, D).astype(jnp.float32)

    def stack(name, dtype=jnp.float32):
        return jnp.stack([p[name] for p in layer_params]).astype(dtype)

    # LayerNorm params / biases stay f32; matmul weights pre-cast to bf16.
    ln1_g, ln1_b = stack("ln1_g"), stack("ln1_b")
    wq, wk, wv = stack("wq", jnp.bfloat16), stack("wk", jnp.bfloat16), stack("wv", jnp.bfloat16)
    wout, bout = stack("wout", jnp.bfloat16), stack("bout")
    ln2_g, ln2_b = stack("ln2_g"), stack("ln2_b")
    w1, b1 = stack("w1", jnp.bfloat16), stack("b1")
    w2, b2 = stack("w2", jnp.bfloat16), stack("b2")

    TB = _pick_tb(BP, N)
    grid = (BP // TB,)

    def full_spec(shape):
        zeros = (0,) * len(shape)
        return pl.BlockSpec(shape, lambda i, _z=zeros: _z)

    kern = functools.partial(fused_transformer_kernel,
                             depth=depth, heads=heads, dim_head=dim_head)

    out = pl.pallas_call(
        kern,
        out_shape=jax.ShapeDtypeStruct((BP, N, D), jnp.float32),
        grid=grid,
        in_specs=[
            pl.BlockSpec((TB, N, D), lambda i: (i, 0, 0)),       # x slab
            full_spec((depth, 1, D)), full_spec((depth, 1, D)),  # ln1 gamma/beta
            full_spec((depth, D, inner)),                        # Wq
            full_spec((depth, D, inner)),                        # Wk
            full_spec((depth, D, inner)),                        # Wv
            full_spec((depth, inner, D)), full_spec((depth, 1, D)),   # Wout, bout
            full_spec((depth, 1, D)), full_spec((depth, 1, D)),  # ln2 gamma/beta
            full_spec((depth, D, mlp_dim)), full_spec((depth, 1, mlp_dim)),  # W1, b1
            full_spec((depth, mlp_dim, D)), full_spec((depth, 1, D)),        # W2, b2
        ],
        out_specs=pl.BlockSpec((TB, N, D), lambda i: (i, 0, 0)),
        compiler_params=pltpu.CompilerParams(
            dimension_semantics=("parallel",),
            vmem_limit_bytes=64 * 1024 * 1024),
    )(x_flat, ln1_g, ln1_b, wq, wk, wv, wout, bout, ln2_g, ln2_b, w1, b1, w2, b2)

    return out.reshape(B, P, N, D)


# ---------------------------------------------------------------------------
# Deterministic parameter init + pure-JAX f32 reference for validation
# ---------------------------------------------------------------------------
def init_params(key, depth, dim, heads, dim_head, mlp_dim):
    inner = heads * dim_head
    params = []
    for _ in range(depth):
        keys = jax.random.split(key, 7)
        key = keys[0]
        params.append(dict(
            ln1_g=jnp.ones((1, dim), jnp.float32),
            ln1_b=jnp.zeros((1, dim), jnp.float32),
            wq=jax.random.normal(keys[1], (dim, inner), jnp.float32) * 0.05,
            wk=jax.random.normal(keys[2], (dim, inner), jnp.float32) * 0.05,
            wv=jax.random.normal(keys[3], (dim, inner), jnp.float32) * 0.05,
            wout=jax.random.normal(keys[4], (inner, dim), jnp.float32) * 0.05,
            bout=jnp.full((1, dim), 0.01, jnp.float32),
            ln2_g=jnp.ones((1, dim), jnp.float32),
            ln2_b=jnp.zeros((1, dim), jnp.float32),
            w1=jax.random.normal(keys[5], (dim, mlp_dim), jnp.float32) * 0.05,
            b1=jnp.full((1, mlp_dim), 0.01, jnp.float32),
            w2=jax.random.normal(keys[6], (mlp_dim, dim), jnp.float32) * 0.05,
            b2=jnp.full((1, dim), 0.01, jnp.float32),
        ))
    return params


def reference_forward(x, layer_params, *, heads, dim_head):
    def ln(v, g, b):
        mu = v.mean(-1, keepdims=True)
        var = ((v - mu) ** 2).mean(-1, keepdims=True)
        return (v - mu) / jnp.sqrt(var + EPS) * g + b

    B, P, N, D = x.shape
    inner = heads * dim_head
    scale = dim_head ** (-0.5)
    for p in layer_params:
        h = ln(x, p["ln1_g"][0], p["ln1_b"][0])
        q, k, v = h @ p["wq"], h @ p["wk"], h @ p["wv"]

        def heads_view(t):  # (B,P,N,inner) -> (B,P,H,N,dh)
            return t.reshape(B, P, N, heads, dim_head).transpose(0, 1, 3, 2, 4)

        q, k, v = heads_view(q), heads_view(k), heads_view(v)
        dots = jnp.einsum("bphnd,bphmd->bphnm", q, k) * scale
        attn = jax.nn.softmax(dots, axis=-1)
        out = jnp.einsum("bphnm,bphmd->bphnd", attn, v)
        out = out.transpose(0, 1, 3, 2, 4).reshape(B, P, N, inner)
        x = x + out @ p["wout"] + p["bout"][0]
        h2 = ln(x, p["ln2_g"][0], p["ln2_b"][0])
        x = x + jnp.maximum(h2 @ p["w1"] + p["b1"][0], 0.0) @ p["w2"] + p["b2"][0]
    return x


if __name__ == "__main__":
    # Shapes consistent with the module's forward: x is (b, p, n, dim).
    b, p_patches, n, dim = 2, 4, 8, 32
    depth, heads, dim_head, mlp_dim = 2, 4, 8, 64

    key = jax.random.PRNGKey(0)
    kx, kp = jax.random.split(key)
    x = jax.random.normal(kx, (b, p_patches, n, dim), jnp.float32)
    layer_params = init_params(kp, depth, dim, heads, dim_head, mlp_dim)

    out = transformer_forward(x, layer_params, heads=heads, dim_head=dim_head)
    out = jax.block_until_ready(out)

    ref = reference_forward(x, layer_params, heads=heads, dim_head=dim_head)
    assert out.shape == (b, p_patches, n, dim)
    # bf16 MXU operands (f32 accumulate) -> slightly looser tolerance than pure f32.
    assert jnp.allclose(out, ref, atol=3e-2, rtol=3e-2), "mismatch vs JAX reference"
    print("KERNEL_OK")
</pallas_src>

<mosaic_0001>
module attributes {stable_mosaic.version = 11 : i64} {
  func.func @fused_transformer_kernel(%arg0: i32, %arg1: memref<4x8x32xf32, #tpu.memory_space<vmem>>, %arg2: memref<2x1x32xf32, #tpu.memory_space<vmem>>, %arg3: memref<2x1x32xf32, #tpu.memory_space<vmem>>, %arg4: memref<2x32x32xbf16, #tpu.memory_space<vmem>>, %arg5: memref<2x32x32xbf16, #tpu.memory_space<vmem>>, %arg6: memref<2x32x32xbf16, #tpu.memory_space<vmem>>, %arg7: memref<2x32x32xbf16, #tpu.memory_space<vmem>>, %arg8: memref<2x1x32xf32, #tpu.memory_space<vmem>>, %arg9: memref<2x1x32xf32, #tpu.memory_space<vmem>>, %arg10: memref<2x1x32xf32, #tpu.memory_space<vmem>>, %arg11: memref<2x32x64xbf16, #tpu.memory_space<vmem>>, %arg12: memref<2x1x64xf32, #tpu.memory_space<vmem>>, %arg13: memref<2x64x32xbf16, #tpu.memory_space<vmem>>, %arg14: memref<2x1x32xf32, #tpu.memory_space<vmem>>, %arg15: memref<4x8x32xf32, #tpu.memory_space<vmem>>) attributes {dimension_semantics = [#tpu.dimension_semantics<parallel>], iteration_bounds = array<i64: 2>, scalar_prefetch = 0 : i64, scratch_operands = 0 : i64, tpu.core_type = #tpu.core_type<tc>, window_params = [{transform_indices = @transform_0, window_bounds = array<i64: 4, 8, 32>}, {pipeline_mode = #tpu.pipeline_mode<synchronous>, transform_indices = @transform_1, window_bounds = array<i64: 2, 1, 32>}, {pipeline_mode = #tpu.pipeline_mode<synchronous>, transform_indices = @transform_2, window_bounds = array<i64: 2, 1, 32>}, {pipeline_mode = #tpu.pipeline_mode<synchronous>, transform_indices = @transform_3, window_bounds = array<i64: 2, 32, 32>}, {pipeline_mode = #tpu.pipeline_mode<synchronous>, transform_indices = @transform_4, window_bounds = array<i64: 2, 32, 32>}, {pipeline_mode = #tpu.pipeline_mode<synchronous>, transform_indices = @transform_5, window_bounds = array<i64: 2, 32, 32>}, {pipeline_mode = #tpu.pipeline_mode<synchronous>, transform_indices = @transform_6, window_bounds = array<i64: 2, 32, 32>}, {pipeline_mode = #tpu.pipeline_mode<synchronous>, transform_indices = @transform_7, window_bounds = array<i64: 2, 1, 32>}, {pipeline_mode = #tpu.pipeline_mode<synchronous>, transform_indices = @transform_8, window_bounds = array<i64: 2, 1, 32>}, {pipeline_mode = #tpu.pipeline_mode<synchronous>, transform_indices = @transform_9, window_bounds = array<i64: 2, 1, 32>}, {pipeline_mode = #tpu.pipeline_mode<synchronous>, transform_indices = @transform_10, window_bounds = array<i64: 2, 32, 64>}, {pipeline_mode = #tpu.pipeline_mode<synchronous>, transform_indices = @transform_11, window_bounds = array<i64: 2, 1, 64>}, {pipeline_mode = #tpu.pipeline_mode<synchronous>, transform_indices = @transform_12, window_bounds = array<i64: 2, 64, 32>}, {pipeline_mode = #tpu.pipeline_mode<synchronous>, transform_indices = @transform_13, window_bounds = array<i64: 2, 1, 32>}, {transform_indices = @transform_14, window_bounds = array<i64: 4, 8, 32>}]} {
    %c0 = arith.constant 0 : index
    %c0_0 = arith.constant 0 : index
    %c0_1 = arith.constant 0 : index
    %0 = vector.load %arg1[%c0, %c0_0, %c0_1] : memref<4x8x32xf32, #tpu.memory_space<vmem>>, vector<4x8x32xf32>
    %1 = vector.shape_cast %0 : vector<4x8x32xf32> to vector<32x32xf32>
    %c0_2 = arith.constant 0 : index
    %c0_3 = arith.constant 0 : index
    %c0_4 = arith.constant 0 : index
    %2 = vector.load %arg2[%c0_2, %c0_3, %c0_4] : memref<2x1x32xf32, #tpu.memory_space<vmem>>, vector<1x1x32xf32>
    %3 = vector.shape_cast %2 : vector<1x1x32xf32> to vector<1x32xf32>
    %c0_5 = arith.constant 0 : index
    %c0_6 = arith.constant 0 : index
    %c0_7 = arith.constant 0 : index
    %4 = vector.load %arg3[%c0_5, %c0_6, %c0_7] : memref<2x1x32xf32, #tpu.memory_space<vmem>>, vector<1x1x32xf32>
    %5 = vector.shape_cast %4 : vector<1x1x32xf32> to vector<1x32xf32>
    %cst = arith.constant dense<0.000000e+00> : vector<32xf32>
    %6 = vector.multi_reduction <add>, %1, %cst [1] : vector<32x32xf32> to vector<32xf32>
    %7 = vector.shape_cast %6 : vector<32xf32> to vector<32x1xf32>
    %cst_8 = arith.constant 3.200000e+01 : f32
    %8 = vector.broadcast %cst_8 : f32 to vector<32x1xf32>
    %9 = arith.divf %7, %8 : vector<32x1xf32>
    %10 = vector.broadcast %9 : vector<32x1xf32> to vector<32x32xf32>
    %11 = arith.subf %1, %10 : vector<32x32xf32>
    %12 = arith.mulf %11, %11 : vector<32x32xf32>
    %cst_9 = arith.constant dense<0.000000e+00> : vector<32xf32>
    %13 = vector.multi_reduction <add>, %12, %cst_9 [1] : vector<32x32xf32> to vector<32xf32>
    %14 = vector.shape_cast %13 : vector<32xf32> to vector<32x1xf32>
    %cst_10 = arith.constant 3.200000e+01 : f32
    %15 = vector.broadcast %cst_10 : f32 to vector<32x1xf32>
    %16 = arith.divf %14, %15 : vector<32x1xf32>
    %17 = vector.broadcast %9 : vector<32x1xf32> to vector<32x32xf32>
    %18 = arith.subf %1, %17 : vector<32x32xf32>
    %cst_11 = arith.constant 9.99999974E-6 : f32
    %19 = vector.broadcast %cst_11 : f32 to vector<32x1xf32>
    %20 = arith.addf %16, %19 : vector<32x1xf32>
    %21 = math.rsqrt %20 : vector<32x1xf32>
    %22 = vector.broadcast %21 : vector<32x1xf32> to vector<32x32xf32>
    %23 = arith.mulf %18, %22 : vector<32x32xf32>
    %24 = vector.broadcast %3 : vector<1x32xf32> to vector<32x32xf32>
    %25 = arith.mulf %23, %24 : vector<32x32xf32>
    %26 = vector.broadcast %5 : vector<1x32xf32> to vector<32x32xf32>
    %27 = arith.addf %25, %26 : vector<32x32xf32>
    %c0_12 = arith.constant 0 : index
    %c0_13 = arith.constant 0 : index
    %c0_14 = arith.constant 0 : index
    %28 = vector.load %arg4[%c0_12, %c0_13, %c0_14] : memref<2x32x32xbf16, #tpu.memory_space<vmem>>, vector<1x32x32xbf16>
    %29 = vector.shape_cast %28 : vector<1x32x32xbf16> to vector<32x32xbf16>
    %30 = arith.truncf %27 : vector<32x32xf32> to vector<32x32xbf16>
    %cst_15 = arith.constant dense<0.000000e+00> : vector<32x32xf32>
    %31 = tpu.matmul %30, %29, %cst_15 {dimension_numbers = #tpu.dot_dimension_numbers<[1], [0], [0], [1], [0, 0, 1, 1], [], []>} : vector<32x32xbf16>, vector<32x32xbf16>, vector<32x32xf32> -> vector<32x32xf32>
    %c0_16 = arith.constant 0 : index
    %c0_17 = arith.constant 0 : index
    %c0_18 = arith.constant 0 : index
    %32 = vector.load %arg5[%c0_16, %c0_17, %c0_18] : memref<2x32x32xbf16, #tpu.memory_space<vmem>>, vector<1x32x32xbf16>
    %33 = vector.shape_cast %32 : vector<1x32x32xbf16> to vector<32x32xbf16>
    %34 = arith.truncf %27 : vector<32x32xf32> to vector<32x32xbf16>
    %cst_19 = arith.constant dense<0.000000e+00> : vector<32x32xf32>
    %35 = tpu.matmul %34, %33, %cst_19 {dimension_numbers = #tpu.dot_dimension_numbers<[1], [0], [0], [1], [0, 0, 1, 1], [], []>} : vector<32x32xbf16>, vector<32x32xbf16>, vector<32x32xf32> -> vector<32x32xf32>
    %c0_20 = arith.constant 0 : index
    %c0_21 = arith.constant 0 : index
    %c0_22 = arith.constant 0 : index
    %36 = vector.load %arg6[%c0_20, %c0_21, %c0_22] : memref<2x32x32xbf16, #tpu.memory_space<vmem>>, vector<1x32x32xbf16>
    %37 = vector.shape_cast %36 : vector<1x32x32xbf16> to vector<32x32xbf16>
    %38 = arith.truncf %27 : vector<32x32xf32> to vector<32x32xbf16>
    %cst_23 = arith.constant dense<0.000000e+00> : vector<32x32xf32>
    %39 = tpu.matmul %38, %37, %cst_23 {dimension_numbers = #tpu.dot_dimension_numbers<[1], [0], [0], [1], [0, 0, 1, 1], [], []>} : vector<32x32xbf16>, vector<32x32xbf16>, vector<32x32xf32> -> vector<32x32xf32>
    %40 = vector.extract_strided_slice %31 {offsets = [0, 0], sizes = [32, 8], strides = [1, 1]} : vector<32x32xf32> to vector<32x8xf32>
    %41 = vector.shape_cast %40 : vector<32x8xf32> to vector<4x8x8xf32>
    %42 = arith.truncf %41 : vector<4x8x8xf32> to vector<4x8x8xbf16>
    %43 = vector.extract_strided_slice %35 {offsets = [0, 0], sizes = [32, 8], strides = [1, 1]} : vector<32x32xf32> to vector<32x8xf32>
    %44 = vector.shape_cast %43 : vector<32x8xf32> to vector<4x8x8xf32>
    %45 = arith.truncf %44 : vector<4x8x8xf32> to vector<4x8x8xbf16>
    %46 = vector.extract_strided_slice %39 {offsets = [0, 0], sizes = [32, 8], strides = [1, 1]} : vector<32x32xf32> to vector<32x8xf32>
    %47 = vector.shape_cast %46 : vector<32x8xf32> to vector<4x8x8xf32>
    %48 = arith.truncf %47 : vector<4x8x8xf32> to vector<4x8x8xbf16>
    "tpu.trace_start"() <{level = 10 : i32, message = "bnd,bmd->bnm"}> : () -> ()
    %cst_24 = arith.constant dense<0.000000e+00> : vector<4x8x8xf32>
    %49 = tpu.matmul %42, %45, %cst_24 {dimension_numbers = #tpu.dot_dimension_numbers<[2], [2], [1], [1], [0, 0, 0, 1, 1, 1], [0], [0]>} : vector<4x8x8xbf16>, vector<4x8x8xbf16>, vector<4x8x8xf32> -> vector<4x8x8xf32>
    "tpu.trace_stop"() : () -> ()
    %cst_25 = arith.constant 0.353553385 : f32
    %50 = vector.broadcast %cst_25 : f32 to vector<4x8x8xf32>
    %51 = arith.mulf %49, %50 : vector<4x8x8xf32>
    %cst_26 = arith.constant dense<0xFF800000> : vector<4x8xf32>
    %52 = vector.multi_reduction <maximumf>, %51, %cst_26 [2] : vector<4x8x8xf32> to vector<4x8xf32>
    %53 = vector.shape_cast %52 : vector<4x8xf32> to vector<4x8x1xf32>
    %54 = vector.broadcast %53 : vector<4x8x1xf32> to vector<4x8x8xf32>
    %55 = arith.subf %51, %54 : vector<4x8x8xf32>
    %56 = math.exp %55 : vector<4x8x8xf32>
    %cst_27 = arith.constant dense<0.000000e+00> : vector<4x8xf32>
    %57 = vector.multi_reduction <add>, %56, %cst_27 [2] : vector<4x8x8xf32> to vector<4x8xf32>
    %58 = vector.shape_cast %57 : vector<4x8xf32> to vector<4x8x1xf32>
    %59 = tpu.reciprocal %58 {approx = true} : vector<4x8x1xf32> -> vector<4x8x1xf32>
    %60 = vector.broadcast %59 : vector<4x8x1xf32> to vector<4x8x8xf32>
    %61 = arith.mulf %56, %60 : vector<4x8x8xf32>
    %62 = arith.truncf %61 : vector<4x8x8xf32> to vector<4x8x8xbf16>
    "tpu.trace_start"() <{level = 10 : i32, message = "bnm,bmd->bnd"}> : () -> ()
    %cst_28 = arith.constant dense<0.000000e+00> : vector<4x8x8xf32>
    %63 = tpu.matmul %62, %48, %cst_28 {dimension_numbers = #tpu.dot_dimension_numbers<[2], [1], [1], [2], [0, 0, 0, 1, 1, 2], [0], [0]>} : vector<4x8x8xbf16>, vector<4x8x8xbf16>, vector<4x8x8xf32> -> vector<4x8x8xf32>
    "tpu.trace_stop"() : () -> ()
    %64 = vector.shape_cast %63 : vector<4x8x8xf32> to vector<32x8xf32>
    %65 = vector.extract_strided_slice %31 {offsets = [0, 8], sizes = [32, 8], strides = [1, 1]} : vector<32x32xf32> to vector<32x8xf32>
    %66 = vector.shape_cast %65 : vector<32x8xf32> to vector<4x8x8xf32>
    %67 = arith.truncf %66 : vector<4x8x8xf32> to vector<4x8x8xbf16>
    %68 = vector.extract_strided_slice %35 {offsets = [0, 8], sizes = [32, 8], strides = [1, 1]} : vector<32x32xf32> to vector<32x8xf32>
    %69 = vector.shape_cast %68 : vector<32x8xf32> to vector<4x8x8xf32>
    %70 = arith.truncf %69 : vector<4x8x8xf32> to vector<4x8x8xbf16>
    %71 = vector.extract_strided_slice %39 {offsets = [0, 8], sizes = [32, 8], strides = [1, 1]} : vector<32x32xf32> to vector<32x8xf32>
    %72 = vector.shape_cast %71 : vector<32x8xf32> to vector<4x8x8xf32>
    %73 = arith.truncf %72 : vector<4x8x8xf32> to vector<4x8x8xbf16>
    "tpu.trace_start"() <{level = 10 : i32, message = "bnd,bmd->bnm"}> : () -> ()
    %cst_29 = arith.constant dense<0.000000e+00> : vector<4x8x8xf32>
    %74 = tpu.matmul %67, %70, %cst_29 {dimension_numbers = #tpu.dot_dimension_numbers<[2], [2], [1], [1], [0, 0, 0, 1, 1, 1], [0], [0]>} : vector<4x8x8xbf16>, vector<4x8x8xbf16>, vector<4x8x8xf32> -> vector<4x8x8xf32>
    "tpu.trace_stop"() : () -> ()
    %cst_30 = arith.constant 0.353553385 : f32
    %75 = vector.broadcast %cst_30 : f32 to vector<4x8x8xf32>
    %76 = arith.mulf %74, %75 : vector<4x8x8xf32>
    %cst_31 = arith.constant dense<0xFF800000> : vector<4x8xf32>
    %77 = vector.multi_reduction <maximumf>, %76, %cst_31 [2] : vector<4x8x8xf32> to vector<4x8xf32>
    %78 = vector.shape_cast %77 : vector<4x8xf32> to vector<4x8x1xf32>
    %79 = vector.broadcast %78 : vector<4x8x1xf32> to vector<4x8x8xf32>
    %80 = arith.subf %76, %79 : vector<4x8x8xf32>
    %81 = math.exp %80 : vector<4x8x8xf32>
    %cst_32 = arith.constant dense<0.000000e+00> : vector<4x8xf32>
    %82 = vector.multi_reduction <add>, %81, %cst_32 [2] : vector<4x8x8xf32> to vector<4x8xf32>
    %83 = vector.shape_cast %82 : vector<4x8xf32> to vector<4x8x1xf32>
    %84 = tpu.reciprocal %83 {approx = true} : vector<4x8x1xf32> -> vector<4x8x1xf32>
    %85 = vector.broadcast %84 : vector<4x8x1xf32> to vector<4x8x8xf32>
    %86 = arith.mulf %81, %85 : vector<4x8x8xf32>
    %87 = arith.truncf %86 : vector<4x8x8xf32> to vector<4x8x8xbf16>
    "tpu.trace_start"() <{level = 10 : i32, message = "bnm,bmd->bnd"}> : () -> ()
    %cst_33 = arith.constant dense<0.000000e+00> : vector<4x8x8xf32>
    %88 = tpu.matmul %87, %73, %cst_33 {dimension_numbers = #tpu.dot_dimension_numbers<[2], [1], [1], [2], [0, 0, 0, 1, 1, 2], [0], [0]>} : vector<4x8x8xbf16>, vector<4x8x8xbf16>, vector<4x8x8xf32> -> vector<4x8x8xf32>
    "tpu.trace_stop"() : () -> ()
    %89 = vector.shape_cast %88 : vector<4x8x8xf32> to vector<32x8xf32>
    %90 = vector.extract_strided_slice %31 {offsets = [0, 16], sizes = [32, 8], strides = [1, 1]} : vector<32x32xf32> to vector<32x8xf32>
    %91 = vector.shape_cast %90 : vector<32x8xf32> to vector<4x8x8xf32>
    %92 = arith.truncf %91 : vector<4x8x8xf32> to vector<4x8x8xbf16>
    %93 = vector.extract_strided_slice %35 {offsets = [0, 16], sizes = [32, 8], strides = [1, 1]} : vector<32x32xf32> to vector<32x8xf32>
    %94 = vector.shape_cast %93 : vector<32x8xf32> to vector<4x8x8xf32>
    %95 = arith.truncf %94 : vector<4x8x8xf32> to vector<4x8x8xbf16>
    %96 = vector.extract_strided_slice %39 {offsets = [0, 16], sizes = [32, 8], strides = [1, 1]} : vector<32x32xf32> to vector<32x8xf32>
    %97 = vector.shape_cast %96 : vector<32x8xf32> to vector<4x8x8xf32>
    %98 = arith.truncf %97 : vector<4x8x8xf32> to vector<4x8x8xbf16>
    "tpu.trace_start"() <{level = 10 : i32, message = "bnd,bmd->bnm"}> : () -> ()
    %cst_34 = arith.constant dense<0.000000e+00> : vector<4x8x8xf32>
    %99 = tpu.matmul %92, %95, %cst_34 {dimension_numbers = #tpu.dot_dimension_numbers<[2], [2], [1], [1], [0, 0, 0, 1, 1, 1], [0], [0]>} : vector<4x8x8xbf16>, vector<4x8x8xbf16>, vector<4x8x8xf32> -> vector<4x8x8xf32>
    "tpu.trace_stop"() : () -> ()
    %cst_35 = arith.constant 0.353553385 : f32
    %100 = vector.broadcast %cst_35 : f32 to vector<4x8x8xf32>
    %101 = arith.mulf %99, %100 : vector<4x8x8xf32>
    %cst_36 = arith.constant dense<0xFF800000> : vector<4x8xf32>
    %102 = vector.multi_reduction <maximumf>, %101, %cst_36 [2] : vector<4x8x8xf32> to vector<4x8xf32>
    %103 = vector.shape_cast %102 : vector<4x8xf32> to vector<4x8x1xf32>
    %104 = vector.broadcast %103 : vector<4x8x1xf32> to vector<4x8x8xf32>
    %105 = arith.subf %101, %104 : vector<4x8x8xf32>
    %106 = math.exp %105 : vector<4x8x8xf32>
    %cst_37 = arith.constant dense<0.000000e+00> : vector<4x8xf32>
    %107 = vector.multi_reduction <add>, %106, %cst_37 [2] : vector<4x8x8xf32> to vector<4x8xf32>
    %108 = vector.shape_cast %107 : vector<4x8xf32> to vector<4x8x1xf32>
    %109 = tpu.reciprocal %108 {approx = true} : vector<4x8x1xf32> -> vector<4x8x1xf32>
    %110 = vector.broadcast %109 : vector<4x8x1xf32> to vector<4x8x8xf32>
    %111 = arith.mulf %106, %110 : vector<4x8x8xf32>
    %112 = arith.truncf %111 : vector<4x8x8xf32> to vector<4x8x8xbf16>
    "tpu.trace_start"() <{level = 10 : i32, message = "bnm,bmd->bnd"}> : () -> ()
    %cst_38 = arith.constant dense<0.000000e+00> : vector<4x8x8xf32>
    %113 = tpu.matmul %112, %98, %cst_38 {dimension_numbers = #tpu.dot_dimension_numbers<[2], [1], [1], [2], [0, 0, 0, 1, 1, 2], [0], [0]>} : vector<4x8x8xbf16>, vector<4x8x8xbf16>, vector<4x8x8xf32> -> vector<4x8x8xf32>
    "tpu.trace_stop"() : () -> ()
    %114 = vector.shape_cast %113 : vector<4x8x8xf32> to vector<32x8xf32>
    %115 = vector.extract_strided_slice %31 {offsets = [0, 24], sizes = [32, 8], strides = [1, 1]} : vector<32x32xf32> to vector<32x8xf32>
    %116 = vector.shape_cast %115 : vector<32x8xf32> to vector<4x8x8xf32>
    %117 = arith.truncf %116 : vector<4x8x8xf32> to vector<4x8x8xbf16>
    %118 = vector.extract_strided_slice %35 {offsets = [0, 24], sizes = [32, 8], strides = [1, 1]} : vector<32x32xf32> to vector<32x8xf32>
    %119 = vector.shape_cast %118 : vector<32x8xf32> to vector<4x8x8xf32>
    %120 = arith.truncf %119 : vector<4x8x8xf32> to vector<4x8x8xbf16>
    %121 = vector.extract_strided_slice %39 {offsets = [0, 24], sizes = [32, 8], strides = [1, 1]} : vector<32x32xf32> to vector<32x8xf32>
    %122 = vector.shape_cast %121 : vector<32x8xf32> to vector<4x8x8xf32>
    %123 = arith.truncf %122 : vector<4x8x8xf32> to vector<4x8x8xbf16>
    "tpu.trace_start"() <{level = 10 : i32, message = "bnd,bmd->bnm"}> : () -> ()
    %cst_39 = arith.constant dense<0.000000e+00> : vector<4x8x8xf32>
    %124 = tpu.matmul %117, %120, %cst_39 {dimension_numbers = #tpu.dot_dimension_numbers<[2], [2], [1], [1], [0, 0, 0, 1, 1, 1], [0], [0]>} : vector<4x8x8xbf16>, vector<4x8x8xbf16>, vector<4x8x8xf32> -> vector<4x8x8xf32>
    "tpu.trace_stop"() : () -> ()
    %cst_40 = arith.constant 0.353553385 : f32
    %125 = vector.broadcast %cst_40 : f32 to vector<4x8x8xf32>
    %126 = arith.mulf %124, %125 : vector<4x8x8xf32>
    %cst_41 = arith.constant dense<0xFF800000> : vector<4x8xf32>
    %127 = vector.multi_reduction <maximumf>, %126, %cst_41 [2] : vector<4x8x8xf32> to vector<4x8xf32>
    %128 = vector.shape_cast %127 : vector<4x8xf32> to vector<4x8x1xf32>
    %129 = vector.broadcast %128 : vector<4x8x1xf32> to vector<4x8x8xf32>
    %130 = arith.subf %126, %129 : vector<4x8x8xf32>
    %131 = math.exp %130 : vector<4x8x8xf32>
    %cst_42 = arith.constant dense<0.000000e+00> : vector<4x8xf32>
    %132 = vector.multi_reduction <add>, %131, %cst_42 [2] : vector<4x8x8xf32> to vector<4x8xf32>
    %133 = vector.shape_cast %132 : vector<4x8xf32> to vector<4x8x1xf32>
    %134 = tpu.reciprocal %133 {approx = true} : vector<4x8x1xf32> -> vector<4x8x1xf32>
    %135 = vector.broadcast %134 : vector<4x8x1xf32> to vector<4x8x8xf32>
    %136 = arith.mulf %131, %135 : vector<4x8x8xf32>
    %137 = arith.truncf %136 : vector<4x8x8xf32> to vector<4x8x8xbf16>
    "tpu.trace_start"() <{level = 10 : i32, message = "bnm,bmd->bnd"}> : () -> ()
    %cst_43 = arith.constant dense<0.000000e+00> : vector<4x8x8xf32>
    %138 = tpu.matmul %137, %123, %cst_43 {dimension_numbers = #tpu.dot_dimension_numbers<[2], [1], [1], [2], [0, 0, 0, 1, 1, 2], [0], [0]>} : vector<4x8x8xbf16>, vector<4x8x8xbf16>, vector<4x8x8xf32> -> vector<4x8x8xf32>
    "tpu.trace_stop"() : () -> ()
    %139 = vector.shape_cast %138 : vector<4x8x8xf32> to vector<32x8xf32>
    %140 = tpu.concatenate %64, %89, %114, %139 in 1 : vector<32x8xf32>, vector<32x8xf32>, vector<32x8xf32>, vector<32x8xf32> -> vector<32x32xf32>
    %c0_44 = arith.constant 0 : index
    %c0_45 = arith.constant 0 : index
    %c0_46 = arith.constant 0 : index
    %141 = vector.load %arg7[%c0_44, %c0_45, %c0_46] : memref<2x32x32xbf16, #tpu.memory_space<vmem>>, vector<1x32x32xbf16>
    %142 = vector.shape_cast %141 : vector<1x32x32xbf16> to vector<32x32xbf16>
    %143 = arith.truncf %140 : vector<32x32xf32> to vector<32x32xbf16>
    %cst_47 = arith.constant dense<0.000000e+00> : vector<32x32xf32>
    %144 = tpu.matmul %143, %142, %cst_47 {dimension_numbers = #tpu.dot_dimension_numbers<[1], [0], [0], [1], [0, 0, 1, 1], [], []>} : vector<32x32xbf16>, vector<32x32xbf16>, vector<32x32xf32> -> vector<32x32xf32>
    %145 = arith.addf %1, %144 : vector<32x32xf32>
    %c0_48 = arith.constant 0 : index
    %c0_49 = arith.constant 0 : index
    %c0_50 = arith.constant 0 : index
    %146 = vector.load %arg8[%c0_48, %c0_49, %c0_50] : memref<2x1x32xf32, #tpu.memory_space<vmem>>, vector<1x1x32xf32>
    %147 = vector.shape_cast %146 : vector<1x1x32xf32> to vector<1x32xf32>
    %148 = vector.broadcast %147 : vector<1x32xf32> to vector<32x32xf32>
    %149 = arith.addf %145, %148 : vector<32x32xf32>
    %c0_51 = arith.constant 0 : index
    %c0_52 = arith.constant 0 : index
    %c0_53 = arith.constant 0 : index
    %150 = vector.load %arg9[%c0_51, %c0_52, %c0_53] : memref<2x1x32xf32, #tpu.memory_space<vmem>>, vector<1x1x32xf32>
    %151 = vector.shape_cast %150 : vector<1x1x32xf32> to vector<1x32xf32>
    %c0_54 = arith.constant 0 : index
    %c0_55 = arith.constant 0 : index
    %c0_56 = arith.constant 0 : index
    %152 = vector.load %arg10[%c0_54, %c0_55, %c0_56] : memref<2x1x32xf32, #tpu.memory_space<vmem>>, vector<1x1x32xf32>
    %153 = vector.shape_cast %152 : vector<1x1x32xf32> to vector<1x32xf32>
    %cst_57 = arith.constant dense<0.000000e+00> : vector<32xf32>
    %154 = vector.multi_reduction <add>, %149, %cst_57 [1] : vector<32x32xf32> to vector<32xf32>
    %155 = vector.shape_cast %154 : vector<32xf32> to vector<32x1xf32>
    %cst_58 = arith.constant 3.200000e+01 : f32
    %156 = vector.broadcast %cst_58 : f32 to vector<32x1xf32>
    %157 = arith.divf %155, %156 : vector<32x1xf32>
    %158 = vector.broadcast %157 : vector<32x1xf32> to vector<32x32xf32>
    %159 = arith.subf %149, %158 : vector<32x32xf32>
    %160 = arith.mulf %159, %159 : vector<32x32xf32>
    %cst_59 = arith.constant dense<0.000000e+00> : vector<32xf32>
    %161 = vector.multi_reduction <add>, %160, %cst_59 [1] : vector<32x32xf32> to vector<32xf32>
    %162 = vector.shape_cast %161 : vector<32xf32> to vector<32x1xf32>
    %cst_60 = arith.constant 3.200000e+01 : f32
    %163 = vector.broadcast %cst_60 : f32 to vector<32x1xf32>
    %164 = arith.divf %162, %163 : vector<32x1xf32>
    %165 = vector.broadcast %157 : vector<32x1xf32> to vector<32x32xf32>
    %166 = arith.subf %149, %165 : vector<32x32xf32>
    %cst_61 = arith.constant 9.99999974E-6 : f32
    %167 = vector.broadcast %cst_61 : f32 to vector<32x1xf32>
    %168 = arith.addf %164, %167 : vector<32x1xf32>
    %169 = math.rsqrt %168 : vector<32x1xf32>
    %170 = vector.broadcast %169 : vector<32x1xf32> to vector<32x32xf32>
    %171 = arith.mulf %166, %170 : vector<32x32xf32>
    %172 = vector.broadcast %151 : vector<1x32xf32> to vector<32x32xf32>
    %173 = arith.mulf %171, %172 : vector<32x32xf32>
    %174 = vector.broadcast %153 : vector<1x32xf32> to vector<32x32xf32>
    %175 = arith.addf %173, %174 : vector<32x32xf32>
    %c0_62 = arith.constant 0 : index
    %c0_63 = arith.constant 0 : index
    %c0_64 = arith.constant 0 : index
    %176 = vector.load %arg11[%c0_62, %c0_63, %c0_64] : memref<2x32x64xbf16, #tpu.memory_space<vmem>>, vector<1x32x64xbf16>
    %177 = vector.shape_cast %176 : vector<1x32x64xbf16> to vector<32x64xbf16>
    %178 = arith.truncf %175 : vector<32x32xf32> to vector<32x32xbf16>
    %cst_65 = arith.constant dense<0.000000e+00> : vector<32x64xf32>
    %179 = tpu.matmul %178, %177, %cst_65 {dimension_numbers = #tpu.dot_dimension_numbers<[1], [0], [0], [1], [0, 0, 1, 1], [], []>} : vector<32x32xbf16>, vector<32x64xbf16>, vector<32x64xf32> -> vector<32x64xf32>
    %c0_66 = arith.constant 0 : index
    %c0_67 = arith.constant 0 : index
    %c0_68 = arith.constant 0 : index
    %180 = vector.load %arg12[%c0_66, %c0_67, %c0_68] : memref<2x1x64xf32, #tpu.memory_space<vmem>>, vector<1x1x64xf32>
    %181 = vector.shape_cast %180 : vector<1x1x64xf32> to vector<1x64xf32>
    %182 = vector.broadcast %181 : vector<1x64xf32> to vector<32x64xf32>
    %183 = arith.addf %179, %182 : vector<32x64xf32>
    %cst_69 = arith.constant 0.000000e+00 : f32
    %184 = vector.broadcast %cst_69 : f32 to vector<32x64xf32>
    %185 = arith.maximumf %183, %184 : vector<32x64xf32>
    %c0_70 = arith.constant 0 : index
    %c0_71 = arith.constant 0 : index
    %c0_72 = arith.constant 0 : index
    %186 = vector.load %arg13[%c0_70, %c0_71, %c0_72] : memref<2x64x32xbf16, #tpu.memory_space<vmem>>, vector<1x64x32xbf16>
    %187 = vector.shape_cast %186 : vector<1x64x32xbf16> to vector<64x32xbf16>
    %188 = arith.truncf %185 : vector<32x64xf32> to vector<32x64xbf16>
    %cst_73 = arith.constant dense<0.000000e+00> : vector<32x32xf32>
    %189 = tpu.matmul %188, %187, %cst_73 {dimension_numbers = #tpu.dot_dimension_numbers<[1], [0], [0], [1], [0, 0, 1, 1], [], []>} : vector<32x64xbf16>, vector<64x32xbf16>, vector<32x32xf32> -> vector<32x32xf32>
    %190 = arith.addf %149, %189 : vector<32x32xf32>
    %c0_74 = arith.constant 0 : index
    %c0_75 = arith.constant 0 : index
    %c0_76 = arith.constant 0 : index
    %191 = vector.load %arg14[%c0_74, %c0_75, %c0_76] : memref<2x1x32xf32, #tpu.memory_space<vmem>>, vector<1x1x32xf32>
    %192 = vector.shape_cast %191 : vector<1x1x32xf32> to vector<1x32xf32>
    %193 = vector.broadcast %192 : vector<1x32xf32> to vector<32x32xf32>
    %194 = arith.addf %190, %193 : vector<32x32xf32>
    %c1 = arith.constant 1 : index
    %c0_77 = arith.constant 0 : index
    %c0_78 = arith.constant 0 : index
    %195 = vector.load %arg2[%c1, %c0_77, %c0_78] : memref<2x1x32xf32, #tpu.memory_space<vmem>>, vector<1x1x32xf32>
    %196 = vector.shape_cast %195 : vector<1x1x32xf32> to vector<1x32xf32>
    %c1_79 = arith.constant 1 : index
    %c0_80 = arith.constant 0 : index
    %c0_81 = arith.constant 0 : index
    %197 = vector.load %arg3[%c1_79, %c0_80, %c0_81] : memref<2x1x32xf32, #tpu.memory_space<vmem>>, vector<1x1x32xf32>
    %198 = vector.shape_cast %197 : vector<1x1x32xf32> to vector<1x32xf32>
    %cst_82 = arith.constant dense<0.000000e+00> : vector<32xf32>
    %199 = vector.multi_reduction <add>, %194, %cst_82 [1] : vector<32x32xf32> to vector<32xf32>
    %200 = vector.shape_cast %199 : vector<32xf32> to vector<32x1xf32>
    %cst_83 = arith.constant 3.200000e+01 : f32
    %201 = vector.broadcast %cst_83 : f32 to vector<32x1xf32>
    %202 = arith.divf %200, %201 : vector<32x1xf32>
    %203 = vector.broadcast %202 : vector<32x1xf32> to vector<32x32xf32>
    %204 = arith.subf %194, %203 : vector<32x32xf32>
    %205 = arith.mulf %204, %204 : vector<32x32xf32>
    %cst_84 = arith.constant dense<0.000000e+00> : vector<32xf32>
    %206 = vector.multi_reduction <add>, %205, %cst_84 [1] : vector<32x32xf32> to vector<32xf32>
    %207 = vector.shape_cast %206 : vector<32xf32> to vector<32x1xf32>
    %cst_85 = arith.constant 3.200000e+01 : f32
    %208 = vector.broadcast %cst_85 : f32 to vector<32x1xf32>
    %209 = arith.divf %207, %208 : vector<32x1xf32>
    %210 = vector.broadcast %202 : vector<32x1xf32> to vector<32x32xf32>
    %211 = arith.subf %194, %210 : vector<32x32xf32>
    %cst_86 = arith.constant 9.99999974E-6 : f32
    %212 = vector.broadcast %cst_86 : f32 to vector<32x1xf32>
    %213 = arith.addf %209, %212 : vector<32x1xf32>
    %214 = math.rsqrt %213 : vector<32x1xf32>
    %215 = vector.broadcast %214 : vector<32x1xf32> to vector<32x32xf32>
    %216 = arith.mulf %211, %215 : vector<32x32xf32>
    %217 = vector.broadcast %196 : vector<1x32xf32> to vector<32x32xf32>
    %218 = arith.mulf %216, %217 : vector<32x32xf32>
    %219 = vector.broadcast %198 : vector<1x32xf32> to vector<32x32xf32>
    %220 = arith.addf %218, %219 : vector<32x32xf32>
    %c1_87 = arith.constant 1 : index
    %c0_88 = arith.constant 0 : index
    %c0_89 = arith.constant 0 : index
    %221 = vector.load %arg4[%c1_87, %c0_88, %c0_89] : memref<2x32x32xbf16, #tpu.memory_space<vmem>>, vector<1x32x32xbf16>
    %222 = vector.shape_cast %221 : vector<1x32x32xbf16> to vector<32x32xbf16>
    %223 = arith.truncf %220 : vector<32x32xf32> to vector<32x32xbf16>
    %cst_90 = arith.constant dense<0.000000e+00> : vector<32x32xf32>
    %224 = tpu.matmul %223, %222, %cst_90 {dimension_numbers = #tpu.dot_dimension_numbers<[1], [0], [0], [1], [0, 0, 1, 1], [], []>} : vector<32x32xbf16>, vector<32x32xbf16>, vector<32x32xf32> -> vector<32x32xf32>
    %c1_91 = arith.constant 1 : index
    %c0_92 = arith.constant 0 : index
    %c0_93 = arith.constant 0 : index
    %225 = vector.load %arg5[%c1_91, %c0_92, %c0_93] : memref<2x32x32xbf16, #tpu.memory_space<vmem>>, vector<1x32x32xbf16>
    %226 = vector.shape_cast %225 : vector<1x32x32xbf16> to vector<32x32xbf16>
    %227 = arith.truncf %220 : vector<32x32xf32> to vector<32x32xbf16>
    %cst_94 = arith.constant dense<0.000000e+00> : vector<32x32xf32>
    %228 = tpu.matmul %227, %226, %cst_94 {dimension_numbers = #tpu.dot_dimension_numbers<[1], [0], [0], [1], [0, 0, 1, 1], [], []>} : vector<32x32xbf16>, vector<32x32xbf16>, vector<32x32xf32> -> vector<32x32xf32>
    %c1_95 = arith.constant 1 : index
    %c0_96 = arith.constant 0 : index
    %c0_97 = arith.constant 0 : index
    %229 = vector.load %arg6[%c1_95, %c0_96, %c0_97] : memref<2x32x32xbf16, #tpu.memory_space<vmem>>, vector<1x32x32xbf16>
    %230 = vector.shape_cast %229 : vector<1x32x32xbf16> to vector<32x32xbf16>
    %231 = arith.truncf %220 : vector<32x32xf32> to vector<32x32xbf16>
    %cst_98 = arith.constant dense<0.000000e+00> : vector<32x32xf32>
    %232 = tpu.matmul %231, %230, %cst_98 {dimension_numbers = #tpu.dot_dimension_numbers<[1], [0], [0], [1], [0, 0, 1, 1], [], []>} : vector<32x32xbf16>, vector<32x32xbf16>, vector<32x32xf32> -> vector<32x32xf32>
    %233 = vector.extract_strided_slice %224 {offsets = [0, 0], sizes = [32, 8], strides = [1, 1]} : vector<32x32xf32> to vector<32x8xf32>
    %234 = vector.shape_cast %233 : vector<32x8xf32> to vector<4x8x8xf32>
    %235 = arith.truncf %234 : vector<4x8x8xf32> to vector<4x8x8xbf16>
    %236 = vector.extract_strided_slice %228 {offsets = [0, 0], sizes = [32, 8], strides = [1, 1]} : vector<32x32xf32> to vector<32x8xf32>
    %237 = vector.shape_cast %236 : vector<32x8xf32> to vector<4x8x8xf32>
    %238 = arith.truncf %237 : vector<4x8x8xf32> to vector<4x8x8xbf16>
    %239 = vector.extract_strided_slice %232 {offsets = [0, 0], sizes = [32, 8], strides = [1, 1]} : vector<32x32xf32> to vector<32x8xf32>
    %240 = vector.shape_cast %239 : vector<32x8xf32> to vector<4x8x8xf32>
    %241 = arith.truncf %240 : vector<4x8x8xf32> to vector<4x8x8xbf16>
    "tpu.trace_start"() <{level = 10 : i32, message = "bnd,bmd->bnm"}> : () -> ()
    %cst_99 = arith.constant dense<0.000000e+00> : vector<4x8x8xf32>
    %242 = tpu.matmul %235, %238, %cst_99 {dimension_numbers = #tpu.dot_dimension_numbers<[2], [2], [1], [1], [0, 0, 0, 1, 1, 1], [0], [0]>} : vector<4x8x8xbf16>, vector<4x8x8xbf16>, vector<4x8x8xf32> -> vector<4x8x8xf32>
    "tpu.trace_stop"() : () -> ()
    %cst_100 = arith.constant 0.353553385 : f32
    %243 = vector.broadcast %cst_100 : f32 to vector<4x8x8xf32>
    %244 = arith.mulf %242, %243 : vector<4x8x8xf32>
    %cst_101 = arith.constant dense<0xFF800000> : vector<4x8xf32>
    %245 = vector.multi_reduction <maximumf>, %244, %cst_101 [2] : vector<4x8x8xf32> to vector<4x8xf32>
    %246 = vector.shape_cast %245 : vector<4x8xf32> to vector<4x8x1xf32>
    %247 = vector.broadcast %246 : vector<4x8x1xf32> to vector<4x8x8xf32>
    %248 = arith.subf %244, %247 : vector<4x8x8xf32>
    %249 = math.exp %248 : vector<4x8x8xf32>
    %cst_102 = arith.constant dense<0.000000e+00> : vector<4x8xf32>
    %250 = vector.multi_reduction <add>, %249, %cst_102 [2] : vector<4x8x8xf32> to vector<4x8xf32>
    %251 = vector.shape_cast %250 : vector<4x8xf32> to vector<4x8x1xf32>
    %252 = tpu.reciprocal %251 {approx = true} : vector<4x8x1xf32> -> vector<4x8x1xf32>
    %253 = vector.broadcast %252 : vector<4x8x1xf32> to vector<4x8x8xf32>
    %254 = arith.mulf %249, %253 : vector<4x8x8xf32>
    %255 = arith.truncf %254 : vector<4x8x8xf32> to vector<4x8x8xbf16>
    "tpu.trace_start"() <{level = 10 : i32, message = "bnm,bmd->bnd"}> : () -> ()
    %cst_103 = arith.constant dense<0.000000e+00> : vector<4x8x8xf32>
    %256 = tpu.matmul %255, %241, %cst_103 {dimension_numbers = #tpu.dot_dimension_numbers<[2], [1], [1], [2], [0, 0, 0, 1, 1, 2], [0], [0]>} : vector<4x8x8xbf16>, vector<4x8x8xbf16>, vector<4x8x8xf32> -> vector<4x8x8xf32>
    "tpu.trace_stop"() : () -> ()
    %257 = vector.shape_cast %256 : vector<4x8x8xf32> to vector<32x8xf32>
    %258 = vector.extract_strided_slice %224 {offsets = [0, 8], sizes = [32, 8], strides = [1, 1]} : vector<32x32xf32> to vector<32x8xf32>
    %259 = vector.shape_cast %258 : vector<32x8xf32> to vector<4x8x8xf32>
    %260 = arith.truncf %259 : vector<4x8x8xf32> to vector<4x8x8xbf16>
    %261 = vector.extract_strided_slice %228 {offsets = [0, 8], sizes = [32, 8], strides = [1, 1]} : vector<32x32xf32> to vector<32x8xf32>
    %262 = vector.shape_cast %261 : vector<32x8xf32> to vector<4x8x8xf32>
    %263 = arith.truncf %262 : vector<4x8x8xf32> to vector<4x8x8xbf16>
    %264 = vector.extract_strided_slice %232 {offsets = [0, 8], sizes = [32, 8], strides = [1, 1]} : vector<32x32xf32> to vector<32x8xf32>
    %265 = vector.shape_cast %264 : vector<32x8xf32> to vector<4x8x8xf32>
    %266 = arith.truncf %265 : vector<4x8x8xf32> to vector<4x8x8xbf16>
    "tpu.trace_start"() <{level = 10 : i32, message = "bnd,bmd->bnm"}> : () -> ()
    %cst_104 = arith.constant dense<0.000000e+00> : vector<4x8x8xf32>
    %267 = tpu.matmul %260, %263, %cst_104 {dimension_numbers = #tpu.dot_dimension_numbers<[2], [2], [1], [1], [0, 0, 0, 1, 1, 1], [0], [0]>} : vector<4x8x8xbf16>, vector<4x8x8xbf16>, vector<4x8x8xf32> -> vector<4x8x8xf32>
    "tpu.trace_stop"() : () -> ()
    %cst_105 = arith.constant 0.353553385 : f32
    %268 = vector.broadcast %cst_105 : f32 to vector<4x8x8xf32>
    %269 = arith.mulf %267, %268 : vector<4x8x8xf32>
    %cst_106 = arith.constant dense<0xFF800000> : vector<4x8xf32>
    %270 = vector.multi_reduction <maximumf>, %269, %cst_106 [2] : vector<4x8x8xf32> to vector<4x8xf32>
    %271 = vector.shape_cast %270 : vector<4x8xf32> to vector<4x8x1xf32>
    %272 = vector.broadcast %271 : vector<4x8x1xf32> to vector<4x8x8xf32>
    %273 = arith.subf %269, %272 : vector<4x8x8xf32>
    %274 = math.exp %273 : vector<4x8x8xf32>
    %cst_107 = arith.constant dense<0.000000e+00> : vector<4x8xf32>
    %275 = vector.multi_reduction <add>, %274, %cst_107 [2] : vector<4x8x8xf32> to vector<4x8xf32>
    %276 = vector.shape_cast %275 : vector<4x8xf32> to vector<4x8x1xf32>
    %277 = tpu.reciprocal %276 {approx = true} : vector<4x8x1xf32> -> vector<4x8x1xf32>
    %278 = vector.broadcast %277 : vector<4x8x1xf32> to vector<4x8x8xf32>
    %279 = arith.mulf %274, %278 : vector<4x8x8xf32>
    %280 = arith.truncf %279 : vector<4x8x8xf32> to vector<4x8x8xbf16>
    "tpu.trace_start"() <{level = 10 : i32, message = "bnm,bmd->bnd"}> : () -> ()
    %cst_108 = arith.constant dense<0.000000e+00> : vector<4x8x8xf32>
    %281 = tpu.matmul %280, %266, %cst_108 {dimension_numbers = #tpu.dot_dimension_numbers<[2], [1], [1], [2], [0, 0, 0, 1, 1, 2], [0], [0]>} : vector<4x8x8xbf16>, vector<4x8x8xbf16>, vector<4x8x8xf32> -> vector<4x8x8xf32>
    "tpu.trace_stop"() : () -> ()
    %282 = vector.shape_cast %281 : vector<4x8x8xf32> to vector<32x8xf32>
    %283 = vector.extract_strided_slice %224 {offsets = [0, 16], sizes = [32, 8], strides = [1, 1]} : vector<32x32xf32> to vector<32x8xf32>
    %284 = vector.shape_cast %283 : vector<32x8xf32> to vector<4x8x8xf32>
    %285 = arith.truncf %284 : vector<4x8x8xf32> to vector<4x8x8xbf16>
    %286 = vector.extract_strided_slice %228 {offsets = [0, 16], sizes = [32, 8], strides = [1, 1]} : vector<32x32xf32> to vector<32x8xf32>
    %287 = vector.shape_cast %286 : vector<32x8xf32> to vector<4x8x8xf32>
    %288 = arith.truncf %287 : vector<4x8x8xf32> to vector<4x8x8xbf16>
    %289 = vector.extract_strided_slice %232 {offsets = [0, 16], sizes = [32, 8], strides = [1, 1]} : vector<32x32xf32> to vector<32x8xf32>
    %290 = vector.shape_cast %289 : vector<32x8xf32> to vector<4x8x8xf32>
    %291 = arith.truncf %290 : vector<4x8x8xf32> to vector<4x8x8xbf16>
    "tpu.trace_start"() <{level = 10 : i32, message = "bnd,bmd->bnm"}> : () -> ()
    %cst_109 = arith.constant dense<0.000000e+00> : vector<4x8x8xf32>
    %292 = tpu.matmul %285, %288, %cst_109 {dimension_numbers = #tpu.dot_dimension_numbers<[2], [2], [1], [1], [0, 0, 0, 1, 1, 1], [0], [0]>} : vector<4x8x8xbf16>, vector<4x8x8xbf16>, vector<4x8x8xf32> -> vector<4x8x8xf32>
    "tpu.trace_stop"() : () -> ()
    %cst_110 = arith.constant 0.353553385 : f32
    %293 = vector.broadcast %cst_110 : f32 to vector<4x8x8xf32>
    %294 = arith.mulf %292, %293 : vector<4x8x8xf32>
    %cst_111 = arith.constant dense<0xFF800000> : vector<4x8xf32>
    %295 = vector.multi_reduction <maximumf>, %294, %cst_111 [2] : vector<4x8x8xf32> to vector<4x8xf32>
    %296 = vector.shape_cast %295 : vector<4x8xf32> to vector<4x8x1xf32>
    %297 = vector.broadcast %296 : vector<4x8x1xf32> to vector<4x8x8xf32>
    %298 = arith.subf %294, %297 : vector<4x8x8xf32>
    %299 = math.exp %298 : vector<4x8x8xf32>
    %cst_112 = arith.constant dense<0.000000e+00> : vector<4x8xf32>
    %300 = vector.multi_reduction <add>, %299, %cst_112 [2] : vector<4x8x8xf32> to vector<4x8xf32>
    %301 = vector.shape_cast %300 : vector<4x8xf32> to vector<4x8x1xf32>
    %302 = tpu.reciprocal %301 {approx = true} : vector<4x8x1xf32> -> vector<4x8x1xf32>
    %303 = vector.broadcast %302 : vector<4x8x1xf32> to vector<4x8x8xf32>
    %304 = arith.mulf %299, %303 : vector<4x8x8xf32>
    %305 = arith.truncf %304 : vector<4x8x8xf32> to vector<4x8x8xbf16>
    "tpu.trace_start"() <{level = 10 : i32, message = "bnm,bmd->bnd"}> : () -> ()
    %cst_113 = arith.constant dense<0.000000e+00> : vector<4x8x8xf32>
    %306 = tpu.matmul %305, %291, %cst_113 {dimension_numbers = #tpu.dot_dimension_numbers<[2], [1], [1], [2], [0, 0, 0, 1, 1, 2], [0], [0]>} : vector<4x8x8xbf16>, vector<4x8x8xbf16>, vector<4x8x8xf32> -> vector<4x8x8xf32>
    "tpu.trace_stop"() : () -> ()
    %307 = vector.shape_cast %306 : vector<4x8x8xf32> to vector<32x8xf32>
    %308 = vector.extract_strided_slice %224 {offsets = [0, 24], sizes = [32, 8], strides = [1, 1]} : vector<32x32xf32> to vector<32x8xf32>
    %309 = vector.shape_cast %308 : vector<32x8xf32> to vector<4x8x8xf32>
    %310 = arith.truncf %309 : vector<4x8x8xf32> to vector<4x8x8xbf16>
    %311 = vector.extract_strided_slice %228 {offsets = [0, 24], sizes = [32, 8], strides = [1, 1]} : vector<32x32xf32> to vector<32x8xf32>
    %312 = vector.shape_cast %311 : vector<32x8xf32> to vector<4x8x8xf32>
    %313 = arith.truncf %312 : vector<4x8x8xf32> to vector<4x8x8xbf16>
    %314 = vector.extract_strided_slice %232 {offsets = [0, 24], sizes = [32, 8], strides = [1, 1]} : vector<32x32xf32> to vector<32x8xf32>
    %315 = vector.shape_cast %314 : vector<32x8xf32> to vector<4x8x8xf32>
    %316 = arith.truncf %315 : vector<4x8x8xf32> to vector<4x8x8xbf16>
    "tpu.trace_start"() <{level = 10 : i32, message = "bnd,bmd->bnm"}> : () -> ()
    %cst_114 = arith.constant dense<0.000000e+00> : vector<4x8x8xf32>
    %317 = tpu.matmul %310, %313, %cst_114 {dimension_numbers = #tpu.dot_dimension_numbers<[2], [2], [1], [1], [0, 0, 0, 1, 1, 1], [0], [0]>} : vector<4x8x8xbf16>, vector<4x8x8xbf16>, vector<4x8x8xf32> -> vector<4x8x8xf32>
    "tpu.trace_stop"() : () -> ()
    %cst_115 = arith.constant 0.353553385 : f32
    %318 = vector.broadcast %cst_115 : f32 to vector<4x8x8xf32>
    %319 = arith.mulf %317, %318 : vector<4x8x8xf32>
    %cst_116 = arith.constant dense<0xFF800000> : vector<4x8xf32>
    %320 = vector.multi_reduction <maximumf>, %319, %cst_116 [2] : vector<4x8x8xf32> to vector<4x8xf32>
    %321 = vector.shape_cast %320 : vector<4x8xf32> to vector<4x8x1xf32>
    %322 = vector.broadcast %321 : vector<4x8x1xf32> to vector<4x8x8xf32>
    %323 = arith.subf %319, %322 : vector<4x8x8xf32>
    %324 = math.exp %323 : vector<4x8x8xf32>
    %cst_117 = arith.constant dense<0.000000e+00> : vector<4x8xf32>
    %325 = vector.multi_reduction <add>, %324, %cst_117 [2] : vector<4x8x8xf32> to vector<4x8xf32>
    %326 = vector.shape_cast %325 : vector<4x8xf32> to vector<4x8x1xf32>
    %327 = tpu.reciprocal %326 {approx = true} : vector<4x8x1xf32> -> vector<4x8x1xf32>
    %328 = vector.broadcast %327 : vector<4x8x1xf32> to vector<4x8x8xf32>
    %329 = arith.mulf %324, %328 : vector<4x8x8xf32>
    %330 = arith.truncf %329 : vector<4x8x8xf32> to vector<4x8x8xbf16>
    "tpu.trace_start"() <{level = 10 : i32, message = "bnm,bmd->bnd"}> : () -> ()
    %cst_118 = arith.constant dense<0.000000e+00> : vector<4x8x8xf32>
    %331 = tpu.matmul %330, %316, %cst_118 {dimension_numbers = #tpu.dot_dimension_numbers<[2], [1], [1], [2], [0, 0, 0, 1, 1, 2], [0], [0]>} : vector<4x8x8xbf16>, vector<4x8x8xbf16>, vector<4x8x8xf32> -> vector<4x8x8xf32>
    "tpu.trace_stop"() : () -> ()
    %332 = vector.shape_cast %331 : vector<4x8x8xf32> to vector<32x8xf32>
    %333 = tpu.concatenate %257, %282, %307, %332 in 1 : vector<32x8xf32>, vector<32x8xf32>, vector<32x8xf32>, vector<32x8xf32> -> vector<32x32xf32>
    %c1_119 = arith.constant 1 : index
    %c0_120 = arith.constant 0 : index
    %c0_121 = arith.constant 0 : index
    %334 = vector.load %arg7[%c1_119, %c0_120, %c0_121] : memref<2x32x32xbf16, #tpu.memory_space<vmem>>, vector<1x32x32xbf16>
    %335 = vector.shape_cast %334 : vector<1x32x32xbf16> to vector<32x32xbf16>
    %336 = arith.truncf %333 : vector<32x32xf32> to vector<32x32xbf16>
    %cst_122 = arith.constant dense<0.000000e+00> : vector<32x32xf32>
    %337 = tpu.matmul %336, %335, %cst_122 {dimension_numbers = #tpu.dot_dimension_numbers<[1], [0], [0], [1], [0, 0, 1, 1], [], []>} : vector<32x32xbf16>, vector<32x32xbf16>, vector<32x32xf32> -> vector<32x32xf32>
    %338 = arith.addf %194, %337 : vector<32x32xf32>
    %c1_123 = arith.constant 1 : index
    %c0_124 = arith.constant 0 : index
    %c0_125 = arith.constant 0 : index
    %339 = vector.load %arg8[%c1_123, %c0_124, %c0_125] : memref<2x1x32xf32, #tpu.memory_space<vmem>>, vector<1x1x32xf32>
    %340 = vector.shape_cast %339 : vector<1x1x32xf32> to vector<1x32xf32>
    %341 = vector.broadcast %340 : vector<1x32xf32> to vector<32x32xf32>
    %342 = arith.addf %338, %341 : vector<32x32xf32>
    %c1_126 = arith.constant 1 : index
    %c0_127 = arith.constant 0 : index
    %c0_128 = arith.constant 0 : index
    %343 = vector.load %arg9[%c1_126, %c0_127, %c0_128] : memref<2x1x32xf32, #tpu.memory_space<vmem>>, vector<1x1x32xf32>
    %344 = vector.shape_cast %343 : vector<1x1x32xf32> to vector<1x32xf32>
    %c1_129 = arith.constant 1 : index
    %c0_130 = arith.constant 0 : index
    %c0_131 = arith.constant 0 : index
    %345 = vector.load %arg10[%c1_129, %c0_130, %c0_131] : memref<2x1x32xf32, #tpu.memory_space<vmem>>, vector<1x1x32xf32>
    %346 = vector.shape_cast %345 : vector<1x1x32xf32> to vector<1x32xf32>
    %cst_132 = arith.constant dense<0.000000e+00> : vector<32xf32>
    %347 = vector.multi_reduction <add>, %342, %cst_132 [1] : vector<32x32xf32> to vector<32xf32>
    %348 = vector.shape_cast %347 : vector<32xf32> to vector<32x1xf32>
    %cst_133 = arith.constant 3.200000e+01 : f32
    %349 = vector.broadcast %cst_133 : f32 to vector<32x1xf32>
    %350 = arith.divf %348, %349 : vector<32x1xf32>
    %351 = vector.broadcast %350 : vector<32x1xf32> to vector<32x32xf32>
    %352 = arith.subf %342, %351 : vector<32x32xf32>
    %353 = arith.mulf %352, %352 : vector<32x32xf32>
    %cst_134 = arith.constant dense<0.000000e+00> : vector<32xf32>
    %354 = vector.multi_reduction <add>, %353, %cst_134 [1] : vector<32x32xf32> to vector<32xf32>
    %355 = vector.shape_cast %354 : vector<32xf32> to vector<32x1xf32>
    %cst_135 = arith.constant 3.200000e+01 : f32
    %356 = vector.broadcast %cst_135 : f32 to vector<32x1xf32>
    %357 = arith.divf %355, %356 : vector<32x1xf32>
    %358 = vector.broadcast %350 : vector<32x1xf32> to vector<32x32xf32>
    %359 = arith.subf %342, %358 : vector<32x32xf32>
    %cst_136 = arith.constant 9.99999974E-6 : f32
    %360 = vector.broadcast %cst_136 : f32 to vector<32x1xf32>
    %361 = arith.addf %357, %360 : vector<32x1xf32>
    %362 = math.rsqrt %361 : vector<32x1xf32>
    %363 = vector.broadcast %362 : vector<32x1xf32> to vector<32x32xf32>
    %364 = arith.mulf %359, %363 : vector<32x32xf32>
    %365 = vector.broadcast %344 : vector<1x32xf32> to vector<32x32xf32>
    %366 = arith.mulf %364, %365 : vector<32x32xf32>
    %367 = vector.broadcast %346 : vector<1x32xf32> to vector<32x32xf32>
    %368 = arith.addf %366, %367 : vector<32x32xf32>
    %c1_137 = arith.constant 1 : index
    %c0_138 = arith.constant 0 : index
    %c0_139 = arith.constant 0 : index
    %369 = vector.load %arg11[%c1_137, %c0_138, %c0_139] : memref<2x32x64xbf16, #tpu.memory_space<vmem>>, vector<1x32x64xbf16>
    %370 = vector.shape_cast %369 : vector<1x32x64xbf16> to vector<32x64xbf16>
    %371 = arith.truncf %368 : vector<32x32xf32> to vector<32x32xbf16>
    %cst_140 = arith.constant dense<0.000000e+00> : vector<32x64xf32>
    %372 = tpu.matmul %371, %370, %cst_140 {dimension_numbers = #tpu.dot_dimension_numbers<[1], [0], [0], [1], [0, 0, 1, 1], [], []>} : vector<32x32xbf16>, vector<32x64xbf16>, vector<32x64xf32> -> vector<32x64xf32>
    %c1_141 = arith.constant 1 : index
    %c0_142 = arith.constant 0 : index
    %c0_143 = arith.constant 0 : index
    %373 = vector.load %arg12[%c1_141, %c0_142, %c0_143] : memref<2x1x64xf32, #tpu.memory_space<vmem>>, vector<1x1x64xf32>
    %374 = vector.shape_cast %373 : vector<1x1x64xf32> to vector<1x64xf32>
    %375 = vector.broadcast %374 : vector<1x64xf32> to vector<32x64xf32>
    %376 = arith.addf %372, %375 : vector<32x64xf32>
    %cst_144 = arith.constant 0.000000e+00 : f32
    %377 = vector.broadcast %cst_144 : f32 to vector<32x64xf32>
    %378 = arith.maximumf %376, %377 : vector<32x64xf32>
    %c1_145 = arith.constant 1 : index
    %c0_146 = arith.constant 0 : index
    %c0_147 = arith.constant 0 : index
    %379 = vector.load %arg13[%c1_145, %c0_146, %c0_147] : memref<2x64x32xbf16, #tpu.memory_space<vmem>>, vector<1x64x32xbf16>
    %380 = vector.shape_cast %379 : vector<1x64x32xbf16> to vector<64x32xbf16>
    %381 = arith.truncf %378 : vector<32x64xf32> to vector<32x64xbf16>
    %cst_148 = arith.constant dense<0.000000e+00> : vector<32x32xf32>
    %382 = tpu.matmul %381, %380, %cst_148 {dimension_numbers = #tpu.dot_dimension_numbers<[1], [0], [0], [1], [0, 0, 1, 1], [], []>} : vector<32x64xbf16>, vector<64x32xbf16>, vector<32x32xf32> -> vector<32x32xf32>
    %383 = arith.addf %342, %382 : vector<32x32xf32>
    %c1_149 = arith.constant 1 : index
    %c0_150 = arith.constant 0 : index
    %c0_151 = arith.constant 0 : index
    %384 = vector.load %arg14[%c1_149, %c0_150, %c0_151] : memref<2x1x32xf32, #tpu.memory_space<vmem>>, vector<1x1x32xf32>
    %385 = vector.shape_cast %384 : vector<1x1x32xf32> to vector<1x32xf32>
    %386 = vector.broadcast %385 : vector<1x32xf32> to vector<32x32xf32>
    %387 = arith.addf %383, %386 : vector<32x32xf32>
    %388 = vector.shape_cast %387 : vector<32x32xf32> to vector<4x8x32xf32>
    %c0_152 = arith.constant 0 : index
    %c0_153 = arith.constant 0 : index
    %c0_154 = arith.constant 0 : index
    %389 = vector.load %arg15[%c0_152, %c0_153, %c0_154] : memref<4x8x32xf32, #tpu.memory_space<vmem>>, vector<4x8x32xf32>
    tpu.vector_store %arg15[%c0_152, %c0_153, %c0_154], %388 {strides = array<i32>} : memref<4x8x32xf32, #tpu.memory_space<vmem>>, vector<4x8x32xf32>,
    return
  }
  func.func @transform_0(%arg0: i32) -> (i32, i32, i32) {
    %c0_i32 = arith.constant 0 : i32
    %c0_i32_0 = arith.constant 0 : i32
    %c0_i32_1 = arith.constant 0 : i32
    return %arg0, %c0_i32, %c0_i32_0 : i32, i32, i32
  }
  func.func @transform_1(%arg0: i32) -> (i32, i32, i32) {
    %c0_i32 = arith.constant 0 : i32
    %c0_i32_0 = arith.constant 0 : i32
    %c0_i32_1 = arith.constant 0 : i32
    %c0_i32_2 = arith.constant 0 : i32
    return %c0_i32, %c0_i32_0, %c0_i32_1 : i32, i32, i32
  }
  func.func @transform_2(%arg0: i32) -> (i32, i32, i32) {
    %c0_i32 = arith.constant 0 : i32
    %c0_i32_0 = arith.constant 0 : i32
    %c0_i32_1 = arith.constant 0 : i32
    %c0_i32_2 = arith.constant 0 : i32
    return %c0_i32, %c0_i32_0, %c0_i32_1 : i32, i32, i32
  }
  func.func @transform_3(%arg0: i32) -> (i32, i32, i32) {
    %c0_i32 = arith.constant 0 : i32
    %c0_i32_0 = arith.constant 0 : i32
    %c0_i32_1 = arith.constant 0 : i32
    %c0_i32_2 = arith.constant 0 : i32
    return %c0_i32, %c0_i32_0, %c0_i32_1 : i32, i32, i32
  }
  func.func @transform_4(%arg0: i32) -> (i32, i32, i32) {
    %c0_i32 = arith.constant 0 : i32
    %c0_i32_0 = arith.constant 0 : i32
    %c0_i32_1 = arith.constant 0 : i32
    %c0_i32_2 = arith.constant 0 : i32
    return %c0_i32, %c0_i32_0, %c0_i32_1 : i32, i32, i32
  }
  func.func @transform_5(%arg0: i32) -> (i32, i32, i32) {
    %c0_i32 = arith.constant 0 : i32
    %c0_i32_0 = arith.constant 0 : i32
    %c0_i32_1 = arith.constant 0 : i32
    %c0_i32_2 = arith.constant 0 : i32
    return %c0_i32, %c0_i32_0, %c0_i32_1 : i32, i32, i32
  }
  func.func @transform_6(%arg0: i32) -> (i32, i32, i32) {
    %c0_i32 = arith.constant 0 : i32
    %c0_i32_0 = arith.constant 0 : i32
    %c0_i32_1 = arith.constant 0 : i32
    %c0_i32_2 = arith.constant 0 : i32
    return %c0_i32, %c0_i32_0, %c0_i32_1 : i32, i32, i32
  }
  func.func @transform_7(%arg0: i32) -> (i32, i32, i32) {
    %c0_i32 = arith.constant 0 : i32
    %c0_i32_0 = arith.constant 0 : i32
    %c0_i32_1 = arith.constant 0 : i32
    %c0_i32_2 = arith.constant 0 : i32
    return %c0_i32, %c0_i32_0, %c0_i32_1 : i32, i32, i32
  }
  func.func @transform_8(%arg0: i32) -> (i32, i32, i32) {
    %c0_i32 = arith.constant 0 : i32
    %c0_i32_0 = arith.constant 0 : i32
    %c0_i32_1 = arith.constant 0 : i32
    %c0_i32_2 = arith.constant 0 : i32
    return %c0_i32, %c0_i32_0, %c0_i32_1 : i32, i32, i32
  }
  func.func @transform_9(%arg0: i32) -> (i32, i32, i32) {
    %c0_i32 = arith.constant 0 : i32
    %c0_i32_0 = arith.constant 0 : i32
    %c0_i32_1 = arith.constant 0 : i32
    %c0_i32_2 = arith.constant 0 : i32
    return %c0_i32, %c0_i32_0, %c0_i32_1 : i32, i32, i32
  }
  func.func @transform_10(%arg0: i32) -> (i32, i32, i32) {
    %c0_i32 = arith.constant 0 : i32
    %c0_i32_0 = arith.constant 0 : i32
    %c0_i32_1 = arith.constant 0 : i32
    %c0_i32_2 = arith.constant 0 : i32
    return %c0_i32, %c0_i32_0, %c0_i32_1 : i32, i32, i32
  }
  func.func @transform_11(%arg0: i32) -> (i32, i32, i32) {
    %c0_i32 = arith.constant 0 : i32
    %c0_i32_0 = arith.constant 0 : i32
    %c0_i32_1 = arith.constant 0 : i32
    %c0_i32_2 = arith.constant 0 : i32
    return %c0_i32, %c0_i32_0, %c0_i32_1 : i32, i32, i32
  }
  func.func @transform_12(%arg0: i32) -> (i32, i32, i32) {
    %c0_i32 = arith.constant 0 : i32
    %c0_i32_0 = arith.constant 0 : i32
    %c0_i32_1 = arith.constant 0 : i32
    %c0_i32_2 = arith.constant 0 : i32
    return %c0_i32, %c0_i32_0, %c0_i32_1 : i32, i32, i32
  }
  func.func @transform_13(%arg0: i32) -> (i32, i32, i32) {
    %c0_i32 = arith.constant 0 : i32
    %c0_i32_0 = arith.constant 0 : i32
    %c0_i32_1 = arith.constant 0 : i32
    %c0_i32_2 = arith.constant 0 : i32
    return %c0_i32, %c0_i32_0, %c0_i32_1 : i32, i32, i32
  }
  func.func @transform_14(%arg0: i32) -> (i32, i32, i32) {
    %c0_i32 = arith.constant 0 : i32
    %c0_i32_0 = arith.constant 0 : i32
    %c0_i32_1 = arith.constant 0 : i32
    return %arg0, %c0_i32, %c0_i32_0 : i32, i32, i32
  }
}

</mosaic_0001>

<bundles_post_ra>
// kernel: tpu_custom_call.1
= control target key start
LH: loop header
LB: loop body
LE: loop exit
PB: predicated region body
PF: predicated region fallthrough
CT: control target
= control target key end

     0   :  { %s9080_s0 = inlined_call_operand.hbm [shape: f32[8,8,32], index: 0, kind: input, shape index: {}]   ;;  %s9081_s1 = inlined_call_operand.hbm [shape: f32[2,1,32], index: 1, kind: input, shape index: {}]   ;;  %s9082_s2 = inlined_call_operand.hbm [shape: f32[2,1,32], index: 2, kind: input, shape index: {}]   ;;  %s9083_s3 = inlined_call_operand.hbm [shape: bf16[2,32,32], index: 3, kind: input, shape index: {}]   ;;  %s9084_s4 = inlined_call_operand.hbm [shape: bf16[2,32,32], index: 4, kind: input, shape index: {}]   ;;  %s9085_s5 = inlined_call_operand.hbm [shape: bf16[2,32,32], index: 5, kind: input, shape index: {}]   ;;  %s9086_s6 = inlined_call_operand.hbm [shape: bf16[2,32,32], index: 6, kind: input, shape index: {}]   ;;  %s9087_s7 = inlined_call_operand.hbm [shape: f32[2,1,32], index: 7, kind: input, shape index: {}]   ;;  %s9088_s8 = inlined_call_operand.hbm [shape: f32[2,1,32], index: 8, kind: input, shape index: {}]   ;;  %s9089_s9 = inlined_call_operand.hbm [shape: f32[2,1,32], index: 9, kind: input, shape index: {}]   ;;  %s9090_s10 = inlined_call_operand.hbm [shape: bf16[2,32,64], index: 10, kind: input, shape index: {}]   ;;  %s9091_s11 = inlined_call_operand.hbm [shape: f32[2,1,64], index: 11, kind: input, shape index: {}]   ;;  %s9092_s12 = inlined_call_operand.hbm [shape: bf16[2,64,32], index: 12, kind: input, shape index: {}]   ;;  %s9093_s13 = inlined_call_operand.hbm [shape: f32[2,1,32], index: 13, kind: input, shape index: {}]   ;;  %s9094_s14 = inlined_call_operand.hbm [shape: f32[8,8,32], index: 14, kind: output, shape index: {}]  }
   0x1   :  { %9113 = sst [smem:[#allocation39_spill]] %s9080_s0 }
   0x2   :  { %9114 = sst [smem:[#allocation40_spill]] %s9081_s1 }
   0x3   :  { %9115 = sst [smem:[#allocation41_spill]] %s9082_s2 }
   0x4   :  { %9116 = sst [smem:[#allocation42_spill]] %s9083_s3 }
   0x5   :  { %9117 = sst [smem:[#allocation43_spill]] %s9094_s14 }
   0x6   :  { %19 = vsyncpa [#allocation3], 0 }
   0x7   :  { %21 = vsyncpa [#allocation3 + $0x1], 0 }
   0x8   :  { %22 = vsyncpa [#allocation6], 0 }
   0x9   :  { %23 = vsyncpa [#allocation9], 0 }
   0xa   :  { %24 = vsyncpa [#allocation12], 0 }
   0xb   :  { %25 = vsyncpa [#allocation15], 0 }
   0xc   :  { %26 = vsyncpa [#allocation18], 0 }
   0xd   :  { %27 = vsyncpa [#allocation21], 0 }
   0xe   :  { %28 = vsyncpa [#allocation24], 0 }
   0xf   :  { %29 = vsyncpa [#allocation4], 0 }
  0x10   :  { %31 = vsyncpa [#allocation4 + $0x1], 0  ;;  %s7722_s29 = smov 0   ;;  %s7724_s30 = smov 0  }
  0x11   :  { %s7726_s15 = smov 0   ;;  %s7728_s16 = smov 0  }
  0x12 LB: > { %9118 = sst [smem:[#allocation35_spill]] %s7603_s29  ;;  %s7617_s17 = smov [#allocation5]   ;;  %s7615_s16 = sphi %s7728_s16, %s9167_s16   ;;  %s7611_s15 = sphi %s7726_s15, %s9166_s15   ;;  %s7607_s30 = sphi %s7724_s30, %s9165_s30   ;;  %s7603_s29 = sphi %s7722_s29, %s9164_s29  }
  0x13   : > { %9119 = sst [smem:[#allocation36_spill]] %s7607_s30  ;;  %s379_s18 = sshll.u32 %s7617_s17, 4  ;;  %s7748_s18 = int_to_ptr.vmem [resolvable:$true] %s379_s18 }
  0x14   : > { %s7743_s19 = sadd.s32 4294967295, %s7615_s16   ;;  %p5844_p0 = scmp.ge.s32.totalorder %s7615_s16, 1 }
  0x15   : > { %9120 = sst [smem:[#allocation37_spill]] %s7743_s19  ;;  %p9104_p1 = scmp.eq.s32.totalorder %s7743_s19, 0 }
  0x16   : > { %p367_p2 = scmp.lt.s32.totalorder %s7615_s16, 3  ;;  %s7618_s21 = smov [#allocation8]  }
  0x17   : > { %s405_s22 = sshll.u32 %s7618_s21, 4  ;;  %s7619_s24 = smov [#allocation11]   ;;  %s7763_s22 = int_to_ptr.vmem [resolvable:$true] %s405_s22 }
  0x18   : > { %p7750_p3 = pnand %p5844_p0, %p367_p2  ;;  %s7765_s25 = sshll.u32 %s7619_s24, 4  ;;  %s432_s25 = int_to_ptr.vmem [resolvable:$true] %s7765_s25 }
  0x19   : > { %s9124_s1 = sld [smem:[#allocation40_spill]] }
  0x1a   : > { %s9121_s20 = scalar_select %p7750_p3, 1, 0 }
  0x1b   : > { %p6739_p5 = pneg %p7750_p3 }
  0x1c   : > { %9122 = sst [smem:[#allocation38_spill]] %s9121_s20 }
  0x1d   : > { %p7759_p6 = pnand %p6739_p5, %p9104_p1 }
  0x1f   : > { %s7127_s28 = scalar_lea.hbm %s9124_s1, 32  ;;  %p7775_p8 = pneg %p7759_p6 }
  0x20   : > { %p7128_p7 = scmp.ne.s32.totalorder %s9124_s1, %s7127_s28  ;;  %p7134_p11 = scmp.lt.u32.totalorder %s7127_s28, %s9124_s1 }
  0x22   : > { %p7130_p9 = pnand %p7775_p8, %p7128_p7 }
  0x24   : > { %p7131_p10 = pneg %p7130_p9 }
  0x26   : > { %p7136_p12 = pnand %p7134_p11, %p7131_p10 }
  0x28   : > { %7139 = shalt.err (!%p7136_p12)
}
  0x29   : > { %s7140_s14 = scalar_lea.vmem %s7748_s18, 32  ;;  %p7148_p5 = scmp.lt.s32.totalorder %s7748_s18, %s7748_s18 }
  0x2a   : > { %p7141_p13 = scmp.ne.s32.totalorder %s7748_s18, %s7140_s14  ;;  %p7149_p4 = scmp.lt.s32.totalorder %s7140_s14, %s7140_s14 }
  0x2c   : > { %p7143_p0 = pnand %p7141_p13, %p7775_p8  ;;  %p7150_p7 = por %p7149_p4, %p7148_p5 }
  0x2e   : > { %p7144_p2 = pneg %p7143_p0 }
  0x30   : > { %p7151_p9 = pnand %p7150_p7, %p7144_p2 }
  0x32   : > { %7154 = shalt.err (!%p7151_p9)
}
  0x33   : > { %s9102_s26 = smov 16   ;;  %s9106_s20 = smov 1  }
  0x34   : > { %6742 = dma.hbm_to_vmem [thread:$0]  (!%p7759_p6), %s9124_s1, 32, %s7748_s18, [#allocation6], %s9102_s26, %s9102_s26, %s9106_s20  }
  0x35   : > { %s9126_s3 = sld [smem:[#allocation42_spill]] }
  0x3b   : > { %s7155_s14 = scalar_lea.hbm %s9126_s3, 512 }
  0x3c   : > { %p7156_p4 = scmp.ne.s32.totalorder %s9126_s3, %s7155_s14  ;;  %p7162_p12 = scmp.lt.u32.totalorder %s7155_s14, %s9126_s3 }
  0x3e   : > { %p7158_p10 = pnand %p7156_p4, %p7775_p8 }
  0x40   : > { %p7159_p11 = pneg %p7158_p10 }
  0x42   : > { %p7164_p13 = pnand %p7162_p12, %p7159_p11 }
  0x44   : > { %7167 = shalt.err (!%p7164_p13)
}
  0x45   : > { %s7168_s18 = scalar_lea.vmem %s7763_s22, 512  ;;  %p7176_p7 = scmp.lt.s32.totalorder %s7763_s22, %s7763_s22 }
  0x46   : > { %p7169_p0 = scmp.ne.s32.totalorder %s7763_s22, %s7168_s18  ;;  %p7177_p9 = scmp.lt.s32.totalorder %s7168_s18, %s7168_s18 }
  0x48   : > { %p7171_p2 = pnand %p7169_p0, %p7775_p8  ;;  %p7178_p4 = por %p7177_p9, %p7176_p7 }
  0x4a   : > { %p7172_p5 = pneg %p7171_p2 }
  0x4c   : > { %p7179_p10 = pnand %p7178_p4, %p7172_p5 }
  0x4e   : > { %7182 = shalt.err (!%p7179_p10)
}
  0x4f   : > { %s9108_s0 = smov 64   ;;  %s9110_s29 = smov 4  }
  0x50   : > { %6748 = dma.hbm_to_vmem [thread:$0]  (!%p7759_p6), %s9126_s3, 512, %s7763_s22, [#allocation9], %s9108_s0, %s9108_s0, %s9110_s29  }
  0x51   : > { %s7183_s17 = scalar_lea.hbm %s9085_s5, 512 }
  0x52   : > { %p7184_p11 = scmp.ne.s32.totalorder %s9085_s5, %s7183_s17  ;;  %p7190_p0 = scmp.lt.u32.totalorder %s7183_s17, %s9085_s5 }
  0x54   : > { %p7186_p12 = pnand %p7184_p11, %p7775_p8 }
  0x56   : > { %p7187_p13 = pneg %p7186_p12 }
  0x58   : > { %p7192_p2 = pnand %p7190_p0, %p7187_p13 }
  0x5a   : > { %7195 = shalt.err (!%p7192_p2)
}
  0x5b   : > { %s7196_s30 = scalar_lea.vmem %s432_s25, 512  ;;  %p7204_p4 = scmp.lt.s32.totalorder %s432_s25, %s432_s25 }
  0x5c   : > { %p7197_p5 = scmp.ne.s32.totalorder %s432_s25, %s7196_s30  ;;  %p7205_p10 = scmp.lt.s32.totalorder %s7196_s30, %s7196_s30 }
  0x5e   : > { %p7199_p7 = pnand %p7197_p5, %p7775_p8  ;;  %p7206_p1 = por %p7205_p10, %p7204_p4 }
  0x60   : > { %p7200_p9 = pneg %p7199_p7 }
  0x62   : > { %p7207_p3 = pnand %p7206_p1, %p7200_p9 }
  0x64   : > { %7210 = shalt.err (!%p7207_p3)
}
  0x65   : > { %6754 = dma.hbm_to_vmem [thread:$0]  (!%p7759_p6), %s9085_s5, 512, %s432_s25, [#allocation12], %s9108_s0, %s9108_s0, %s9110_s29  }
  0x66   : > { %s7624_s19 = smov [#allocation14]   ;;  %s7625_s28 = smov [#allocation17]  }
  0x67   : > { %s457_s27 = sshll.u32 %s7624_s19, 4  ;;  %s483_s17 = sshll.u32 %s7625_s28, 4  ;;  %s458_s27 = int_to_ptr.vmem [resolvable:$true] %s457_s27  ;;  %s484_s17 = int_to_ptr.vmem [resolvable:$true] %s483_s17 }
  0x68   : > { %s7211_s18 = scalar_lea.hbm %s9087_s7, 32 }
  0x69   : > { %p7212_p1 = scmp.ne.s32.totalorder %s9087_s7, %s7211_s18  ;;  %p7218_p12 = scmp.lt.u32.totalorder %s7211_s18, %s9087_s7 }
  0x6b   : > { %p7214_p3 = pnand %p7212_p1, %p7775_p8 }
  0x6d   : > { %p7215_p11 = pneg %p7214_p3 }
  0x6f   : > { %p7220_p13 = pnand %p7218_p12, %p7215_p11 }
  0x71   : > { %7223 = shalt.err (!%p7220_p13)
}
  0x72   : > { %s7224_s25 = scalar_lea.vmem %s458_s27, 32  ;;  %p7232_p7 = scmp.lt.s32.totalorder %s458_s27, %s458_s27 }
  0x73   : > { %p7225_p0 = scmp.ne.s32.totalorder %s458_s27, %s7224_s25  ;;  %p7233_p9 = scmp.lt.s32.totalorder %s7224_s25, %s7224_s25 }
  0x75   : > { %p7227_p2 = pnand %p7225_p0, %p7775_p8  ;;  %p7234_p4 = por %p7233_p9, %p7232_p7 }
  0x77   : > { %p7228_p5 = pneg %p7227_p2 }
  0x79   : > { %p7235_p10 = pnand %p7234_p4, %p7228_p5 }
  0x7b   : > { %7238 = shalt.err (!%p7235_p10)
}
  0x7c   : > { %s9127_s20 = smov 1   ;;  %s9128_s26 = smov 16  }
  0x7d   : > { %6760 = dma.hbm_to_vmem [thread:$0]  (!%p7759_p6), %s9087_s7, 32, %s458_s27, [#allocation15], %s9128_s26, %s9128_s26, %s9127_s20  }
  0x7e   : > { %s7239_s14 = scalar_lea.hbm %s9089_s9, 32 }
  0x7f   : > { %p7240_p1 = scmp.ne.s32.totalorder %s9089_s9, %s7239_s14  ;;  %p7246_p12 = scmp.lt.u32.totalorder %s7239_s14, %s9089_s9 }
  0x81   : > { %p7242_p3 = pnand %p7240_p1, %p7775_p8 }
  0x83   : > { %p7243_p11 = pneg %p7242_p3 }
  0x85   : > { %p7248_p13 = pnand %p7246_p12, %p7243_p11 }
  0x87   : > { %7251 = shalt.err (!%p7248_p13)
}
  0x88   : > { %s7252_s1 = scalar_lea.vmem %s484_s17, 32  ;;  %p7260_p7 = scmp.lt.s32.totalorder %s484_s17, %s484_s17 }
  0x89   : > { %p7253_p0 = scmp.ne.s32.totalorder %s484_s17, %s7252_s1  ;;  %p7261_p9 = scmp.lt.s32.totalorder %s7252_s1, %s7252_s1 }
  0x8b   : > { %p7255_p2 = pnand %p7253_p0, %p7775_p8  ;;  %p7262_p4 = por %p7261_p9, %p7260_p7 }
  0x8d   : > { %p7256_p5 = pneg %p7255_p2 }
  0x8f   : > { %p7263_p10 = pnand %p7262_p4, %p7256_p5 }
  0x91   : > { %7266 = shalt.err (!%p7263_p10)
}
  0x92   : > { %6766 = dma.hbm_to_vmem [thread:$0]  (!%p7759_p6), %s9089_s9, 32, %s484_s17, [#allocation18], %s9128_s26, %s9128_s26, %s9127_s20  }
  0x93   : > { %s7626_s28 = smov [#allocation20]   ;;  %s7627_s14 = smov [#allocation7]  }
  0x94   : > { %s509_s24 = sshll.u32 %s7626_s28, 4  ;;  %s392_s18 = sshll.u32 %s7627_s14, 4  ;;  %s510_s24 = int_to_ptr.vmem [resolvable:$true] %s509_s24  ;;  %s393_s18 = int_to_ptr.vmem [resolvable:$true] %s392_s18 }
  0x95   : > { %s7267_s25 = scalar_lea.hbm %s9091_s11, 32 }
  0x96   : > { %p7268_p1 = scmp.ne.s32.totalorder %s9091_s11, %s7267_s25  ;;  %p7274_p12 = scmp.lt.u32.totalorder %s7267_s25, %s9091_s11 }
  0x98   : > { %p7270_p3 = pnand %p7268_p1, %p7775_p8 }
  0x9a   : > { %p7271_p11 = pneg %p7270_p3 }
  0x9c   : > { %p7276_p13 = pnand %p7274_p12, %p7271_p11 }
  0x9e   : > { %7279 = shalt.err (!%p7276_p13)
}
  0x9f   : > { %s7280_s17 = scalar_lea.vmem %s510_s24, 32  ;;  %p7288_p7 = scmp.lt.s32.totalorder %s510_s24, %s510_s24 }
  0xa0   : > { %p7281_p0 = scmp.ne.s32.totalorder %s510_s24, %s7280_s17  ;;  %p7289_p9 = scmp.lt.s32.totalorder %s7280_s17, %s7280_s17 }
  0xa2   : > { %p7283_p2 = pnand %p7281_p0, %p7775_p8  ;;  %p7290_p4 = por %p7289_p9, %p7288_p7 }
  0xa4   : > { %p7284_p5 = pneg %p7283_p2 }
  0xa6   : > { %p7291_p10 = pnand %p7290_p4, %p7284_p5 }
  0xa8   : > { %7294 = shalt.err (!%p7291_p10)
}
  0xa9   : > { %6772 = dma.hbm_to_vmem [thread:$0]  (!%p7759_p6), %s9091_s11, 32, %s510_s24, [#allocation21], %s9128_s26, %s9128_s26, %s9127_s20  }
  0xaa   : > { %s9129_s2 = sld [smem:[#allocation41_spill]] }
  0xb0   : > { %s7295_s14 = scalar_lea.hbm %s9129_s2, 32 }
  0xb1   : > { %p7296_p1 = scmp.ne.s32.totalorder %s9129_s2, %s7295_s14  ;;  %p7302_p12 = scmp.lt.u32.totalorder %s7295_s14, %s9129_s2 }
  0xb3   : > { %p7298_p3 = pnand %p7296_p1, %p7775_p8 }
  0xb5   : > { %p7299_p11 = pneg %p7298_p3 }
  0xb7   : > { %p7304_p13 = pnand %p7302_p12, %p7299_p11 }
  0xb9   : > { %7307 = shalt.err (!%p7304_p13)
}
  0xba   : > { %s7308_s27 = scalar_lea.vmem %s393_s18, 32  ;;  %p7316_p7 = scmp.lt.s32.totalorder %s393_s18, %s393_s18 }
  0xbb   : > { %p7309_p0 = scmp.ne.s32.totalorder %s393_s18, %s7308_s27  ;;  %p7317_p9 = scmp.lt.s32.totalorder %s7308_s27, %s7308_s27 }
  0xbd   : > { %p7311_p2 = pnand %p7309_p0, %p7775_p8  ;;  %p7318_p4 = por %p7317_p9, %p7316_p7 }
  0xbf   : > { %p7312_p5 = pneg %p7311_p2 }
  0xc1   : > { %p7319_p10 = pnand %p7318_p4, %p7312_p5 }
  0xc3   : > { %7322 = shalt.err (!%p7319_p10)
}
  0xc4   : > { %6745 = dma.hbm_to_vmem [thread:$0]  (!%p7759_p6), %s9129_s2, 32, %s393_s18, [#allocation6], %s9128_s26, %s9128_s26, %s9127_s20  }
  0xc5   : > { %s7628_s0 = smov [#allocation10]   ;;  %s7629_s19 = smov [#allocation13]  }
  0xc6   : > { %s418_s29 = sshll.u32 %s7628_s0, 4  ;;  %s444_s28 = sshll.u32 %s7629_s19, 4  ;;  %s419_s29 = int_to_ptr.vmem [resolvable:$true] %s418_s29  ;;  %s445_s28 = int_to_ptr.vmem [resolvable:$true] %s444_s28 }
  0xc7   : > { %s7323_s22 = scalar_lea.hbm %s9084_s4, 512 }
  0xc8   : > { %p7324_p1 = scmp.ne.s32.totalorder %s9084_s4, %s7323_s22  ;;  %p7330_p12 = scmp.lt.u32.totalorder %s7323_s22, %s9084_s4 }
  0xca   : > { %p7326_p3 = pnand %p7324_p1, %p7775_p8 }
  0xcc   : > { %p7327_p11 = pneg %p7326_p3 }
  0xce   : > { %p7332_p13 = pnand %p7330_p12, %p7327_p11 }
  0xd0   : > { %7335 = shalt.err (!%p7332_p13)
}
  0xd1   : > { %s7336_s18 = scalar_lea.vmem %s419_s29, 512  ;;  %p7344_p7 = scmp.lt.s32.totalorder %s419_s29, %s419_s29 }
  0xd2   : > { %p7337_p0 = scmp.ne.s32.totalorder %s419_s29, %s7336_s18  ;;  %p7345_p9 = scmp.lt.s32.totalorder %s7336_s18, %s7336_s18 }
  0xd4   : > { %p7339_p2 = pnand %p7337_p0, %p7775_p8  ;;  %p7346_p4 = por %p7345_p9, %p7344_p7 }
  0xd6   : > { %p7340_p5 = pneg %p7339_p2 }
  0xd8   : > { %p7347_p10 = pnand %p7346_p4, %p7340_p5 }
  0xda   : > { %7350 = shalt.err (!%p7347_p10)
}
  0xdb   : > { %s9130_s17 = smov 4   ;;  %s9131_s0 = smov 64  }
  0xdc   : > { %6751 = dma.hbm_to_vmem [thread:$0]  (!%p7759_p6), %s9084_s4, 512, %s419_s29, [#allocation9], %s9131_s0, %s9131_s0, %s9130_s17  }
  0xdd   : > { %s7351_s25 = scalar_lea.hbm %s9086_s6, 512 }
  0xde   : > { %p7352_p1 = scmp.ne.s32.totalorder %s9086_s6, %s7351_s25  ;;  %p7358_p12 = scmp.lt.u32.totalorder %s7351_s25, %s9086_s6 }
  0xe0   : > { %p7354_p3 = pnand %p7352_p1, %p7775_p8 }
  0xe2   : > { %p7355_p11 = pneg %p7354_p3 }
  0xe4   : > { %p7360_p13 = pnand %p7358_p12, %p7355_p11 }
  0xe6   : > { %7363 = shalt.err (!%p7360_p13)
}
  0xe7   : > { %s7364_s19 = scalar_lea.vmem %s445_s28, 512  ;;  %p7372_p7 = scmp.lt.s32.totalorder %s445_s28, %s445_s28 }
  0xe8   : > { %p7365_p0 = scmp.ne.s32.totalorder %s445_s28, %s7364_s19  ;;  %p7373_p9 = scmp.lt.s32.totalorder %s7364_s19, %s7364_s19 }
  0xea   : > { %p7367_p2 = pnand %p7365_p0, %p7775_p8  ;;  %p7374_p4 = por %p7373_p9, %p7372_p7 }
  0xec   : > { %p7368_p5 = pneg %p7367_p2 }
  0xee   : > { %p7375_p10 = pnand %p7374_p4, %p7368_p5 }
  0xf0   : > { %7378 = shalt.err (!%p7375_p10)
}
  0xf1   : > { %6757 = dma.hbm_to_vmem [thread:$0]  (!%p7759_p6), %s9086_s6, 512, %s445_s28, [#allocation12], %s9131_s0, %s9131_s0, %s9130_s17  }
  0xf2   : > { %s7630_s30 = smov [#allocation16]   ;;  %s7631_s25 = smov [#allocation19]  }
  0xf3   : > { %s470_s22 = sshll.u32 %s7630_s30, 4  ;;  %s496_s1 = sshll.u32 %s7631_s25, 4  ;;  %s471_s22 = int_to_ptr.vmem [resolvable:$true] %s470_s22  ;;  %s497_s1 = int_to_ptr.vmem [resolvable:$true] %s496_s1 }
  0xf4   : > { %s7379_s18 = scalar_lea.hbm %s9088_s8, 32 }
  0xf5   : > { %p7380_p1 = scmp.ne.s32.totalorder %s9088_s8, %s7379_s18  ;;  %p7386_p12 = scmp.lt.u32.totalorder %s7379_s18, %s9088_s8 }
  0xf7   : > { %p7382_p3 = pnand %p7380_p1, %p7775_p8 }
  0xf9   : > { %p7383_p11 = pneg %p7382_p3 }
  0xfb   : > { %p7388_p13 = pnand %p7386_p12, %p7383_p11 }
  0xfd   : > { %7391 = shalt.err (!%p7388_p13)
}
  0xfe   : > { %s7392_s28 = scalar_lea.vmem %s471_s22, 32  ;;  %p7400_p7 = scmp.lt.s32.totalorder %s471_s22, %s471_s22 }
  0xff   : > { %p7393_p0 = scmp.ne.s32.totalorder %s471_s22, %s7392_s28  ;;  %p7401_p9 = scmp.lt.s32.totalorder %s7392_s28, %s7392_s28 }
 0x101   : > { %p7395_p2 = pnand %p7393_p0, %p7775_p8  ;;  %p7402_p4 = por %p7401_p9, %p7400_p7 }
 0x103   : > { %p7396_p5 = pneg %p7395_p2 }
 0x105   : > { %p7403_p10 = pnand %p7402_p4, %p7396_p5 }
 0x107   : > { %7406 = shalt.err (!%p7403_p10)
}
 0x108   : > { %6763 = dma.hbm_to_vmem [thread:$0]  (!%p7759_p6), %s9088_s8, 32, %s471_s22, [#allocation15], %s9128_s26, %s9128_s26, %s9127_s20  }
 0x109   : > { %s7407_s25 = scalar_lea.hbm %s9090_s10, 512 }
 0x10a   : > { %p7408_p1 = scmp.ne.s32.totalorder %s9090_s10, %s7407_s25  ;;  %p7414_p12 = scmp.lt.u32.totalorder %s7407_s25, %s9090_s10 }
 0x10c   : > { %p7410_p3 = pnand %p7408_p1, %p7775_p8 }
 0x10e   : > { %p7411_p11 = pneg %p7410_p3 }
 0x110   : > { %p7416_p13 = pnand %p7414_p12, %p7411_p11 }
 0x112   : > { %7419 = shalt.err (!%p7416_p13)
}
 0x113   : > { %s7420_s29 = scalar_lea.vmem %s497_s1, 512  ;;  %p7428_p7 = scmp.lt.s32.totalorder %s497_s1, %s497_s1 }
 0x114   : > { %p7421_p0 = scmp.ne.s32.totalorder %s497_s1, %s7420_s29  ;;  %p7429_p9 = scmp.lt.s32.totalorder %s7420_s29, %s7420_s29 }
 0x116   : > { %p7423_p2 = pnand %p7421_p0, %p7775_p8  ;;  %p7430_p4 = por %p7429_p9, %p7428_p7 }
 0x118   : > { %p7424_p5 = pneg %p7423_p2 }
 0x11a   : > { %p7431_p10 = pnand %p7430_p4, %p7424_p5 }
 0x11c   : > { %7434 = shalt.err (!%p7431_p10)
}
 0x11d   : > { %6769 = dma.hbm_to_vmem [thread:$0]  (!%p7759_p6), %s9090_s10, 512, %s497_s1, [#allocation18], %s9131_s0, %s9131_s0, %s9130_s17  }
 0x11e   : > { %s7632_s2 = smov [#allocation22]   ;;  %s7633_s14 = smov [#allocation23]  }
 0x11f   : > { %s522_s3 = sshll.u32 %s7632_s2, 4  ;;  %s535_s30 = sshll.u32 %s7633_s14, 4  ;;  %s523_s3 = int_to_ptr.vmem [resolvable:$true] %s522_s3  ;;  %s536_s30 = int_to_ptr.vmem [resolvable:$true] %s535_s30 }
 0x120   : > { %s7435_s24 = scalar_lea.hbm %s9092_s12, 1024 }
 0x121   : > { %p7436_p1 = scmp.ne.s32.totalorder %s9092_s12, %s7435_s24  ;;  %p7442_p12 = scmp.lt.u32.totalorder %s7435_s24, %s9092_s12 }
 0x123   : > { %p7438_p3 = pnand %p7436_p1, %p7775_p8 }
 0x125   : > { %p7439_p11 = pneg %p7438_p3 }
 0x127   : > { %p7444_p13 = pnand %p7442_p12, %p7439_p11 }
 0x129   : > { %7447 = shalt.err (!%p7444_p13)
}
 0x12a   : > { %s7448_s1 = scalar_lea.vmem %s523_s3, 1024  ;;  %p7456_p7 = scmp.lt.s32.totalorder %s523_s3, %s523_s3 }
 0x12b   : > { %p7449_p0 = scmp.ne.s32.totalorder %s523_s3, %s7448_s1  ;;  %p7457_p9 = scmp.lt.s32.totalorder %s7448_s1, %s7448_s1 }
 0x12d   : > { %p7451_p2 = pnand %p7449_p0, %p7775_p8  ;;  %p7458_p4 = por %p7457_p9, %p7456_p7 }
 0x12f   : > { %p7452_p5 = pneg %p7451_p2 }
 0x131   : > { %p7459_p10 = pnand %p7458_p4, %p7452_p5 }
 0x133   : > { %7462 = shalt.err (!%p7459_p10)
}
 0x134   : > { %6775 = dma.hbm_to_vmem [thread:$0]  (!%p7759_p6), %s9092_s12, 1024, %s523_s3, [#allocation21], %s9131_s0, %s9131_s0, %s9130_s17  }
 0x135   : > { %s7463_s27 = scalar_lea.hbm %s9093_s13, 32 }
 0x136   : > { %p7464_p1 = scmp.ne.s32.totalorder %s9093_s13, %s7463_s27  ;;  %p7470_p12 = scmp.lt.u32.totalorder %s7463_s27, %s9093_s13 }
 0x138   : > { %p7466_p3 = pnand %p7464_p1, %p7775_p8 }
 0x13a   : > { %p7467_p11 = pneg %p7466_p3 }
 0x13c   : > { %p7472_p13 = pnand %p7470_p12, %p7467_p11 }
 0x13e   : > { %7475 = shalt.err (!%p7472_p13)
}
 0x13f   : > { %s7476_s22 = scalar_lea.vmem %s536_s30, 32  ;;  %p7484_p7 = scmp.lt.s32.totalorder %s536_s30, %s536_s30 }
 0x140   : > { %p7477_p0 = scmp.ne.s32.totalorder %s536_s30, %s7476_s22  ;;  %p7485_p9 = scmp.lt.s32.totalorder %s7476_s22, %s7476_s22 }
 0x142   : > { %p7479_p2 = pnand %p7477_p0, %p7775_p8  ;;  %p7486_p4 = por %p7485_p9, %p7484_p7 }
 0x144   : > { %p7480_p5 = pneg %p7479_p2 }
 0x146   : > { %p7487_p10 = pnand %p7486_p4, %p7480_p5 }
 0x148   : > { %7490 = shalt.err (!%p7487_p10)
}
 0x149   : > { %s9132_s21 = sld [smem:[#allocation36_spill]]  ;;  %s9133_s3 = sld [smem:[#allocation35_spill]] }
 0x14a   : > { %s9134_s1 = sld [smem:[#allocation37_spill]]  ;;  %s5843_s23 = sadd.s32 4294967294, %s7615_s16  }
 0x14b   : > { %6778 = dma.hbm_to_vmem [thread:$0]  (!%p7759_p6), %s9093_s13, 32, %s536_s30, [#allocation24], %s9128_s26, %s9128_s26, %s9127_s20  }
 0x14c   : > { %s8059_s28 = sadd.s32 1, %s7615_s16   ;;  %s44_s2 = sadd.s32 1, %s7611_s15 }
 0x14d   : > { %s41_s14 = ssub.s32 %s7615_s16, %s8059_s28  ;;  %p52_p3 = scmp.eq.s32.totalorder %s7615_s16, 0 }
 0x14e   : > { %p42_p1 = scmp.eq.s32.totalorder %s41_s14, 0  ;;  %p360_p5 = scmp.eq.s32.totalorder %s5843_s23, 1 }
 0x14f   : > { %p51_p8 = scmp.ne.s32.totalorder %s7611_s15, %s9132_s21  ;;  %p57_p11 = scmp.ne.s32.totalorder %s9132_s21, %s9133_s3 }
 0x150   : > { %p354_p12 = scmp.eq.s32.totalorder %s9134_s1, 1  ;;  %p9135_p0 = scmp.eq.s32.totalorder %s9134_s1, 0 }
 0x151   : > { %s8071_s25 = scalar_select %p42_p1, %s7611_s15, %s44_s2  }
 0x152   : > { %p53_p13 = por %p52_p3, %p51_p8  ;;  %p8075_p2 = por %p9135_p0, %p57_p11 }
 0x153   : > { %p8079_p6 = por %p354_p12, %p51_p8  ;;  %p6800_p7 = scmp.lt.s32.totalorder %s7615_s16, 2 }
 0x154   : > { %s549_s26 = sand.u32 1, %s7611_s15   ;;  %p8085_p9 = por %p360_p5, %p57_p11 }
 0x155   : > { %s9137_s20 = scalar_select %p8079_p6, 1, 0 }
 0x156   : > { %s9138_s30 = scalar_select %p8085_p9, 1, 0 }
 0x157   : > { %s5859_s24 = sshll.u32 %s549_s26, 5  ;;  %s6013_s18 = sshll.u32 %s7615_s16, 9 }
 0x158   : > { %s9139_s22 = sld [smem:[#allocation39_spill]]  ;;  %s553_s0 = scalar_lea.vmem [#allocation2], %s5859_s24 }
 0x159   : > { %s560_s21 = sshll.u32 %s553_s0, 4  ;;  %p8095_p4 = pnand %p6800_p7, %p53_p13  ;;  %s8099_s21 = int_to_ptr.vmem [resolvable:$true] %s560_s21 }
 0x15a   : > { %s8101_s1 = scalar_lea.sflag [#allocation3], %s549_s26 }
 0x15b   : > { %p7493_p8 = pneg %p8095_p4 }
 0x15e   : > { %s8093_s17 = scalar_lea.hbm %s9139_s22, %s6013_s18  ;;  %s7496_s24 = scalar_lea.hbm %s9139_s22, 1024 }
 0x15f   : > { %s7491_s23 = scalar_lea.hbm %s8093_s17, 512  ;;  %p7497_p11 = scmp.lt.u32.totalorder %s8093_s17, %s9139_s22 }
 0x160   : > { %p7492_p10 = scmp.ne.s32.totalorder %s8093_s17, %s7491_s23  ;;  %p7498_p12 = scmp.lt.u32.totalorder %s7496_s24, %s7491_s23 }
 0x161   : > { %p7500_p0 = scmp.lt.u32.totalorder %s7491_s23, %s8093_s17 }
 0x162   : > { %p7494_p1 = pnand %p7493_p8, %p7492_p10  ;;  %p7499_p13 = por %p7498_p12, %p7497_p11 }
 0x164   : > { %p7495_p3 = pneg %p7494_p1  ;;  %p7501_p5 = por %p7500_p0, %p7499_p13 }
 0x166   : > { %p7502_p7 = pnand %p7501_p5, %p7495_p3 }
 0x168   : > { %7505 = shalt.err (!%p7502_p7)
}
 0x169   : > { %s7506_s26 = scalar_lea.vmem %s8099_s21, 512  ;;  %s7634_s29 = smov [#allocation2]  }
 0x16a   : > { %p7507_p10 = scmp.ne.s32.totalorder %s8099_s21, %s7506_s26  ;;  %s7511_s0 = sshll.u32 %s7634_s29, 4  ;;  %s7512_s0 = int_to_ptr.vmem [resolvable:$false] %s7511_s0 }
 0x16b   : > { %s7513_s2 = scalar_lea.vmem %s7512_s0, 1024  ;;  %p7514_p6 = scmp.lt.s32.totalorder %s8099_s21, %s7512_s0 }
 0x16c   : > { %p7509_p1 = pnand %p7507_p10, %p7493_p8  ;;  %p7515_p11 = scmp.lt.s32.totalorder %s7513_s2, %s7506_s26 }
 0x16e   : > { %p7510_p9 = pneg %p7509_p1  ;;  %p7516_p12 = por %p7515_p11, %p7514_p6 }
 0x170   : > { %p7517_p13 = pnand %p7516_p12, %p7510_p9 }
 0x172   : > { %7520 = shalt.err (!%p7517_p13)
}
 0x173   : > { %s7635_s23 = smov 128   ;;  %s7636_s14 = smov 8  }
 0x174   : > { %6782 = dma.hbm_to_vmem [thread:$0]  (!%p8095_p4), %s8093_s17, 512, %s8099_s21, %s8101_s1, %s7635_s23, %s7635_s23, %s7636_s14  }
 0x175   : > { %s9141_s24 = sld [smem:[#allocation38_spill]] }
 0x17b   : > { %p9142_p8 = scmp.ne.s32.totalorder %s9141_s24, 0 }
 0x17c   : > { %s9143_s18 = sld [smem:[#allocation36_spill]] (!%p9142_p8) }
 0x17d   : > { %572 = sbr.rel (%p9142_p8) target bundleno = 8900 (0x22c4), region = 76 }
 0x182   : > { %s8132_s19 = sand.u32 (!%p9142_p8), 1, %s9143_s18  }
 0x183   : > { %s5863_s26 = sshll.u32 (!%p9142_p8), %s8132_s19, 5  ;;  %s575_s29 = scalar_lea.sflag (!%p9142_p8), [#allocation3], %s8132_s19 }
 0x184   : > { %s8138_s0 = scalar_lea.vmem [#allocation2], %s5863_s26 }
 0x185   : > { %7566 = dma.done.wait (%p8075_p2), %s575_s29, 512  }
 0x186   : > { %7568 = vsyncadd (%p8075_p2), %s575_s29, 4294966784  ;;  %s9144_s17 = sld [smem:[#allocation37_spill]] }
 0x18c   : > { %p9145_p6 = scmp.eq.s32.totalorder %s9144_s17, 0 }
 0x18e   : > { %7570 = dma.done.wait (%p9145_p6), [#allocation6], 64   ;;  %p9146_p9 = pmov %p9145_p6 }
 0x18f   : > { %p9147_p4 = pmov %p9145_p6 }
 0x190   : > { %7572 = vsyncadd (%p9146_p9), [#allocation6], 4294967232 }
 0x191   : > { %7574 = dma.done.wait (%p9147_p4), [#allocation9], 1024   ;;  %p9148_p3 = pmov %p9147_p4 }
 0x193   : > { %7576 = vsyncadd (%p9148_p3), [#allocation9], 4294966272  ;;  %p9149_p0 = pmov %p9148_p3 }
 0x195   : > { %7578 = dma.done.wait (%p9149_p0), [#allocation12], 1024   ;;  %p9150_p5 = pmov %p9149_p0 }
 0x196   : > { %p9151_p2 = pmov %p9149_p0 }
 0x197   : > { %7580 = vsyncadd (%p9150_p5), [#allocation12], 4294966272 }
 0x198   : > { %7582 = dma.done.wait (%p9151_p2), [#allocation15], 64   ;;  %p9152_p7 = pmov %p9149_p0 }
 0x199   : > { %p9153_p10 = pmov %p9149_p0 }
 0x19a   : > { %7584 = vsyncadd (%p9152_p7), [#allocation15], 4294967232 }
 0x19b   : > { %7586 = dma.done.wait (%p9153_p10), [#allocation18], 544   ;;  %p9154_p1 = pmov %p9149_p0 }
 0x19c   : > { %p9155_p11 = pmov %p9149_p0 }
 0x19d   : > { %7588 = vsyncadd (%p9154_p1), [#allocation18], 4294966752 }
 0x19e   : > { %7590 = dma.done.wait (%p9155_p11), [#allocation21], 1056   ;;  %p9156_p12 = pmov %p9149_p0 }
 0x19f   : > { %p9157_p13 = pmov %p9149_p0 }
 0x1a0   : > { %7592 = vsyncadd (%p9156_p12), [#allocation21], 4294966240 }
 0x1a1   : > { %7594 = dma.done.wait (%p9157_p13), [#allocation24], 32   ;;  %p9158_p8 = pmov %p9149_p0 }
 0x1a2   : > { %vm684_vm0 = vcmask 261120   ;;  %v678_v0 = vld [vmem:[%s8138_s0] sm:$0xff]  ;;  %v680_v1 = vld [vmem:[%s8138_s0 + $0x10] sm:$0xff]  ;;  %v679_v2 = vld [vmem:[%s8138_s0 + $0x8] sm:$0xff]  ;;  %vm7638_vm1 = vmmov 0   ;;  %vm973_vm2 = vcmask 64512  }
 0x1a3   : > { %7596 = vsyncadd (%p9158_p8), [#allocation24], 4294967264  ;;  %v685_v3 = vsel %vm684_vm0, %v678_v0, 0.0  ;;  %v691_v4 = vsel %vm684_vm0, %v680_v1, 0.0  ;;  %v681_v5 = vld [vmem:[%s8138_s0 + $0x18] sm:$0xff]  ;;  %v688_v6 = vsel %vm684_vm0, %v679_v2, 0.0 }
 0x1a4   : > { %686 = vadd.xlane.f32.xlu0 %v685_v3  ;;  %692 = vadd.xlane.f32.xlu1 %v691_v4  ;;  %v694_v7 = vsel %vm684_vm0, %v681_v5, 0.0  ;;  %v6935_v28 = vld [vmem:[#allocation8] sm:$0xff]   ;;  %v6937_v30 = vld [vmem:[#allocation8 + $0x8] sm:$0xff]   ;;  %v5878_v47 = vld [vmem:[#allocation5] ss:$0 sm:$0xff]  ;;  %vm1213_vm3 = vcmask 1043456  }
 0x1a5   : > { %v6936_v29 = vld [vmem:[#allocation11] sm:$0xff]   ;;  %6195 = vmatprep.subr.bf16.mxu1 %v6935_v28  ;;  %v6938_v31 = vld [vmem:[#allocation11 + $0x8] sm:$0xff]   ;;  %v5879_v52 = vld [vmem:[#allocation7] ss:$0 sm:$0xff]  ;;  %s7639_s27 = smov 120   ;;  %s7640_s21 = smov 112  }
 0x1a6   : > { %6211 = vmatprep.subr.bf16.mxu0 %v6936_v29  ;;  %6196 = vmatpush3.bf16.msra.mxu1 %v6935_v28  ;;  %v6939_v32 = vld [vmem:[#allocation10] sm:$0xff]   ;;  %s7641_s3 = smov 104   ;;  %s7642_s1 = smov 8   ;;  %vm2791_vm4 = vcmask 130048   ;;  %vm2796_vm5 = vcmask 195584   ;;  %vm3081_vm6 = vcmask 523264  }
 0x1a7   : > { %6212 = vmatpush3.bf16.msra.mxu0 %v6936_v29  ;;  %6197 = vmatprep.subr.bf16.mxu1 %v6937_v30  ;;  %s7643_s2 = smov 16   ;;  %s7644_s23 = smov 24  }
 0x1a8   : > { %689 = vadd.xlane.f32.xlu0 %v688_v6  ;;  %695 = vadd.xlane.f32.xlu1 %v694_v7  ;;  %s674_s14 = scalar_lea.vmem [#allocation25], %s5863_s26  ;;  %s6014_s18 = sshll.u32 %s9144_s17, 9 }
 0x1a9   : > { %6213 = vmatprep.subr.bf16.mxu0 %v6938_v31  ;;  %s5646_s24 = sshll.u32 %s674_s14, 4  ;;  %s5633_s17 = scalar_lea.sflag [#allocation4], %s8132_s19  ;;  %s9027_s24 = int_to_ptr.vmem [resolvable:$true] %s5646_s24 }
 0x1aa   : > { %6198 = vmatpush3.bf16.msra.mxu1 %v6937_v30  ;;  %p9160_p9 = scmp.ne.s32.totalorder %s9137_s20, 0 }
 0x1ab   : > { %6214 = vmatpush3.bf16.msra.mxu0 %v6938_v31  ;;  %6203 = vmatprep.subr.bf16.mxu1 %v6939_v32 }
 0x231   : > { %v687_v8 = vpop.xlane.xlu0 %686  ;;  %v693_v9 = vpop.xlane.xlu1 %692 }
 0x232   : > { %v698_v10 = vmul.f32 0.03125, %v687_v8  ;;  %v700_v11 = vmul.f32 0.03125, %v693_v9 }
 0x234   : > { %v702_v12 = vsub.f32 %v678_v0, %v698_v10  ;;  %v704_v13 = vsub.f32 %v680_v1, %v700_v11  ;;  %v6940_v1 = vld [vmem:[#allocation10 + $0x8] sm:$0xff]  }
 0x235   : > { %v690_v14 = vpop.xlane.xlu0 %689  ;;  %v696_v15 = vpop.xlane.xlu1 %695 }
 0x236   : > { %v699_v16 = vmul.f32 0.03125, %v690_v14  ;;  %v701_v17 = vmul.f32 0.03125, %v696_v15  ;;  %v706_v18 = vmul.f32 %v702_v12, %v702_v12  ;;  %v708_v19 = vmul.f32 %v704_v13, %v704_v13 }
 0x238   : > { %v703_v20 = vsub.f32 %v679_v2, %v699_v16  ;;  %v705_v21 = vsub.f32 %v681_v5, %v701_v17  ;;  %v710_v22 = vsel %vm684_vm0, %v706_v18, 0.0  ;;  %v716_v23 = vsel %vm684_vm0, %v708_v19, 0.0 }
 0x239   : > { %711 = vadd.xlane.f32.xlu0 %v710_v22  ;;  %v7637_v2 = vmov 0.0  }
 0x23a   : > { %v707_v24 = vmul.f32 %v703_v20, %v703_v20  ;;  %v709_v25 = vmul.f32 %v705_v21, %v705_v21  ;;  %6225 = vmatprep.subr.bf16.mxu0 %v7637_v2 }
 0x23c   : > { %v713_v26 = vsel %vm684_vm0, %v707_v24, 0.0  ;;  %v719_v27 = vsel %vm684_vm0, %v709_v25, 0.0 }
 0x23d   : > { %717 = vadd.xlane.f32.xlu0 %v716_v23  ;;  %714 = vadd.xlane.f32.xlu1 %v713_v26 }
 0x241   : > { %720 = vadd.xlane.f32.xlu1 %v719_v27 }
 0x2c6   : > { %v712_v33 = vpop.xlane.xlu0 %711 }
 0x2c7   : > { %v722_v34 = vmul.f32 0.03125, %v712_v33 }
 0x2c9   : > { %v726_v35 = vadd.f32 1e-05, %v722_v34 }
 0x2ca   : > { %v715_v36 = vpop.xlane.xlu1 %714  ;;  %v718_v37 = vpop.xlane.xlu0 %717 }
 0x2cb   : > { %6963 = vrsqrt.f32 %v726_v35  ;;  %v723_v38 = vmul.f32 0.03125, %v715_v36  ;;  %v724_v39 = vmul.f32 0.03125, %v718_v37 }
 0x2cd   : > { %v727_v40 = vadd.f32 1e-05, %v723_v38  ;;  %v728_v41 = vadd.f32 1e-05, %v724_v39 }
 0x2ce   : > { %v721_v42 = vpop.xlane.xlu1 %720 }
 0x2cf   : > { %6965 = vrsqrt.f32 %v727_v40  ;;  %v725_v43 = vmul.f32 0.03125, %v721_v42 }
 0x2d0   : > { %6967 = vrsqrt.f32 %v728_v41 }
 0x2d1   : > { %v729_v44 = vadd.f32 1e-05, %v725_v43 }
 0x2d3   : > { %6969 = vrsqrt.f32 %v729_v44 }
 0x2d5   : > { %v6964_v45 = vpop.eup %6963 }
 0x2d6   : > { %v734_v46 = vmul.f32 %v6964_v45, %v702_v12 }
 0x2d8   : > { %v744_v51 = vmul.f32 %v5878_v47, %v734_v46 }
 0x2d9   : > { %v6966_v48 = vpop.eup %6965 }
 0x2da   : > { %v6968_v49 = vpop.eup %6967  ;;  %v735_v50 = vmul.f32 %v6966_v48, %v703_v20  ;;  %v754_v56 = vadd.f32 %v5879_v52, %v744_v51 }
 0x2db   : > { %v736_v53 = vmul.f32 %v6968_v49, %v704_v13 }
 0x2dc   : > { %v745_v54 = vmul.f32 %v5878_v47, %v735_v50 }
 0x2dd   : > { %v6970_v55 = vpop.eup %6969  ;;  %v746_v59 = vmul.f32 %v5878_v47, %v736_v53 }
 0x2de   : > { %v755_v57 = vadd.f32 %v5879_v52, %v745_v54  ;;  %v737_v58 = vmul.f32 %v6970_v55, %v705_v21 }
 0x2df   : > { %v756_v62 = vadd.f32 %v5879_v52, %v746_v59 }
 0x2e0   : > { %v762_v60 = vpack.c.bf16 %v755_v57, %v754_v56  ;;  %v747_v61 = vmul.f32 %v5878_v47, %v737_v58 }
 0x2e2   : > { %6199 = vmatprep.mubr.msk.bf16.mxu1 %vm684_vm0, %v762_v60  ;;  %6215 = vmatprep.mubr.msk.bf16.mxu0 %vm684_vm0, %v762_v60  ;;  %v757_v63 = vadd.f32 %v5879_v52, %v747_v61 }
 0x2e4   : > { %v763_v0 = vpack.c.bf16 %v757_v63, %v756_v62 }
 0x2e6   : > { %6200 = vmatmul.mubr.msk.bf16.vlgmr.msra.gmra.mrb[0].mxu1 %vm684_vm0, %v763_v0  ;;  %6216 = vmatmul.mubr.msk.bf16.vlgmr.msra.gmra.mrb[0].mxu0 %vm684_vm0, %v763_v0 }
 0x2e7   : > { %6204 = vmatpush3.bf16.msra.mxu1 %v6939_v32  ;;  %6207 = vmatprep.mubr.msk.bf16.mxu1 %vm684_vm0, %v762_v60 }
 0x2e8   : > { %6205 = vmatprep.subr.bf16.mxu1 %v6940_v1  ;;  %6227 = vmatprep.mubr.msk.bf16.mxu0 %vm7638_vm1, %v7637_v2 }
 0x2eb   : > { %6206 = vmatpush3.bf16.msra.mxu1 %v6940_v1 }
 0x2ec   : > { %6219 = vmatprep.subr.bf16.mxu1 %v7637_v2 }
 0x2ee   : > { %6208 = vmatmul.mubr.msk.bf16.vlgmr.msra.gmra.mrb[4].mxu1 %vm684_vm0, %v763_v0 }
 0x2ef   : > { %6221 = vmatprep.mubr.msk.bf16.mxu1 %vm7638_vm1, %v7637_v2 }
 0x3b9   : > { %v6201_v3 = vpop.f32.mrb[0].mxu1  ;;  %v8196_v4 = vpop.f32.mrb[0].mxu0 }
 0x3ba   : > { %v816_v5 = vpop.f32.mrb[1].mxu1  ;;  %v946_v6 = vpop.f32.mrb[1].mxu0  ;;  %v8234_v26 = vpack.c.bf16 %v6201_v3, %v6201_v3 }
 0x3bb   : > { %v6202_v7 = vpop.f32.mrb[2].mxu1  ;;  %v8198_v8 = vpop.f32.mrb[2].mxu0  ;;  %v8212_v20 = vpack.c.bf16 %v816_v5, %v816_v5  ;;  %v8231_v25 = vpack.c.bf16 %v946_v6, %v946_v6 }
 0x3bc   : > { %v819_v9 = vpop.f32.mrb[3].mxu1  ;;  %v949_v10 = vpop.f32.mrb[3].mxu0  ;;  %v8238_v28 = vpack.c.bf16 %v6202_v7, %v6202_v7 }
 0x3bd   : > { %v8216_v22 = vpack.c.bf16 %v819_v9, %v819_v9  ;;  %v8236_v27 = vpack.c.bf16 %v949_v10, %v949_v10  ;;  %v1215_v29 = vsel %vm1213_vm3, %v8231_v25, 0 }
 0x3bf   : > { %v1261_v30 = vsel %vm1213_vm3, %v8236_v27, 0 }
 0x3c1   : > { %v6209_v11 = vpop.f32.mrb[4].mxu1 }
 0x3c2   : > { %v881_v12 = vpop.f32.mrb[5].mxu1  ;;  %v8209_v19 = vpack.c.bf16 %v6209_v11, %v6209_v11 }
 0x3c3   : > { %v8200_v13 = vpack.c.bf16 %v881_v12, %v881_v12  ;;  %v6210_v14 = vpop.f32.mrb[6].mxu1 }
 0x3c4   : > { %v884_v15 = vpop.f32.mrb[7].mxu1  ;;  %v8214_v21 = vpack.c.bf16 %v6210_v14, %v6210_v14  ;;  %v1070_v23 = vsel %vm973_vm2, %v8209_v19, 0 }
 0x3c5   : > { %v8202_v16 = vpack.c.bf16 %v884_v15, %v884_v15  ;;  %v978_v17 = vsel %vm973_vm2, %v8200_v13, 0 }
 0x3c6   : > { %6220 = vmatpush3.bf16.xpose.msra.mxu1 %v978_v17  ;;  %v1116_v24 = vsel %vm973_vm2, %v8214_v21, 0 }
 0x3c7   : > { %v1024_v18 = vsel %vm973_vm2, %v8202_v16, 0  ;;  %6231 = vmatprep.subr.bf16.mxu1 %v7637_v2 }
 0x3c8   : > { %6226 = vmatpush3.bf16.xpose.msra.mxu0 %v1024_v18 }
 0x3c9   : > { %6237 = vmatprep.subr.bf16.mxu0 %v7637_v2 }
 0x3cd   : > { %6222 = vmatmul.mubr.msk.bf16.vlgmr.msra.gmra.mrb[8].mxu1 %vm973_vm2, %v8212_v20 }
 0x3ce   : > { %6232 = vmatpush3.bf16.xpose.msra.mxu1 %v1070_v23  ;;  %6233 = vmatprep.mubr.msk.bf16.mxu1 %vm7638_vm1, %v7637_v2 }
 0x3cf   : > { %6228 = vmatmul.mubr.msk.bf16.vlgmr.msra.gmra.mrb[4].mxu0 %vm973_vm2, %v8216_v22  ;;  %6243 = vmatprep.subr.bf16.mxu1 %v7637_v2 }
 0x3d0   : > { %6238 = vmatpush3.bf16.xpose.msra.mxu0 %v1116_v24  ;;  %6239 = vmatprep.mubr.msk.bf16.mxu0 %vm7638_vm1, %v7637_v2  ;;  %v8280_v24 = vpack.c.bf16 %v8196_v4, %v8196_v4 }
 0x3d1   : > { %6249 = vmatprep.subr.bf16.mxu0 %v7637_v2 }
 0x3d5   : > { %6234 = vmatmul.mubr.msk.bf16.vlgmr.msra.gmra.mrb[12].mxu1 %vm973_vm2, %v8234_v26 }
 0x3d6   : > { %6244 = vmatpush3.bf16.msra.mxu1 %v1215_v29  ;;  %6245 = vmatprep.mubr.msk.bf16.mxu1 %vm7638_vm1, %v7637_v2 }
 0x3d7   : > { %6240 = vmatmul.mubr.msk.bf16.vlgmr.msra.gmra.mrb[8].mxu0 %vm973_vm2, %v8238_v28  ;;  %6255 = vmatprep.subr.bf16.mxu1 %v7637_v2 }
 0x3d8   : > { %6250 = vmatpush3.bf16.msra.mxu0 %v1261_v30  ;;  %6251 = vmatprep.mubr.msk.bf16.mxu0 %vm7638_vm1, %v7637_v2 }
 0x3d9   : > { %6261 = vmatprep.subr.bf16.mxu0 %v7637_v2 }
 0x4a0   : > { %v1014_v31 = vpop.f32.mrb[8].mxu1 }
 0x4a1   : > { %v1158_v32 = vmul.f32 0.35355338, %v1014_v31  ;;  %v6223_v33 = vpop.f32.mrb[9].mxu1  ;;  %v8284_v31 = vpack.c.bf16 %v8198_v8, %v8198_v8 }
 0x4a2   : > { %v1017_v34 = vpop.f32.mrb[10].mxu1  ;;  %v1060_v35 = vpop.f32.mrb[4].mxu0 }
 0x4a3   : > { %v1159_v36 = vmul.f32 0.35355338, %v1060_v35  ;;  %v6224_v37 = vpop.f32.mrb[11].mxu1  ;;  %v6229_v38 = vpop.f32.mrb[5].mxu0  ;;  %v1162_v39 = vsel %vm973_vm2, %v1158_v32, -inf  ;;  %v1307_v34 = vsel %vm1213_vm3, %v8280_v24, 0 }
 0x4a4   : > { %1163 = vmax.xlane.f32.xlu0 %v1162_v39  ;;  %v1063_v40 = vpop.f32.mrb[6].mxu0  ;;  %v1353_v4 = vsel %vm1213_vm3, %v8284_v31, 0 }
 0x4a5   : > { %v6230_v41 = vpop.f32.mrb[7].mxu0  ;;  %v1165_v42 = vsel %vm973_vm2, %v1159_v36, -inf }
 0x4a6   : > { %1166 = vmax.xlane.f32.xlu1 %v1165_v42 }
 0x4a8   : > { %v1106_v43 = vpop.f32.mrb[12].mxu1 }
 0x4a9   : > { %v1160_v44 = vmul.f32 0.35355338, %v1106_v43  ;;  %v6235_v45 = vpop.f32.mrb[13].mxu1 }
 0x4aa   : > { %v1109_v46 = vpop.f32.mrb[14].mxu1  ;;  %v1152_v47 = vpop.f32.mrb[8].mxu0 }
 0x4ab   : > { %v1161_v48 = vmul.f32 0.35355338, %v1152_v47  ;;  %v6236_v49 = vpop.f32.mrb[15].mxu1  ;;  %v6241_v50 = vpop.f32.mrb[9].mxu0  ;;  %v1168_v51 = vsel %vm973_vm2, %v1160_v44, -inf }
 0x4ac   : > { %1169 = vmax.xlane.f32.xlu0 %v1168_v51  ;;  %v1155_v52 = vpop.f32.mrb[10].mxu0 }
 0x4ad   : > { %v6242_v53 = vpop.f32.mrb[11].mxu0  ;;  %v1171_v54 = vsel %vm973_vm2, %v1161_v48, -inf }
 0x4ae   : > { %1172 = vmax.xlane.f32.xlu1 %v1171_v54 }
 0x531   : > { %v1164_v55 = vpop.xlane.xlu0 %1163 }
 0x532   : > { %v1174_v56 = vsub.f32 %v1158_v32, %v1164_v55 }
 0x533   : > { %v1167_v57 = vpop.xlane.xlu1 %1166 }
 0x534   : > { %v1178_v58 = vmul.f32 1.442695, %v1174_v56  ;;  %v1175_v59 = vsub.f32 %v1159_v36, %v1167_v57 }
 0x536   : > { %6971 = vpow2.f32 %v1178_v58  ;;  %v1180_v60 = vmul.f32 1.442695, %v1175_v59 }
 0x538   : > { %6973 = vpow2.f32 %v1180_v60 }
 0x539   : > { %v1170_v61 = vpop.xlane.xlu0 %1169 }
 0x53a   : > { %v1176_v62 = vsub.f32 %v1160_v44, %v1170_v61 }
 0x53b   : > { %v1173_v9 = vpop.xlane.xlu1 %1172 }
 0x53c   : > { %v1182_v63 = vmul.f32 1.442695, %v1176_v62  ;;  %v1177_v10 = vsub.f32 %v1161_v48, %v1173_v9 }
 0x53e   : > { %6975 = vpow2.f32 %v1182_v63  ;;  %v1184_v11 = vmul.f32 1.442695, %v1177_v10 }
 0x540   : > { %v6972_v0 = vpop.eup %6971  ;;  %6977 = vpow2.f32 %v1184_v11 }
 0x541   : > { %v1186_v1 = vsel %vm973_vm2, %v6972_v0, 0.0 }
 0x542   : > { %v6974_v3 = vpop.eup %6973  ;;  %1187 = vadd.xlane.f32.xlu0 %v1186_v1 }
 0x543   : > { %v1189_v5 = vsel %vm973_vm2, %v6974_v3, 0.0 }
 0x544   : > { %1190 = vadd.xlane.f32.xlu1 %v1189_v5 }
 0x548   : > { %v6976_v6 = vpop.eup %6975 }
 0x549   : > { %v1192_v7 = vsel %vm973_vm2, %v6976_v6, 0.0 }
 0x54a   : > { %1193 = vadd.xlane.f32.xlu0 %v1192_v7  ;;  %v6978_v12 = vpop.eup %6977 }
 0x54b   : > { %v1195_v14 = vsel %vm973_vm2, %v6978_v12, 0.0 }
 0x555   : > { %1451 = vrot.lane.b32.xlu1 %v8202_v16, %s7639_s27 }
 0x559   : > { %1396 = vrot.lane.b32.xlu1 %v8212_v20, %s7639_s27 }
 0x560   : > { %1399 = vrot.lane.b32.xlu0 %v8200_v13, %s7639_s27 }
 0x564   : > { %1503 = vrot.lane.b32.xlu0 %v8209_v19, %s7639_s27 }
 0x568   : > { %1500 = vrot.lane.b32.xlu0 %v8234_v26, %s7639_s27 }
 0x57d   : > { %1196 = vadd.xlane.f32.xlu1 %v1195_v14 }
 0x58e   : > { %1448 = vrot.lane.b32.xlu1 %v8216_v22, %s7639_s27 }
 0x592   : > { %1555 = vrot.lane.b32.xlu1 %v8214_v21, %s7639_s27 }
 0x596   : > { %1552 = vrot.lane.b32.xlu1 %v8238_v28, %s7639_s27 }
 0x5cf   : > { %v1188_v15 = vpop.xlane.xlu0 %1187 }
 0x5d0   : > { %6979 = vrcp.f32 %v1188_v15 }
 0x5d1   : > { %v1191_v17 = vpop.xlane.xlu1 %1190 }
 0x5d2   : > { %6981 = vrcp.f32 %v1191_v17 }
 0x5d5   : > { %v1452_v40 = vpop.permute.xlu1 %1451 }
 0x5d6   : > { %v1457_v50 = vsel %vm973_vm2, %v1452_v40, 0 }
 0x5d7   : > { %v1194_v18 = vpop.xlane.xlu0 %1193 }
 0x5d8   : > { %6983 = vrcp.f32 %v1194_v18 }
 0x5d9   : > { %v1397_v42 = vpop.permute.xlu1 %1396 }
 0x5da   : > { %v6980_v23 = vpop.eup %6979 }
 0x5db   : > { %v1202_v29 = vmul.f32 %v6980_v23, %v6972_v0  ;;  %v1400_v37 = vpop.permute.xlu0 %1399 }
 0x5dc   : > { %v6982_v30 = vpop.eup %6981  ;;  %v1405_v39 = vsel %vm973_vm2, %v1400_v37, 0 }
 0x5dd   : > { %v1206_v32 = vpack.c.bf16 %v1202_v29, %v1202_v29  ;;  %v1203_v33 = vmul.f32 %v6982_v30, %v6974_v3 }
 0x5df   : > { %6246 = vmatmul.mubr.msk.bf16.vlgmr.msra.gmra.mrb[16].mxu1 %vm973_vm2, %v1206_v32  ;;  %v1207_v35 = vpack.c.bf16 %v1203_v33, %v1203_v33  ;;  %v1504_v41 = vpop.permute.xlu0 %1503 }
 0x5e0   : > { %6256 = vmatpush3.bf16.msra.mxu1 %v1307_v34  ;;  %6257 = vmatprep.mubr.msk.bf16.mxu1 %vm7638_vm1, %v7637_v2  ;;  %v1509_v43 = vsel %vm973_vm2, %v1504_v41, 0 }
 0x5e1   : > { %6252 = vmatmul.mubr.msk.bf16.vlgmr.msra.gmra.mrb[12].mxu0 %vm973_vm2, %v1207_v35  ;;  %6267 = vmatprep.subr.bf16.mxu1 %v7637_v2 }
 0x5e2   : > { %v6984_v8 = vpop.eup %6983  ;;  %6262 = vmatpush3.bf16.msra.mxu0 %v1353_v4  ;;  %6263 = vmatprep.mubr.msk.bf16.mxu0 %vm7638_vm1, %v7637_v2 }
 0x5e3   : > { %v1204_v36 = vmul.f32 %v6984_v8, %v6976_v6  ;;  %6273 = vmatprep.subr.bf16.mxu0 %v7637_v2  ;;  %v1501_v44 = vpop.permute.xlu0 %1500 }
 0x5e5   : > { %v1208_v38 = vpack.c.bf16 %v1204_v36, %v1204_v36 }
 0x5e7   : > { %6258 = vmatmul.mubr.msk.bf16.vlgmr.msra.gmra.mrb[20].mxu1 %vm973_vm2, %v1208_v38 }
 0x5e8   : > { %6269 = vmatprep.mubr.msk.bf16.mxu1 %vm7638_vm1, %v7637_v2 }
 0x5e9   : > { %6268 = vmatpush3.bf16.xpose.msra.mxu1 %v1405_v39 }
 0x5ea   : > { %6279 = vmatprep.subr.bf16.mxu1 %v7637_v2 }
 0x5f0   : > { %6270 = vmatmul.mubr.msk.bf16.vlgmr.msra.gmra.mrb[24].mxu1 %vm973_vm2, %v1397_v42 }
 0x5f1   : > { %6280 = vmatpush3.bf16.xpose.msra.mxu1 %v1509_v43  ;;  %6281 = vmatprep.mubr.msk.bf16.mxu1 %vm7638_vm1, %v7637_v2 }
 0x5f2   : > { %6291 = vmatprep.subr.bf16.mxu1 %v7637_v2 }
 0x5f8   : > { %6282 = vmatmul.mubr.msk.bf16.vlgmr.msra.gmra.mrb[28].mxu1 %vm973_vm2, %v1501_v44 }
 0x5f9   : > { %6293 = vmatprep.mubr.msk.bf16.mxu1 %vm7638_vm1, %v7637_v2 }
 0x60a   : > { %v1197_v45 = vpop.xlane.xlu1 %1196 }
 0x60b   : > { %6985 = vrcp.f32 %v1197_v45 }
 0x60e   : > { %v1449_v49 = vpop.permute.xlu1 %1448 }
 0x612   : > { %v1556_v51 = vpop.permute.xlu1 %1555 }
 0x613   : > { %v1561_v52 = vsel %vm973_vm2, %v1556_v51, 0 }
 0x615   : > { %v6986_v46 = vpop.eup %6985 }
 0x616   : > { %v1205_v47 = vmul.f32 %v6986_v46, %v6978_v12  ;;  %v1553_v53 = vpop.permute.xlu1 %1552 }
 0x618   : > { %v1209_v48 = vpack.c.bf16 %v1205_v47, %v1205_v47 }
 0x61a   : > { %6264 = vmatmul.mubr.msk.bf16.vlgmr.msra.gmra.mrb[16].mxu0 %vm973_vm2, %v1209_v48 }
 0x61b   : > { %6274 = vmatpush3.bf16.xpose.msra.mxu0 %v1457_v50  ;;  %6275 = vmatprep.mubr.msk.bf16.mxu0 %vm7638_vm1, %v7637_v2 }
 0x61c   : > { %6285 = vmatprep.subr.bf16.mxu0 %v7637_v2 }
 0x622   : > { %6276 = vmatmul.mubr.msk.bf16.vlgmr.msra.gmra.mrb[20].mxu0 %vm973_vm2, %v1449_v49 }
 0x623   : > { %6286 = vmatpush3.bf16.xpose.msra.mxu0 %v1561_v52  ;;  %6287 = vmatprep.mubr.msk.bf16.mxu0 %vm7638_vm1, %v7637_v2 }
 0x624   : > { %6297 = vmatprep.subr.bf16.mxu0 %v7637_v2 }
 0x62a   : > { %6288 = vmatmul.mubr.msk.bf16.vlgmr.msra.gmra.mrb[24].mxu0 %vm973_vm2, %v1553_v53 }
 0x62b   : > { %6299 = vmatprep.mubr.msk.bf16.mxu0 %vm7638_vm1, %v7637_v2 }
 0x6b2   : > { %v8324_v54 = vpop.f32.mrb[16].mxu1 }
 0x6b3   : > { %v6247_v55 = vpop.f32.mrb[17].mxu1 }
 0x6b4   : > { %v1254_v56 = vpop.f32.mrb[18].mxu1  ;;  %v8326_v57 = vpop.f32.mrb[12].mxu0 }
 0x6b5   : > { %v6248_v58 = vpop.f32.mrb[19].mxu1  ;;  %v6253_v59 = vpop.f32.mrb[13].mxu0 }
 0x6b6   : > { %v1300_v60 = vpop.f32.mrb[14].mxu0 }
 0x6b7   : > { %v6254_v61 = vpop.f32.mrb[15].mxu0 }
 0x6ba   : > { %v8328_v62 = vpop.f32.mrb[20].mxu1 }
 0x6bb   : > { %v6259_v63 = vpop.f32.mrb[21].mxu1 }
 0x6bc   : > { %v1346_v0 = vpop.f32.mrb[22].mxu1 }
 0x6bd   : > { %v6260_v1 = vpop.f32.mrb[23].mxu1 }
 0x6c3   : > { %v1441_v3 = vpop.f32.mrb[24].mxu1 }
 0x6c4   : > { %v1603_v5 = vmul.f32 0.35355338, %v1441_v3  ;;  %v6271_v6 = vpop.f32.mrb[25].mxu1 }
 0x6c5   : > { %v1444_v7 = vpop.f32.mrb[26].mxu1 }
 0x6c6   : > { %v6272_v9 = vpop.f32.mrb[27].mxu1  ;;  %v1607_v10 = vsel %vm973_vm2, %v1603_v5, -inf }
 0x6c7   : > { %1608 = vmax.xlane.f32.xlu0 %v1607_v10 }
 0x6cb   : > { %v1545_v11 = vpop.f32.mrb[28].mxu1 }
 0x6cc   : > { %v1605_v12 = vmul.f32 0.35355338, %v1545_v11  ;;  %v6283_v14 = vpop.f32.mrb[29].mxu1 }
 0x6cd   : > { %v1548_v15 = vpop.f32.mrb[30].mxu1 }
 0x6ce   : > { %v6284_v17 = vpop.f32.mrb[31].mxu1  ;;  %v1613_v18 = vsel %vm973_vm2, %v1605_v12, -inf }
 0x6cf   : > { %1614 = vmax.xlane.f32.xlu0 %v1613_v18 }
 0x6ed   : > { %v8332_v23 = vpop.f32.mrb[16].mxu0 }
 0x6ee   : > { %v6265_v29 = vpop.f32.mrb[17].mxu0 }
 0x6ef   : > { %v1392_v30 = vpop.f32.mrb[18].mxu0 }
 0x6f0   : > { %v6266_v32 = vpop.f32.mrb[19].mxu0 }
 0x6f5   : > { %v1493_v33 = vpop.f32.mrb[20].mxu0 }
 0x6f6   : > { %v1604_v34 = vmul.f32 0.35355338, %v1493_v33  ;;  %v6277_v35 = vpop.f32.mrb[21].mxu0 }
 0x6f7   : > { %v1496_v4 = vpop.f32.mrb[22].mxu0 }
 0x6f8   : > { %v6278_v8 = vpop.f32.mrb[23].mxu0  ;;  %v1610_v36 = vsel %vm973_vm2, %v1604_v34, -inf }
 0x6f9   : > { %1611 = vmax.xlane.f32.xlu1 %v1610_v36 }
 0x6fd   : > { %v1597_v37 = vpop.f32.mrb[24].mxu0 }
 0x6fe   : > { %v1606_v38 = vmul.f32 0.35355338, %v1597_v37  ;;  %v6289_v39 = vpop.f32.mrb[25].mxu0 }
 0x6ff   : > { %v1600_v40 = vpop.f32.mrb[26].mxu0 }
 0x700   : > { %v6290_v41 = vpop.f32.mrb[27].mxu0  ;;  %v1616_v42 = vsel %vm973_vm2, %v1606_v38, -inf }
 0x701   : > { %1617 = vmax.xlane.f32.xlu0 %v1616_v42 }
 0x70a   : > { %1705 = vrot.lane.b32.xlu1 %v8236_v27, %s7639_s27 }
 0x70e   : > { %1754 = vrot.lane.b32.xlu1 %v8280_v24, %s7639_s27 }
 0x712   : > { %1803 = vrot.lane.b32.xlu1 %v8284_v31, %s7639_s27 }
 0x754   : > { %v1609_v43 = vpop.xlane.xlu0 %1608 }
 0x755   : > { %v1619_v44 = vsub.f32 %v1603_v5, %v1609_v43 }
 0x757   : > { %v1623_v45 = vmul.f32 1.442695, %v1619_v44 }
 0x759   : > { %6987 = vpow2.f32 %v1623_v45 }
 0x75c   : > { %v1615_v48 = vpop.xlane.xlu0 %1614 }
 0x75d   : > { %v1621_v49 = vsub.f32 %v1605_v12, %v1615_v48 }
 0x75f   : > { %v1627_v52 = vmul.f32 1.442695, %v1621_v49 }
 0x763   : > { %v6988_v46 = vpop.eup %6987 }
 0x764   : > { %v1631_v47 = vsel %vm973_vm2, %v6988_v46, 0.0 }
 0x765   : > { %1632 = vadd.xlane.f32.xlu0 %v1631_v47 }
 0x77b   : > { %1656 = vrot.lane.b32.xlu0 %v8231_v25, %s7639_s27 }
 0x786   : > { %v1612_v50 = vpop.xlane.xlu1 %1611 }
 0x787   : > { %v1620_v51 = vsub.f32 %v1604_v34, %v1612_v50 }
 0x789   : > { %v1625_v53 = vmul.f32 1.442695, %v1620_v51 }
 0x78a   : > { %v1706_v55 = vpop.permute.xlu1 %1705 }
 0x78b   : > { %6989 = vpow2.f32 %v1625_v53  ;;  %v1711_v56 = vsel %vm1213_vm3, %v1706_v55, 0 }
 0x78c   : > { %6991 = vpow2.f32 %v1627_v52  ;;  %6298 = vmatpush3.bf16.msra.mxu0 %v1711_v56 }
 0x78d   : > { %6309 = vmatprep.subr.bf16.mxu0 %v7637_v2 }
 0x78e   : > { %v1618_v63 = vpop.xlane.xlu0 %1617  ;;  %v1755_v12 = vpop.permute.xlu1 %1754 }
 0x78f   : > { %v1622_v0 = vsub.f32 %v1606_v38, %v1618_v63  ;;  %v1760_v15 = vsel %vm1213_vm3, %v1755_v12, 0 }
 0x791   : > { %v1629_v1 = vmul.f32 1.442695, %v1622_v0 }
 0x792   : > { %v1804_v17 = vpop.permute.xlu1 %1803 }
 0x793   : > { %6993 = vpow2.f32 %v1629_v1  ;;  %v1809_v8 = vsel %vm1213_vm3, %v1804_v17, 0 }
 0x795   : > { %v6990_v58 = vpop.eup %6989 }
 0x796   : > { %v6992_v59 = vpop.eup %6991  ;;  %v1634_v60 = vsel %vm973_vm2, %v6990_v58, 0.0 }
 0x797   : > { %1635 = vadd.xlane.f32.xlu1 %v1634_v60  ;;  %v1637_v61 = vsel %vm973_vm2, %v6992_v59, 0.0 }
 0x79a   : > { %1638 = vadd.xlane.f32.xlu0 %v1637_v61 }
 0x79d   : > { %v6994_v3 = vpop.eup %6993 }
 0x79e   : > { %v1640_v5 = vsel %vm973_vm2, %v6994_v3, 0.0 }
 0x7a8   : > { %1903 = vrot.lane.b32.xlu1 %v8202_v16, %s7640_s21 }
 0x7b0   : > { %1853 = vrot.lane.b32.xlu0 %v8200_v13, %s7640_s21 }
 0x7b4   : > { %1851 = vrot.lane.b32.xlu0 %v8212_v20, %s7640_s21 }
 0x7b8   : > { %1953 = vrot.lane.b32.xlu0 %v8209_v19, %s7640_s21 }
 0x7bc   : > { %1951 = vrot.lane.b32.xlu0 %v8234_v26, %s7640_s21 }
 0x7cc   : > { %1641 = vadd.xlane.f32.xlu1 %v1640_v5 }
 0x7dd   : > { %1901 = vrot.lane.b32.xlu1 %v8216_v22, %s7640_s21 }
 0x7e1   : > { %2003 = vrot.lane.b32.xlu1 %v8214_v21, %s7640_s21 }
 0x7e5   : > { %2001 = vrot.lane.b32.xlu1 %v8238_v28, %s7640_s21 }
 0x7f2   : > { %v1633_v6 = vpop.xlane.xlu0 %1632 }
 0x7f3   : > { %6995 = vrcp.f32 %v1633_v6 }
 0x7f6   : > { %v1657_v7 = vpop.permute.xlu0 %1656 }
 0x7f7   : > { %v1662_v9 = vsel %vm1213_vm3, %v1657_v7, 0 }
 0x7f8   : > { %6292 = vmatpush3.bf16.msra.mxu1 %v1662_v9 }
 0x7f9   : > { %6303 = vmatprep.subr.bf16.mxu1 %v7637_v2 }
 0x7fd   : > { %v6996_v10 = vpop.eup %6995 }
 0x7fe   : > { %v1647_v11 = vmul.f32 %v6996_v10, %v6988_v46 }
 0x800   : > { %v1651_v14 = vpack.c.bf16 %v1647_v11, %v1647_v11 }
 0x802   : > { %6294 = vmatmul.mubr.msk.bf16.vlgmr.msra.gmra.mrb[32].mxu1 %vm973_vm2, %v1651_v14 }
 0x803   : > { %6304 = vmatpush3.bf16.msra.mxu1 %v1760_v15  ;;  %6305 = vmatprep.mubr.msk.bf16.mxu1 %vm7638_vm1, %v7637_v2 }
 0x804   : > { %6315 = vmatprep.subr.bf16.mxu1 %v7637_v2 }
 0x824   : > { %v1636_v18 = vpop.xlane.xlu1 %1635 }
 0x825   : > { %6997 = vrcp.f32 %v1636_v18 }
 0x827   : > { %v1639_v29 = vpop.xlane.xlu0 %1638 }
 0x828   : > { %6999 = vrcp.f32 %v1639_v29  ;;  %v1904_v42 = vpop.permute.xlu1 %1903 }
 0x829   : > { %v1909_v48 = vsel %vm973_vm2, %v1904_v42, 0 }
 0x82b   : > { %v1854_v32 = vpop.permute.xlu0 %1853 }
 0x82c   : > { %v1859_v38 = vsel %vm973_vm2, %v1854_v32, 0 }
 0x82f   : > { %v6998_v30 = vpop.eup %6997  ;;  %v1852_v37 = vpop.permute.xlu0 %1851 }
 0x830   : > { %v1648_v33 = vmul.f32 %v6998_v30, %v6990_v58 }
 0x832   : > { %v7000_v34 = vpop.eup %6999  ;;  %v1652_v35 = vpack.c.bf16 %v1648_v33, %v1648_v33 }
 0x833   : > { %v1649_v4 = vmul.f32 %v7000_v34, %v6992_v59  ;;  %v1954_v39 = vpop.permute.xlu0 %1953 }
 0x834   : > { %6300 = vmatmul.mubr.msk.bf16.vlgmr.msra.gmra.mrb[28].mxu0 %vm973_vm2, %v1652_v35  ;;  %v1959_v40 = vsel %vm973_vm2, %v1954_v39, 0 }
 0x835   : > { %6310 = vmatpush3.bf16.msra.mxu0 %v1809_v8  ;;  %v1653_v36 = vpack.c.bf16 %v1649_v4, %v1649_v4  ;;  %6311 = vmatprep.mubr.msk.bf16.mxu0 %vm7638_vm1, %v7637_v2 }
 0x836   : > { %6321 = vmatprep.subr.bf16.mxu0 %v7637_v2 }
 0x837   : > { %6306 = vmatmul.mubr.msk.bf16.vlgmr.msra.gmra.mrb[36].mxu1 %vm973_vm2, %v1653_v36  ;;  %v1952_v41 = vpop.permute.xlu0 %1951 }
 0x838   : > { %6316 = vmatpush3.bf16.xpose.msra.mxu1 %v1859_v38  ;;  %6317 = vmatprep.mubr.msk.bf16.mxu1 %vm7638_vm1, %v7637_v2 }
 0x839   : > { %6327 = vmatprep.subr.bf16.mxu1 %v7637_v2 }
 0x83f   : > { %6318 = vmatmul.mubr.msk.bf16.vlgmr.msra.gmra.mrb[40].mxu1 %vm973_vm2, %v1852_v37 }
 0x840   : > { %6328 = vmatpush3.bf16.xpose.msra.mxu1 %v1959_v40  ;;  %6329 = vmatprep.mubr.msk.bf16.mxu1 %vm7638_vm1, %v7637_v2 }
 0x841   : > { %6339 = vmatprep.subr.bf16.mxu1 %v7637_v2 }
 0x847   : > { %6330 = vmatmul.mubr.msk.bf16.vlgmr.msra.gmra.mrb[44].mxu1 %vm973_vm2, %v1952_v41 }
 0x848   : > { %6341 = vmatprep.mubr.msk.bf16.mxu1 %vm7638_vm1, %v7637_v2 }
 0x859   : > { %v1642_v43 = vpop.xlane.xlu1 %1641 }
 0x85a   : > { %7001 = vrcp.f32 %v1642_v43 }
 0x85d   : > { %v1902_v47 = vpop.permute.xlu1 %1901 }
 0x861   : > { %v2004_v49 = vpop.permute.xlu1 %2003 }
 0x862   : > { %v2009_v50 = vsel %vm973_vm2, %v2004_v49, 0 }
 0x864   : > { %v7002_v44 = vpop.eup %7001 }
 0x865   : > { %v1650_v45 = vmul.f32 %v7002_v44, %v6994_v3  ;;  %v2002_v51 = vpop.permute.xlu1 %2001 }
 0x867   : > { %v1654_v46 = vpack.c.bf16 %v1650_v45, %v1650_v45 }
 0x869   : > { %6312 = vmatmul.mubr.msk.bf16.vlgmr.msra.gmra.mrb[32].mxu0 %vm973_vm2, %v1654_v46 }
 0x86a   : > { %6322 = vmatpush3.bf16.xpose.msra.mxu0 %v1909_v48  ;;  %6323 = vmatprep.mubr.msk.bf16.mxu0 %vm7638_vm1, %v7637_v2 }
 0x86b   : > { %6333 = vmatprep.subr.bf16.mxu0 %v7637_v2 }
 0x871   : > { %6324 = vmatmul.mubr.msk.bf16.vlgmr.msra.gmra.mrb[36].mxu0 %vm973_vm2, %v1902_v47 }
 0x872   : > { %6334 = vmatpush3.bf16.xpose.msra.mxu0 %v2009_v50  ;;  %6335 = vmatprep.mubr.msk.bf16.mxu0 %vm7638_vm1, %v7637_v2 }
 0x873   : > { %6345 = vmatprep.subr.bf16.mxu0 %v7637_v2 }
 0x879   : > { %6336 = vmatmul.mubr.msk.bf16.vlgmr.msra.gmra.mrb[40].mxu0 %vm973_vm2, %v2002_v51 }
 0x87a   : > { %6347 = vmatprep.mubr.msk.bf16.mxu0 %vm7638_vm1, %v7637_v2 }
 0x8d5   : > { %v8404_v52 = vpop.f32.mrb[32].mxu1 }
 0x8d6   : > { %v6295_v53 = vpop.f32.mrb[33].mxu1 }
 0x8d7   : > { %v1701_v55 = vpop.f32.mrb[34].mxu1 }
 0x8d8   : > { %v6296_v56 = vpop.f32.mrb[35].mxu1 }
 0x907   : > { %v8406_v58 = vpop.f32.mrb[28].mxu0 }
 0x908   : > { %v6875_v59 = vpack.i.bf16 %v8406_v58, %v8404_v52  ;;  %v6301_v60 = vpop.f32.mrb[29].mxu0 }
 0x909   : > { %v1750_v61 = vpop.f32.mrb[30].mxu0 }
 0x90a   : > { %v8410_v63 = vpop.f32.mrb[36].mxu1  ;;  %v6302_v0 = vpop.f32.mrb[31].mxu0 }
 0x90b   : > { %v6307_v1 = vpop.f32.mrb[37].mxu1 }
 0x90c   : > { %v1799_v3 = vpop.f32.mrb[38].mxu1 }
 0x90d   : > { %v6308_v5 = vpop.f32.mrb[39].mxu1 }
 0x912   : > { %v1895_v6 = vpop.f32.mrb[40].mxu1 }
 0x913   : > { %v2051_v7 = vmul.f32 0.35355338, %v1895_v6  ;;  %v6319_v9 = vpop.f32.mrb[41].mxu1 }
 0x914   : > { %v1898_v10 = vpop.f32.mrb[42].mxu1 }
 0x915   : > { %v6320_v11 = vpop.f32.mrb[43].mxu1  ;;  %v2055_v12 = vsel %vm973_vm2, %v2051_v7, -inf }
 0x916   : > { %2056 = vmax.xlane.f32.xlu0 %v2055_v12 }
 0x91a   : > { %v1995_v14 = vpop.f32.mrb[44].mxu1 }
 0x91b   : > { %v2053_v15 = vmul.f32 0.35355338, %v1995_v14  ;;  %v6331_v17 = vpop.f32.mrb[45].mxu1 }
 0x91c   : > { %v1998_v18 = vpop.f32.mrb[46].mxu1 }
 0x91d   : > { %v6332_v29 = vpop.f32.mrb[47].mxu1  ;;  %v2061_v30 = vsel %vm973_vm2, %v2053_v15, -inf }
 0x91e   : > { %2062 = vmax.xlane.f32.xlu0 %v2061_v30 }
 0x93c   : > { %v8414_v32 = vpop.f32.mrb[32].mxu0 }
 0x93d   : > { %v6880_v33 = vpack.i.bf16 %v8414_v32, %v8410_v63  ;;  %v6313_v34 = vpop.f32.mrb[33].mxu0 }
 0x93e   : > { %v1848_v35 = vpop.f32.mrb[34].mxu0 }
 0x93f   : > { %v6314_v4 = vpop.f32.mrb[35].mxu0 }
 0x944   : > { %v1945_v8 = vpop.f32.mrb[36].mxu0 }
 0x945   : > { %v2052_v36 = vmul.f32 0.35355338, %v1945_v8  ;;  %v6325_v37 = vpop.f32.mrb[37].mxu0 }
 0x946   : > { %v1948_v38 = vpop.f32.mrb[38].mxu0 }
 0x947   : > { %v6326_v39 = vpop.f32.mrb[39].mxu0  ;;  %v2058_v40 = vsel %vm973_vm2, %v2052_v36, -inf }
 0x948   : > { %2059 = vmax.xlane.f32.xlu1 %v2058_v40 }
 0x94c   : > { %v2045_v41 = vpop.f32.mrb[40].mxu0 }
 0x94d   : > { %v2054_v42 = vmul.f32 0.35355338, %v2045_v41  ;;  %v6337_v43 = vpop.f32.mrb[41].mxu0 }
 0x94e   : > { %v2048_v44 = vpop.f32.mrb[42].mxu0 }
 0x94f   : > { %v6338_v45 = vpop.f32.mrb[43].mxu0  ;;  %v2064_v46 = vsel %vm973_vm2, %v2054_v42, -inf }
 0x950   : > { %2065 = vmax.xlane.f32.xlu0 %v2064_v46 }
 0x959   : > { %2151 = vrot.lane.b32.xlu1 %v8236_v27, %s7640_s21 }
 0x95d   : > { %2199 = vrot.lane.b32.xlu1 %v8280_v24, %s7640_s21 }
 0x961   : > { %2247 = vrot.lane.b32.xlu1 %v8284_v31, %s7640_s21 }
 0x9a3   : > { %v2057_v47 = vpop.xlane.xlu0 %2056 }
 0x9a4   : > { %v2067_v48 = vsub.f32 %v2051_v7, %v2057_v47 }
 0x9a6   : > { %v2071_v49 = vmul.f32 1.442695, %v2067_v48 }
 0x9a8   : > { %7003 = vpow2.f32 %v2071_v49 }
 0x9ab   : > { %v2063_v53 = vpop.xlane.xlu0 %2062 }
 0x9ac   : > { %v2069_v55 = vsub.f32 %v2053_v15, %v2063_v53 }
 0x9ae   : > { %v2075_v61 = vmul.f32 1.442695, %v2069_v55 }
 0x9b2   : > { %v7004_v50 = vpop.eup %7003 }
 0x9b3   : > { %v2079_v51 = vsel %vm973_vm2, %v7004_v50, 0.0 }
 0x9b4   : > { %2080 = vadd.xlane.f32.xlu0 %v2079_v51 }
 0x9ca   : > { %2103 = vrot.lane.b32.xlu0 %v8231_v25, %s7640_s21 }
 0x9d5   : > { %v2060_v56 = vpop.xlane.xlu1 %2059 }
 0x9d6   : > { %v2068_v60 = vsub.f32 %v2052_v36, %v2060_v56 }
 0x9d8   : > { %v2073_v0 = vmul.f32 1.442695, %v2068_v60 }
 0x9d9   : > { %v2152_v1 = vpop.permute.xlu1 %2151 }
 0x9da   : > { %7005 = vpow2.f32 %v2073_v0  ;;  %v2157_v3 = vsel %vm1213_vm3, %v2152_v1, 0 }
 0x9db   : > { %7007 = vpow2.f32 %v2075_v61  ;;  %6346 = vmatpush3.bf16.msra.mxu0 %v2157_v3 }
 0x9dc   : > { %6357 = vmatprep.subr.bf16.mxu0 %v7637_v2 }
 0x9dd   : > { %v2066_v10 = vpop.xlane.xlu0 %2065  ;;  %v2200_v17 = vpop.permute.xlu1 %2199 }
 0x9de   : > { %v2070_v11 = vsub.f32 %v2054_v42, %v2066_v10 }
 0x9e0   : > { %v2077_v12 = vmul.f32 1.442695, %v2070_v11 }
 0x9e2   : > { %7009 = vpow2.f32 %v2077_v12 }
 0x9e4   : > { %v7006_v5 = vpop.eup %7005 }
 0x9e5   : > { %v7008_v6 = vpop.eup %7007  ;;  %v2082_v7 = vsel %vm973_vm2, %v7006_v5, 0.0 }
 0x9e6   : > { %2083 = vadd.xlane.f32.xlu1 %v2082_v7  ;;  %v2085_v9 = vsel %vm973_vm2, %v7008_v6, 0.0 }
 0x9e9   : > { %2086 = vadd.xlane.f32.xlu0 %v2085_v9 }
 0x9ec   : > { %v7010_v14 = vpop.eup %7009 }
 0x9ed   : > { %v2088_v15 = vsel %vm973_vm2, %v7010_v14, 0.0 }
 0x9f7   : > { %2347 = vrot.lane.b32.xlu1 %v8202_v16, %s7641_s3 }
 0x9ff   : > { %2297 = vrot.lane.b32.xlu0 %v8200_v13, %s7641_s3 }
 0xa03   : > { %2295 = vrot.lane.b32.xlu0 %v8212_v20, %s7641_s3 }
 0xa07   : > { %2397 = vrot.lane.b32.xlu0 %v8209_v19, %s7641_s3 }
 0xa0b   : > { %2395 = vrot.lane.b32.xlu0 %v8234_v26, %s7641_s3 }
 0xa1b   : > { %2089 = vadd.xlane.f32.xlu1 %v2088_v15 }
 0xa2c   : > { %2345 = vrot.lane.b32.xlu1 %v8216_v22, %s7641_s3  ;;  %v2205_v22 = vsel %vm1213_vm3, %v2200_v17, 0 }
 0xa30   : > { %2447 = vrot.lane.b32.xlu1 %v8214_v21, %s7641_s3  ;;  %v2248_v21 = vpop.permute.xlu1 %2247 }
 0xa31   : > { %v2253_v37 = vsel %vm1213_vm3, %v2248_v21, 0 }
 0xa34   : > { %2445 = vrot.lane.b32.xlu1 %v8238_v28, %s7641_s3 }
 0xa41   : > { %v2081_v13 = vpop.xlane.xlu0 %2080 }
 0xa42   : > { %7011 = vrcp.f32 %v2081_v13 }
 0xa45   : > { %v2104_v16 = vpop.permute.xlu0 %2103 }
 0xa46   : > { %v2109_v19 = vsel %vm1213_vm3, %v2104_v16, 0 }
 0xa47   : > { %6340 = vmatpush3.bf16.msra.mxu1 %v2109_v19 }
 0xa48   : > { %6351 = vmatprep.subr.bf16.mxu1 %v7637_v2 }
 0xa4c   : > { %v7012_v20 = vpop.eup %7011 }
 0xa4d   : > { %v2095_v26 = vmul.f32 %v7012_v20, %v7004_v50 }
 0xa4f   : > { %v2099_v18 = vpack.c.bf16 %v2095_v26, %v2095_v26 }
 0xa51   : > { %6342 = vmatmul.mubr.msk.bf16.vlgmr.msra.gmra.mrb[48].mxu1 %vm973_vm2, %v2099_v18 }
 0xa52   : > { %6352 = vmatpush3.bf16.msra.mxu1 %v2205_v22  ;;  %6353 = vmatprep.mubr.msk.bf16.mxu1 %vm7638_vm1, %v7637_v2 }
 0xa53   : > { %6363 = vmatprep.subr.bf16.mxu1 %v7637_v2 }
 0xa73   : > { %v2084_v28 = vpop.xlane.xlu1 %2083 }
 0xa74   : > { %7013 = vrcp.f32 %v2084_v28 }
 0xa76   : > { %v2087_v29 = vpop.xlane.xlu0 %2086 }
 0xa77   : > { %7015 = vrcp.f32 %v2087_v29  ;;  %v2348_v44 = vpop.permute.xlu1 %2347 }
 0xa78   : > { %v2353_v50 = vsel %vm973_vm2, %v2348_v44, 0 }
 0xa7a   : > { %v2298_v34 = vpop.permute.xlu0 %2297 }
 0xa7b   : > { %v2303_v40 = vsel %vm973_vm2, %v2298_v34, 0 }
 0xa7e   : > { %v7014_v30 = vpop.eup %7013  ;;  %v2296_v39 = vpop.permute.xlu0 %2295 }
 0xa7f   : > { %v2096_v35 = vmul.f32 %v7014_v30, %v7006_v5 }
 0xa81   : > { %v7016_v4 = vpop.eup %7015  ;;  %v2100_v8 = vpack.c.bf16 %v2096_v35, %v2096_v35 }
 0xa82   : > { %v2097_v36 = vmul.f32 %v7016_v4, %v7008_v6  ;;  %v2398_v41 = vpop.permute.xlu0 %2397 }
 0xa83   : > { %6348 = vmatmul.mubr.msk.bf16.vlgmr.msra.gmra.mrb[44].mxu0 %vm973_vm2, %v2100_v8  ;;  %v2403_v42 = vsel %vm973_vm2, %v2398_v41, 0 }
 0xa84   : > { %6358 = vmatpush3.bf16.msra.mxu0 %v2253_v37  ;;  %v2101_v38 = vpack.c.bf16 %v2097_v36, %v2097_v36  ;;  %6359 = vmatprep.mubr.msk.bf16.mxu0 %vm7638_vm1, %v7637_v2 }
 0xa85   : > { %6369 = vmatprep.subr.bf16.mxu0 %v7637_v2 }
 0xa86   : > { %6354 = vmatmul.mubr.msk.bf16.vlgmr.msra.gmra.mrb[52].mxu1 %vm973_vm2, %v2101_v38  ;;  %v2396_v43 = vpop.permute.xlu0 %2395 }
 0xa87   : > { %6364 = vmatpush3.bf16.xpose.msra.mxu1 %v2303_v40  ;;  %6365 = vmatprep.mubr.msk.bf16.mxu1 %vm7638_vm1, %v7637_v2 }
 0xa88   : > { %6375 = vmatprep.subr.bf16.mxu1 %v7637_v2 }
 0xa8e   : > { %6366 = vmatmul.mubr.msk.bf16.vlgmr.msra.gmra.mrb[56].mxu1 %vm973_vm2, %v2296_v39 }
 0xa8f   : > { %6376 = vmatpush3.bf16.xpose.msra.mxu1 %v2403_v42  ;;  %6377 = vmatprep.mubr.msk.bf16.mxu1 %vm7638_vm1, %v7637_v2 }
 0xa90   : > { %6387 = vmatprep.subr.bf16.mxu1 %v7637_v2 }
 0xa96   : > { %6378 = vmatmul.mubr.msk.bf16.vlgmr.msra.gmra.mrb[60].mxu1 %vm973_vm2, %v2396_v43 }
 0xa97   : > { %6389 = vmatprep.mubr.msk.bf16.mxu1 %vm7638_vm1, %v7637_v2 }
 0xaa8   : > { %v2090_v45 = vpop.xlane.xlu1 %2089 }
 0xaa9   : > { %7017 = vrcp.f32 %v2090_v45 }
 0xaac   : > { %v2346_v49 = vpop.permute.xlu1 %2345 }
 0xab0   : > { %v2448_v51 = vpop.permute.xlu1 %2447 }
 0xab1   : > { %v2453_v53 = vsel %vm973_vm2, %v2448_v51, 0 }
 0xab3   : > { %v7018_v46 = vpop.eup %7017 }
 0xab4   : > { %v2098_v47 = vmul.f32 %v7018_v46, %v7010_v14  ;;  %v2446_v55 = vpop.permute.xlu1 %2445 }
 0xab6   : > { %v2102_v48 = vpack.c.bf16 %v2098_v47, %v2098_v47 }
 0xab8   : > { %6360 = vmatmul.mubr.msk.bf16.vlgmr.msra.gmra.mrb[48].mxu0 %vm973_vm2, %v2102_v48 }
 0xab9   : > { %6370 = vmatpush3.bf16.xpose.msra.mxu0 %v2353_v50  ;;  %6371 = vmatprep.mubr.msk.bf16.mxu0 %vm7638_vm1, %v7637_v2 }
 0xaba   : > { %6381 = vmatprep.subr.bf16.mxu0 %v7637_v2 }
 0xac0   : > { %6372 = vmatmul.mubr.msk.bf16.vlgmr.msra.gmra.mrb[52].mxu0 %vm973_vm2, %v2346_v49 }
 0xac1   : > { %6382 = vmatpush3.bf16.xpose.msra.mxu0 %v2453_v53  ;;  %6383 = vmatprep.mubr.msk.bf16.mxu0 %vm7638_vm1, %v7637_v2 }
 0xac2   : > { %6393 = vmatprep.subr.bf16.mxu0 %v7637_v2 }
 0xac8   : > { %6384 = vmatmul.mubr.msk.bf16.vlgmr.msra.gmra.mrb[56].mxu0 %vm973_vm2, %v2446_v55 }
 0xac9   : > { %6395 = vmatprep.mubr.msk.bf16.mxu0 %vm7638_vm1, %v7637_v2 }
 0xb24   : > { %v8488_v56 = vpop.f32.mrb[48].mxu1 }
 0xb25   : > { %v6343_v60 = vpop.f32.mrb[49].mxu1 }
 0xb26   : > { %v2148_v61 = vpop.f32.mrb[50].mxu1 }
 0xb27   : > { %v6344_v0 = vpop.f32.mrb[51].mxu1 }
 0xb56   : > { %v8490_v1 = vpop.f32.mrb[44].mxu0 }
 0xb57   : > { %v6885_v3 = vpack.i.bf16 %v8490_v1, %v8488_v56  ;;  %v6349_v5 = vpop.f32.mrb[45].mxu0 }
 0xb58   : > { %v2196_v6 = vpop.f32.mrb[46].mxu0 }
 0xb59   : > { %v8494_v7 = vpop.f32.mrb[52].mxu1  ;;  %v6350_v9 = vpop.f32.mrb[47].mxu0 }
 0xb5a   : > { %v6355_v10 = vpop.f32.mrb[53].mxu1 }
 0xb5b   : > { %v2244_v11 = vpop.f32.mrb[54].mxu1 }
 0xb5c   : > { %v6356_v12 = vpop.f32.mrb[55].mxu1 }
 0xb61   : > { %v2339_v14 = vpop.f32.mrb[56].mxu1 }
 0xb62   : > { %v2495_v15 = vmul.f32 0.35355338, %v2339_v14  ;;  %v6367_v13 = vpop.f32.mrb[57].mxu1 }
 0xb63   : > { %v2342_v16 = vpop.f32.mrb[58].mxu1 }
 0xb64   : > { %v6368_v19 = vpop.f32.mrb[59].mxu1  ;;  %v2499_v20 = vsel %vm973_vm2, %v2495_v15, -inf }
 0xb65   : > { %2500 = vmax.xlane.f32.xlu0 %v2499_v20 }
 0xb69   : > { %v2439_v26 = vpop.f32.mrb[60].mxu1 }
 0xb6a   : > { %v2497_v17 = vmul.f32 0.35355338, %v2439_v26  ;;  %v6379_v18 = vpop.f32.mrb[61].mxu1 }
 0xb6b   : > { %v2442_v22 = vpop.f32.mrb[62].mxu1 }
 0xb6c   : > { %v6380_v21 = vpop.f32.mrb[63].mxu1  ;;  %v2505_v28 = vsel %vm973_vm2, %v2497_v17, -inf }
 0xb6d   : > { %2506 = vmax.xlane.f32.xlu0 %v2505_v28 }
 0xb8b   : > { %v2289_v29 = vpop.f32.mrb[48].mxu0 }
 0xb8c   : > { %v6890_v30 = vpack.i.bf16 %v2289_v29, %v8494_v7  ;;  %v6361_v34 = vpop.f32.mrb[49].mxu0 }
 0xb8d   : > { %v2292_v35 = vpop.f32.mrb[50].mxu0 }
 0xb8e   : > { %v6362_v4 = vpop.f32.mrb[51].mxu0 }
 0xb93   : > { %v2389_v8 = vpop.f32.mrb[52].mxu0 }
 0xb94   : > { %v2496_v36 = vmul.f32 0.35355338, %v2389_v8  ;;  %v6373_v37 = vpop.f32.mrb[53].mxu0 }
 0xb95   : > { %v2392_v38 = vpop.f32.mrb[54].mxu0 }
 0xb96   : > { %v6374_v39 = vpop.f32.mrb[55].mxu0  ;;  %v2502_v40 = vsel %vm973_vm2, %v2496_v36, -inf }
 0xb97   : > { %2503 = vmax.xlane.f32.xlu1 %v2502_v40 }
 0xb9b   : > { %v2489_v41 = vpop.f32.mrb[56].mxu0 }
 0xb9c   : > { %v2498_v42 = vmul.f32 0.35355338, %v2489_v41  ;;  %v6385_v43 = vpop.f32.mrb[57].mxu0 }
 0xb9d   : > { %v2492_v44 = vpop.f32.mrb[58].mxu0 }
 0xb9e   : > { %v6386_v45 = vpop.f32.mrb[59].mxu0  ;;  %v2508_v46 = vsel %vm973_vm2, %v2498_v42, -inf }
 0xb9f   : > { %2509 = vmax.xlane.f32.xlu0 %v2508_v46  ;;  %v6942_v46 = vld [vmem:[#allocation13 + $0x8] sm:$0xff]  }
 0xbf2   : > { %v2501_v47 = vpop.xlane.xlu0 %2500 }
 0xbf3   : > { %v2511_v48 = vsub.f32 %v2495_v15, %v2501_v47 }
 0xbf5   : > { %v2515_v49 = vmul.f32 1.442695, %v2511_v48 }
 0xbf7   : > { %7019 = vpow2.f32 %v2515_v49 }
 0xbfa   : > { %v2507_v50 = vpop.xlane.xlu0 %2506 }
 0xbfb   : > { %v2513_v51 = vsub.f32 %v2497_v17, %v2507_v50 }
 0xbfd   : > { %v2519_v53 = vmul.f32 1.442695, %v2513_v51 }
 0xbff   : > { %7021 = vpow2.f32 %v2519_v53 }
 0xc01   : > { %v7020_v55 = vpop.eup %7019 }
 0xc02   : > { %v2523_v56 = vsel %vm973_vm2, %v7020_v55, 0.0 }
 0xc03   : > { %2524 = vadd.xlane.f32.xlu0 %v2523_v56 }
 0xc09   : > { %v7022_v60 = vpop.eup %7021 }
 0xc0a   : > { %v2529_v61 = vsel %vm973_vm2, %v7022_v60, 0.0 }
 0xc0b   : > { %2530 = vadd.xlane.f32.xlu0 %v2529_v61 }
 0xc21   : > { %2547 = vrot.lane.b32.xlu0 %v8231_v25, %s7641_s3 }
 0xc24   : > { %v2504_v0 = vpop.xlane.xlu1 %2503 }
 0xc25   : > { %v2512_v1 = vsub.f32 %v2496_v36, %v2504_v0  ;;  %6876 = vrot.lane.b32.xlu0 %v6875_v59, %s7642_s1  ;;  %v6941_v36 = vld [vmem:[#allocation13] sm:$0xff]  }
 0xc27   : > { %v2517_v5 = vmul.f32 1.442695, %v2512_v1 }
 0xc29   : > { %7023 = vpow2.f32 %v2517_v5  ;;  %6886 = vrot.lane.b32.xlu0 %v6885_v3, %s7643_s2 }
 0xc2c   : > { %v2510_v25 = vpop.xlane.xlu0 %2509 }
 0xc2d   : > { %v2514_v9 = vsub.f32 %v2498_v42, %v2510_v25 }
 0xc2f   : > { %v2521_v10 = vmul.f32 1.442695, %v2514_v9 }
 0xc31   : > { %7025 = vpow2.f32 %v2521_v10 }
 0xc33   : > { %v7024_v6 = vpop.eup %7023 }
 0xc34   : > { %v2526_v7 = vsel %vm973_vm2, %v7024_v6, 0.0 }
 0xc35   : > { %2527 = vadd.xlane.f32.xlu1 %v2526_v7 }
 0xc3b   : > { %v7026_v52 = vpop.eup %7025 }
 0xc3c   : > { %v2532_v58 = vsel %vm973_vm2, %v7026_v52, 0.0 }
 0xc46   : > { %2595 = vrot.lane.b32.xlu1 %v8236_v27, %s7641_s3 }
 0xc4a   : > { %2643 = vrot.lane.b32.xlu1 %v8280_v24, %s7641_s3 }
 0xc6e   : > { %2533 = vadd.xlane.f32.xlu1 %v2532_v58 }
 0xc7f   : > { %2691 = vrot.lane.b32.xlu1 %v8284_v31, %s7641_s3 }
 0xc83   : > { %6881 = vrot.lane.b32.xlu1 %v6880_v33, %s7642_s1 }
 0xc87   : > { %6891 = vrot.lane.b32.xlu1 %v6890_v30, %s7643_s2 }
 0xc90   : > { %v2525_v27 = vpop.xlane.xlu0 %2524 }
 0xc91   : > { %7027 = vrcp.f32 %v2525_v27 }
 0xc98   : > { %v2531_v24 = vpop.xlane.xlu0 %2530 }
 0xc99   : > { %7029 = vrcp.f32 %v2531_v24 }
 0xc9b   : > { %v7028_v59 = vpop.eup %7027 }
 0xc9c   : > { %v2548_v3 = vpop.permute.xlu0 %2547  ;;  %v2539_v11 = vmul.f32 %v7028_v59, %v7020_v55 }
 0xc9d   : > { %v2553_v12 = vsel %vm1213_vm3, %v2548_v3, 0 }
 0xc9e   : > { %6388 = vmatpush3.bf16.msra.mxu1 %v2553_v12  ;;  %v2543_v14 = vpack.c.bf16 %v2539_v11, %v2539_v11 }
 0xc9f   : > { %6399 = vmatprep.subr.bf16.mxu1 %v7637_v2 }
 0xca0   : > { %v6877_v53 = vpop.permute.xlu0 %6876 }
 0xca1   : > { %6390 = vmatmul.mubr.msk.bf16.vlgmr.msra.gmra.mrb[64].mxu1 %vm973_vm2, %v2543_v14  ;;  %v6879_v56 = vunpack.i.h.bf16 %v6877_v53 }
 0xca2   : > { %6401 = vmatprep.mubr.msk.bf16.mxu1 %vm7638_vm1, %v7637_v2 }
 0xca3   : > { %v7030_v63 = vpop.eup %7029  ;;  %v2788_v5 = vsel %vm973_vm2, %v8326_v57, %v6879_v56 }
 0xca4   : > { %v2541_v15 = vmul.f32 %v7030_v63, %v7022_v60  ;;  %v6887_v55 = vpop.permute.xlu0 %6886  ;;  %v6878_v60 = vunpack.i.l.bf16 %v6877_v53 }
 0xca5   : > { %v6889_v61 = vunpack.i.h.bf16 %v6887_v55  ;;  %v6888_v0 = vunpack.i.l.bf16 %v6887_v55 }
 0xca6   : > { %v2545_v20 = vpack.c.bf16 %v2541_v15, %v2541_v15 }
 0xca7   : > { %v2793_v10 = vsel %vm2791_vm4, %v2788_v5, %v6889_v61 }
 0xcc2   : > { %v2528_v31 = vpop.xlane.xlu1 %2527 }
 0xcc3   : > { %7031 = vrcp.f32 %v2528_v31 }
 0xcc6   : > { %v2596_v32 = vpop.permute.xlu1 %2595 }
 0xcc7   : > { %v2601_v33 = vsel %vm1213_vm3, %v2596_v32, 0 }
 0xcc8   : > { %6394 = vmatpush3.bf16.msra.mxu0 %v2601_v33 }
 0xcc9   : > { %6405 = vmatprep.subr.bf16.mxu0 %v7637_v2 }
 0xcca   : > { %v2644_v13 = vpop.permute.xlu1 %2643 }
 0xccb   : > { %v2649_v16 = vsel %vm1213_vm3, %v2644_v13, 0 }
 0xccc   : > { %6400 = vmatpush3.bf16.msra.mxu1 %v2649_v16 }
 0xccd   : > { %v7032_v19 = vpop.eup %7031  ;;  %6411 = vmatprep.subr.bf16.mxu1 %v6941_v36 }
 0xcce   : > { %v2540_v26 = vmul.f32 %v7032_v19, %v7024_v6  ;;  %v2787_v6 = vsel %vm973_vm2, %v8324_v54, %v6878_v60 }
 0xccf   : > { %6402 = vmatmul.mubr.msk.bf16.vlgmr.msra.gmra.mrb[68].mxu1 %vm973_vm2, %v2545_v20  ;;  %v2792_v9 = vsel %vm2791_vm4, %v2787_v6, %v6888_v0 }
 0xcd0   : > { %v2544_v17 = vpack.c.bf16 %v2540_v26, %v2540_v26  ;;  %6412 = vmatpush3.bf16.msra.mxu1 %v6941_v36 }
 0xcd1   : > { %6413 = vmatprep.subr.bf16.mxu1 %v6942_v46 }
 0xcd2   : > { %6396 = vmatmul.mubr.msk.bf16.vlgmr.msra.gmra.mrb[60].mxu0 %vm973_vm2, %v2544_v17  ;;  %v7123_v17 = vld [vmem:[%s8138_s0 + $0x10] sm:$0xff] }
 0xcd3   : > { %6407 = vmatprep.mubr.msk.bf16.mxu0 %vm7638_vm1, %v7637_v2 }
 0xcd4   : > { %6414 = vmatpush3.bf16.msra.mxu1 %v6942_v46 }
 0xcfb   : > { %v2534_v18 = vpop.xlane.xlu1 %2533 }
 0xcfc   : > { %7033 = vrcp.f32 %v2534_v18  ;;  %v7124_v18 = vld [vmem:[%s8138_s0] sm:$0xff] }
 0xcff   : > { %v2692_v22 = vpop.permute.xlu1 %2691 }
 0xd00   : > { %v2697_v21 = vsel %vm1213_vm3, %v2692_v22, 0 }
 0xd01   : > { %6406 = vmatpush3.bf16.msra.mxu0 %v2697_v21 }
 0xd03   : > { %v6882_v24 = vpop.permute.xlu1 %6881 }
 0xd04   : > { %v6884_v3 = vunpack.i.h.bf16 %v6882_v24  ;;  %v6883_v57 = vunpack.i.l.bf16 %v6882_v24 }
 0xd06   : > { %v7034_v28 = vpop.eup %7033  ;;  %v2790_v14 = vsel %vm973_vm2, %v8332_v23, %v6884_v3  ;;  %v2789_v31 = vsel %vm973_vm2, %v8328_v62, %v6883_v57  ;;  %v5928_v23 = vld [vmem:[#allocation14] ss:$0 sm:$0xff] }
 0xd07   : > { %v2542_v29 = vmul.f32 %v7034_v28, %v7026_v52  ;;  %v6892_v59 = vpop.permute.xlu1 %6891 }
 0xd08   : > { %v6894_v11 = vunpack.i.h.bf16 %v6892_v59  ;;  %v6893_v54 = vunpack.i.l.bf16 %v6892_v59 }
 0xd09   : > { %v2546_v30 = vpack.c.bf16 %v2542_v29, %v2542_v29 }
 0xd0a   : > { %v2794_v33 = vsel %vm2791_vm4, %v2789_v31, %v6893_v54  ;;  %v2795_v15 = vsel %vm2791_vm4, %v2790_v14, %v6894_v11 }
 0xd0b   : > { %6408 = vmatmul.mubr.msk.bf16.vlgmr.msra.gmra.mrb[64].mxu0 %vm973_vm2, %v2546_v30  ;;  %v7125_v30 = vld [vmem:[%s8138_s0 + $0x8] sm:$0xff] }
 0xd74   : > { %v2589_v34 = vpop.f32.mrb[64].mxu1 }
 0xd75   : > { %v6391_v35 = vpop.f32.mrb[65].mxu1 }
 0xd76   : > { %v2592_v4 = vpop.f32.mrb[66].mxu1 }
 0xd77   : > { %v6392_v8 = vpop.f32.mrb[67].mxu1  ;;  %v7126_v4 = vld [vmem:[%s8138_s0 + $0x18] sm:$0xff]  ;;  %s9159_s0 = sld [smem:[#allocation43_spill]] }
 0xda2   : > { %v2685_v37 = vpop.f32.mrb[68].mxu1 }
 0xda3   : > { %v6403_v38 = vpop.f32.mrb[69].mxu1 }
 0xda4   : > { %v2688_v39 = vpop.f32.mrb[70].mxu1 }
 0xda5   : > { %v2637_v40 = vpop.f32.mrb[60].mxu0  ;;  %v6404_v41 = vpop.f32.mrb[71].mxu1 }
 0xda6   : > { %v6895_v42 = vpack.i.bf16 %v2637_v40, %v2589_v34  ;;  %v6397_v43 = vpop.f32.mrb[61].mxu0 }
 0xda7   : > { %v2640_v44 = vpop.f32.mrb[62].mxu0 }
 0xda8   : > { %6896 = vrot.lane.b32.xlu0 %v6895_v42, %s7644_s23  ;;  %v6398_v45 = vpop.f32.mrb[63].mxu0 }
 0xdde   : > { %v2733_v47 = vpop.f32.mrb[64].mxu0 }
 0xddf   : > { %v6900_v48 = vpack.i.bf16 %v2733_v47, %v2685_v37  ;;  %v6409_v49 = vpop.f32.mrb[65].mxu0 }
 0xde0   : > { %v2736_v50 = vpop.f32.mrb[66].mxu0 }
 0xde1   : > { %6901 = vrot.lane.b32.xlu1 %v6900_v48, %s7644_s23  ;;  %v6410_v51 = vpop.f32.mrb[67].mxu0 }
 0xe1a   : > { %v6897_v1 = vpop.permute.xlu0 %6896 }
 0xe1b   : > { %v6899_v7 = vunpack.i.h.bf16 %v6897_v1  ;;  %v6898_v25 = vunpack.i.l.bf16 %v6897_v1 }
 0xe1d   : > { %v2798_v52 = vsel %vm2796_vm5, %v2793_v10, %v6899_v7  ;;  %v2797_v58 = vsel %vm2796_vm5, %v2792_v9, %v6898_v25  ;;  %v6943_v25 = vld [vmem:[#allocation19] sm:$0xff]   ;;  %v6944_v9 = vld [vmem:[#allocation19 + $0x8] sm:$0xff]  }
 0xe1e   : > { %v2805_v27 = vpack.c.bf16 %v2798_v52, %v2797_v58  ;;  %6419 = vmatprep.subr.bf16.mxu0 %v6943_v25  ;;  %v6945_v10 = vld [vmem:[#allocation22] sm:$0xff]   ;;  %v6946_v52 = vld [vmem:[#allocation22 + $0x8] sm:$0xff]  }
 0xe1f   : > { %6420 = vmatpush3.bf16.msra.mxu0 %v6943_v25  ;;  %6427 = vmatprep.subr.bf16.mxu1 %v6945_v10 }
 0xe20   : > { %6415 = vmatprep.mubr.msk.bf16.mxu1 %vm684_vm0, %v2805_v27  ;;  %6421 = vmatprep.subr.bf16.mxu0 %v6944_v9 }
 0xe23   : > { %6422 = vmatpush3.bf16.msra.mxu0 %v6944_v9 }
 0xe53   : > { %v6902_v12 = vpop.permute.xlu1 %6901 }
 0xe54   : > { %v6904_v63 = vunpack.i.h.bf16 %v6902_v12  ;;  %v6903_v32 = vunpack.i.l.bf16 %v6902_v12 }
 0xe56   : > { %v2800_v13 = vsel %vm2796_vm5, %v2795_v15, %v6904_v63  ;;  %v2799_v16 = vsel %vm2796_vm5, %v2794_v33, %v6903_v32  ;;  %v5929_v33 = vld [vmem:[#allocation16] ss:$0 sm:$0xff] }
 0xe57   : > { %v2806_v19 = vpack.c.bf16 %v2800_v13, %v2799_v16 }
 0xe59   : > { %6416 = vmatmul.mubr.msk.bf16.vlgmr.msra.gmra.mrb[72].mxu1 %vm684_vm0, %v2806_v19 }
 0xe5a   : > { %6428 = vmatpush3.bf16.msra.mxu1 %v6945_v10 }
 0xe5b   : > { %6429 = vmatprep.subr.bf16.mxu1 %v6946_v52 }
 0xe5e   : > { %6430 = vmatpush3.bf16.msra.mxu1 %v6946_v52 }
 0xf2c   : > { %v6417_v20 = vpop.f32.mrb[72].mxu1 }
 0xf2d   : > { %v2859_v26 = vpop.f32.mrb[73].mxu1  ;;  %v2876_v62 = vadd.f32 %v7123_v17, %v6417_v20 }
 0xf2e   : > { %v2874_v22 = vadd.f32 %v7124_v18, %v2859_v26  ;;  %v6418_v21 = vpop.f32.mrb[74].mxu1 }
 0xf2f   : > { %v2862_v28 = vpop.f32.mrb[75].mxu1  ;;  %v8562_v35 = vadd.f32 %v5928_v23, %v2876_v62  ;;  %v2877_v8 = vadd.f32 %v7126_v4, %v6418_v21 }
 0xf30   : > { %v8559_v29 = vadd.f32 %v5928_v23, %v2874_v22  ;;  %v2875_v34 = vadd.f32 %v7125_v30, %v2862_v28 }
 0xf31   : > { %v8571_v39 = vadd.f32 %v5928_v23, %v2877_v8  ;;  %v2897_v40 = vsel %vm684_vm0, %v8562_v35, 0.0 }
 0xf32   : > { %v8565_v36 = vadd.f32 %v5928_v23, %v2875_v34  ;;  %v2891_v37 = vsel %vm684_vm0, %v8559_v29, 0.0  ;;  %v5930_v23 = vld [vmem:[#allocation17] ss:$0 sm:$0xff] }
 0xf33   : > { %2892 = vadd.xlane.f32.xlu0 %v2891_v37  ;;  %v2900_v41 = vsel %vm684_vm0, %v8571_v39, 0.0 }
 0xf34   : > { %v2894_v38 = vsel %vm684_vm0, %v8565_v36, 0.0 }
 0xf35   : > { %2895 = vadd.xlane.f32.xlu1 %v2894_v38  ;;  %v6947_v38 = vld [vmem:[#allocation22 + $0x10] sm:$0xff]  }
 0xf36   : > { %6431 = vmatprep.subr.bf16.mxu1 %v6947_v38 }
 0xf37   : > { %2898 = vadd.xlane.f32.xlu0 %v2897_v40  ;;  %6432 = vmatpush3.bf16.msra.mxu1 %v6947_v38  ;;  %v6948_v40 = vld [vmem:[#allocation22 + $0x18] sm:$0xff]  }
 0xf38   : > { %6433 = vmatprep.subr.bf16.mxu1 %v6948_v40 }
 0xf3b   : > { %2901 = vadd.xlane.f32.xlu0 %v2900_v41  ;;  %6434 = vmatpush3.bf16.msra.mxu1 %v6948_v40  ;;  %v5931_v41 = vld [vmem:[#allocation20] ss:$0 sm:$0xff] }
 0xfc0   : > { %v2893_v42 = vpop.xlane.xlu0 %2892 }
 0xfc1   : > { %v2903_v43 = vmul.f32 0.03125, %v2893_v42 }
 0xfc2   : > { %v2896_v44 = vpop.xlane.xlu1 %2895 }
 0xfc3   : > { %v2907_v45 = vsub.f32 %v8559_v29, %v2903_v43  ;;  %v2904_v46 = vmul.f32 0.03125, %v2896_v44 }
 0xfc4   : > { %v2899_v47 = vpop.xlane.xlu0 %2898 }
 0xfc5   : > { %v2908_v48 = vsub.f32 %v8565_v36, %v2904_v46  ;;  %v2905_v49 = vmul.f32 0.03125, %v2899_v47  ;;  %v2911_v50 = vmul.f32 %v2907_v45, %v2907_v45 }
 0xfc7   : > { %v2909_v51 = vsub.f32 %v8562_v35, %v2905_v49  ;;  %v2915_v53 = vsel %vm684_vm0, %v2911_v50, 0.0  ;;  %v2912_v55 = vmul.f32 %v2908_v48, %v2908_v48 }
 0xfc8   : > { %2916 = vadd.xlane.f32.xlu0 %v2915_v53  ;;  %v2902_v56 = vpop.xlane.xlu0 %2901 }
 0xfc9   : > { %v2906_v60 = vmul.f32 0.03125, %v2902_v56  ;;  %v2918_v61 = vsel %vm684_vm0, %v2912_v55, 0.0  ;;  %v2913_v0 = vmul.f32 %v2909_v51, %v2909_v51 }
 0xfca   : > { %2919 = vadd.xlane.f32.xlu1 %v2918_v61 }
 0xfcb   : > { %v2910_v1 = vsub.f32 %v8571_v39, %v2906_v60  ;;  %v2921_v5 = vsel %vm684_vm0, %v2913_v0, 0.0  ;;  %v5942_v0 = vld [vmem:[#allocation23] ss:$0 sm:$0xff] }
 0xfcc   : > { %2922 = vadd.xlane.f32.xlu0 %v2921_v5 }
 0xfcd   : > { %v2914_v6 = vmul.f32 %v2910_v1, %v2910_v1 }
 0xfcf   : > { %v2924_v7 = vsel %vm684_vm0, %v2914_v6, 0.0 }
 0xfd0   : > { %2925 = vadd.xlane.f32.xlu1 %v2924_v7 }
0x1055   : > { %v2917_v58 = vpop.xlane.xlu0 %2916 }
0x1056   : > { %v2927_v27 = vmul.f32 0.03125, %v2917_v58 }
0x1057   : > { %v2920_v24 = vpop.xlane.xlu1 %2919 }
0x1058   : > { %v2931_v59 = vadd.f32 1e-05, %v2927_v27  ;;  %v2928_v3 = vmul.f32 0.03125, %v2920_v24 }
0x1059   : > { %v2923_v57 = vpop.xlane.xlu0 %2922 }
0x105a   : > { %7035 = vrsqrt.f32 %v2931_v59  ;;  %v2932_v11 = vadd.f32 1e-05, %v2928_v3  ;;  %v2929_v54 = vmul.f32 0.03125, %v2923_v57 }
0x105c   : > { %7037 = vrsqrt.f32 %v2932_v11  ;;  %v2933_v12 = vadd.f32 1e-05, %v2929_v54 }
0x105d   : > { %v2926_v14 = vpop.xlane.xlu1 %2925 }
0x105e   : > { %7039 = vrsqrt.f32 %v2933_v12  ;;  %v2930_v31 = vmul.f32 0.03125, %v2926_v14 }
0x1060   : > { %v2934_v63 = vadd.f32 1e-05, %v2930_v31 }
0x1062   : > { %7041 = vrsqrt.f32 %v2934_v63 }
0x1064   : > { %v7036_v32 = vpop.eup %7035 }
0x1065   : > { %v2939_v15 = vmul.f32 %v7036_v32, %v2907_v45 }
0x1066   : > { %v7038_v13 = vpop.eup %7037 }
0x1067   : > { %v2940_v16 = vmul.f32 %v7038_v13, %v2908_v48  ;;  %v2949_v19 = vmul.f32 %v5929_v33, %v2939_v15 }
0x1068   : > { %v7040_v20 = vpop.eup %7039 }
0x1069   : > { %v2941_v26 = vmul.f32 %v7040_v20, %v2909_v51  ;;  %v2950_v17 = vmul.f32 %v5929_v33, %v2940_v16  ;;  %v2959_v62 = vadd.f32 %v5930_v23, %v2949_v19 }
0x106b   : > { %v2960_v18 = vadd.f32 %v5930_v23, %v2950_v17  ;;  %v2951_v21 = vmul.f32 %v5929_v33, %v2941_v26 }
0x106c   : > { %v7042_v22 = vpop.eup %7041 }
0x106d   : > { %v2942_v28 = vmul.f32 %v7042_v22, %v2910_v1  ;;  %v2967_v30 = vpack.c.bf16 %v2960_v18, %v2959_v62  ;;  %v2961_v4 = vadd.f32 %v5930_v23, %v2951_v21  ;;  %v6949_v18 = vld [vmem:[#allocation8 + $0x10] sm:$0xff]   ;;  %v6951_v21 = vld [vmem:[#allocation8 + $0x18] sm:$0xff]  }
0x106e   : > { %v6950_v22 = vld [vmem:[#allocation11 + $0x10] sm:$0xff]   ;;  %6439 = vmatprep.subr.bf16.mxu0 %v6949_v18 }
0x106f   : > { %v2952_v34 = vmul.f32 %v5929_v33, %v2942_v28  ;;  %6423 = vmatprep.mubr.msk.bf16.mxu0 %vm684_vm0, %v2967_v30  ;;  %6455 = vmatprep.subr.bf16.mxu1 %v6950_v22  ;;  %v6952_v28 = vld [vmem:[#allocation11 + $0x18] sm:$0xff]   ;;  %v6953_v30 = vld [vmem:[#allocation10 + $0x10] sm:$0xff]  }
0x1071   : > { %v2962_v8 = vadd.f32 %v5930_v23, %v2952_v34 }
0x1073   : > { %v2968_v37 = vpack.c.bf16 %v2962_v8, %v2961_v4 }
0x1075   : > { %6424 = vmatmul.mubr.msk.bf16.vlgmr.msra.gmra.mrb[68].mxu0 %vm684_vm0, %v2968_v37 }
0x1076   : > { %6440 = vmatpush3.bf16.msra.mxu0 %v6949_v18 }
0x1077   : > { %6441 = vmatprep.subr.bf16.mxu0 %v6951_v21 }
0x107a   : > { %6442 = vmatpush3.bf16.msra.mxu0 %v6951_v21 }
0x107b   : > { %6447 = vmatprep.subr.bf16.mxu0 %v6953_v30 }
0x1148   : > { %v6425_v42 = vpop.f32.mrb[68].mxu0 }
0x1149   : > { %v3037_v43 = vadd.f32 %v6425_v42, %v5931_v41  ;;  %v3028_v44 = vpop.f32.mrb[69].mxu0 }
0x114a   : > { %v3029_v45 = vadd.f32 %v5931_v41, %v3028_v44  ;;  %v6426_v46 = vpop.f32.mrb[70].mxu0 }
0x114b   : > { %v3040_v47 = vadd.f32 %v6426_v46, %v5931_v41  ;;  %v3031_v48 = vpop.f32.mrb[71].mxu0  ;;  %v3045_v50 = vmax.f32 %v3037_v43, 0.0 }
0x114c   : > { %v3032_v49 = vadd.f32 %v5931_v41, %v3031_v48  ;;  %v3043_v53 = vmax.f32 %v3029_v45, 0.0  ;;  %v5943_v48 = vld [vmem:[#allocation5 + $0x1] ss:$0 sm:$0xff] }
0x114d   : > { %v3046_v51 = vmax.f32 %v3040_v47, 0.0 }
0x114e   : > { %v3044_v55 = vmax.f32 %v3032_v49, 0.0 }
0x114f   : > { %v3056_v56 = vpack.c.bf16 %v3046_v51, %v3045_v50 }
0x1150   : > { %v3055_v60 = vpack.c.bf16 %v3044_v55, %v3043_v53 }
0x1152   : > { %6435 = vmatprep.mubr.msk.bf16.mxu1 %vm3081_vm6, %v3055_v60 }
0x1153   : > { %6436 = vmatmul.mubr.msk.bf16.vlgmr.msra.gmra.mrb[76].mxu1 %vm3081_vm6, %v3056_v56  ;;  %v5944_v56 = vld [vmem:[#allocation7 + $0x1] ss:$0 sm:$0xff] }
0x1154   : > { %6456 = vmatpush3.bf16.msra.mxu1 %v6950_v22 }
0x1155   : > { %6457 = vmatprep.subr.bf16.mxu1 %v6952_v28 }
0x1158   : > { %6458 = vmatpush3.bf16.msra.mxu1 %v6952_v28 }
0x1159   : > { %6469 = vmatprep.subr.bf16.mxu1 %v7637_v2 }
0x1226   : > { %v6437_v61 = vpop.f32.mrb[76].mxu1 }
0x1227   : > { %v3122_v1 = vpop.f32.mrb[77].mxu1  ;;  %v3139_v5 = vadd.f32 %v6437_v61, %v8562_v35 }
0x1228   : > { %v3137_v6 = vadd.f32 %v3122_v1, %v8559_v29  ;;  %v6438_v7 = vpop.f32.mrb[78].mxu1 }
0x1229   : > { %v3125_v25 = vpop.f32.mrb[79].mxu1  ;;  %v3140_v10 = vadd.f32 %v6438_v7, %v8571_v39  ;;  %v8595_v58 = vadd.f32 %v5942_v0, %v3139_v5 }
0x122a   : > { %v8591_v9 = vadd.f32 %v5942_v0, %v3137_v6  ;;  %v3138_v52 = vadd.f32 %v3125_v25, %v8565_v36 }
0x122b   : > { %v8601_v59 = vadd.f32 %v5942_v0, %v3140_v10  ;;  %v3162_v35 = vsel %vm684_vm0, %v8595_v58, 0.0 }
0x122c   : > { %v8597_v27 = vadd.f32 %v5942_v0, %v3138_v52  ;;  %v3156_v24 = vsel %vm684_vm0, %v8591_v9, 0.0 }
0x122d   : > { %3157 = vadd.xlane.f32.xlu0 %v3156_v24  ;;  %v3165_v36 = vsel %vm684_vm0, %v8601_v59, 0.0 }
0x122e   : > { %v3159_v29 = vsel %vm684_vm0, %v8597_v27, 0.0 }
0x122f   : > { %3160 = vadd.xlane.f32.xlu1 %v3159_v29 }
0x1231   : > { %3163 = vadd.xlane.f32.xlu0 %v3162_v35  ;;  %v6954_v35 = vld [vmem:[#allocation10 + $0x18] sm:$0xff]  }
0x1233   : > { %3166 = vadd.xlane.f32.xlu1 %v3165_v36 }
0x12ba   : > { %v3158_v39 = vpop.xlane.xlu0 %3157 }
0x12bb   : > { %v3168_v3 = vmul.f32 0.03125, %v3158_v39 }
0x12bc   : > { %v3161_v57 = vpop.xlane.xlu1 %3160 }
0x12bd   : > { %v3172_v11 = vsub.f32 %v8591_v9, %v3168_v3  ;;  %v3169_v54 = vmul.f32 0.03125, %v3161_v57 }
0x12be   : > { %v3164_v12 = vpop.xlane.xlu0 %3163 }
0x12bf   : > { %v3173_v14 = vsub.f32 %v8597_v27, %v3169_v54  ;;  %v3170_v31 = vmul.f32 0.03125, %v3164_v12  ;;  %v3176_v63 = vmul.f32 %v3172_v11, %v3172_v11 }
0x12c0   : > { %v3167_v32 = vpop.xlane.xlu1 %3166 }
0x12c1   : > { %v3174_v33 = vsub.f32 %v8595_v58, %v3170_v31  ;;  %v3171_v15 = vmul.f32 0.03125, %v3167_v32  ;;  %v3180_v13 = vsel %vm684_vm0, %v3176_v63, 0.0  ;;  %v3177_v16 = vmul.f32 %v3173_v14, %v3173_v14 }
0x12c2   : > { %3181 = vadd.xlane.f32.xlu0 %v3180_v13 }
0x12c3   : > { %v3175_v19 = vsub.f32 %v8601_v59, %v3171_v15  ;;  %v3183_v20 = vsel %vm684_vm0, %v3177_v16, 0.0  ;;  %v3178_v23 = vmul.f32 %v3174_v33, %v3174_v33 }
0x12c4   : > { %3184 = vadd.xlane.f32.xlu1 %v3183_v20 }
0x12c5   : > { %v3186_v26 = vsel %vm684_vm0, %v3178_v23, 0.0  ;;  %v3179_v17 = vmul.f32 %v3175_v19, %v3175_v19 }
0x12c6   : > { %3187 = vadd.xlane.f32.xlu0 %v3186_v26 }
0x12c7   : > { %v3189_v62 = vsel %vm684_vm0, %v3179_v17, 0.0 }
0x12c8   : > { %3190 = vadd.xlane.f32.xlu1 %v3189_v62 }
0x134f   : > { %v3182_v34 = vpop.xlane.xlu0 %3181 }
0x1350   : > { %v3192_v4 = vmul.f32 0.03125, %v3182_v34 }
0x1351   : > { %v3185_v8 = vpop.xlane.xlu1 %3184 }
0x1352   : > { %v3196_v37 = vadd.f32 1e-05, %v3192_v4  ;;  %v3193_v38 = vmul.f32 0.03125, %v3185_v8 }
0x1353   : > { %v3188_v40 = vpop.xlane.xlu0 %3187 }
0x1354   : > { %7043 = vrsqrt.f32 %v3196_v37  ;;  %v3197_v41 = vadd.f32 1e-05, %v3193_v38  ;;  %v3194_v42 = vmul.f32 0.03125, %v3188_v40 }
0x1355   : > { %v3191_v43 = vpop.xlane.xlu1 %3190 }
0x1356   : > { %7045 = vrsqrt.f32 %v3197_v41  ;;  %v3198_v44 = vadd.f32 1e-05, %v3194_v42  ;;  %v3195_v45 = vmul.f32 0.03125, %v3191_v43 }
0x1358   : > { %7047 = vrsqrt.f32 %v3198_v44  ;;  %v3199_v46 = vadd.f32 1e-05, %v3195_v45 }
0x135a   : > { %7049 = vrsqrt.f32 %v3199_v46 }
0x135e   : > { %v7044_v47 = vpop.eup %7043 }
0x135f   : > { %v3204_v49 = vmul.f32 %v7044_v47, %v3172_v11 }
0x1360   : > { %v7046_v50 = vpop.eup %7045 }
0x1361   : > { %v3205_v51 = vmul.f32 %v7046_v50, %v3173_v14  ;;  %v3214_v53 = vmul.f32 %v5943_v48, %v3204_v49 }
0x1362   : > { %v7048_v55 = vpop.eup %7047 }
0x1363   : > { %v3206_v60 = vmul.f32 %v7048_v55, %v3174_v33  ;;  %v3215_v61 = vmul.f32 %v5943_v48, %v3205_v51  ;;  %v3224_v6 = vadd.f32 %v5944_v56, %v3214_v53 }
0x1364   : > { %v7050_v0 = vpop.eup %7049 }
0x1365   : > { %v3216_v1 = vmul.f32 %v5943_v48, %v3206_v60  ;;  %v3207_v5 = vmul.f32 %v7050_v0, %v3175_v19  ;;  %v3225_v7 = vadd.f32 %v5944_v56, %v3215_v61 }
0x1367   : > { %v3217_v25 = vmul.f32 %v5943_v48, %v3207_v5  ;;  %v3233_v10 = vpack.c.bf16 %v3225_v7, %v3224_v6  ;;  %v3226_v52 = vadd.f32 %v5944_v56, %v3216_v1 }
0x1369   : > { %6443 = vmatprep.mubr.msk.bf16.mxu0 %vm684_vm0, %v3233_v10  ;;  %6459 = vmatprep.mubr.msk.bf16.mxu1 %vm684_vm0, %v3233_v10  ;;  %v3227_v24 = vadd.f32 %v5944_v56, %v3217_v25 }
0x136b   : > { %v3234_v29 = vpack.c.bf16 %v3227_v24, %v3226_v52 }
0x136d   : > { %6444 = vmatmul.mubr.msk.bf16.vlgmr.msra.gmra.mrb[72].mxu0 %vm684_vm0, %v3234_v29  ;;  %6460 = vmatmul.mubr.msk.bf16.vlgmr.msra.gmra.mrb[80].mxu1 %vm684_vm0, %v3234_v29 }
0x136e   : > { %6448 = vmatpush3.bf16.msra.mxu0 %v6953_v30  ;;  %6451 = vmatprep.mubr.msk.bf16.mxu0 %vm684_vm0, %v3233_v10 }
0x136f   : > { %6449 = vmatprep.subr.bf16.mxu0 %v6954_v35  ;;  %6471 = vmatprep.mubr.msk.bf16.mxu1 %vm7638_vm1, %v7637_v2 }
0x1372   : > { %6450 = vmatpush3.bf16.msra.mxu0 %v6954_v35 }
0x1373   : > { %6463 = vmatprep.subr.bf16.mxu0 %v7637_v2 }
0x1375   : > { %6452 = vmatmul.mubr.msk.bf16.vlgmr.msra.gmra.mrb[76].mxu0 %vm684_vm0, %v3234_v29 }
0x1376   : > { %6465 = vmatprep.mubr.msk.bf16.mxu0 %vm7638_vm1, %v7637_v2 }
0x1440   : > { %v6445_v36 = vpop.f32.mrb[72].mxu0  ;;  %v8629_v39 = vpop.f32.mrb[80].mxu1 }
0x1441   : > { %v3287_v3 = vpop.f32.mrb[73].mxu0  ;;  %v3419_v57 = vpop.f32.mrb[81].mxu1  ;;  %v8667_v21 = vpack.c.bf16 %v6445_v36, %v6445_v36 }
0x1442   : > { %v6446_v11 = vpop.f32.mrb[74].mxu0  ;;  %v8631_v54 = vpop.f32.mrb[82].mxu1  ;;  %v8645_v23 = vpack.c.bf16 %v3287_v3, %v3287_v3  ;;  %v8664_v22 = vpack.c.bf16 %v3419_v57, %v3419_v57 }
0x1443   : > { %v3290_v12 = vpop.f32.mrb[75].mxu0  ;;  %v3422_v14 = vpop.f32.mrb[83].mxu1  ;;  %v8671_v30 = vpack.c.bf16 %v6446_v11, %v6446_v11 }
0x1444   : > { %v8649_v17 = vpack.c.bf16 %v3290_v12, %v3290_v12  ;;  %v8669_v28 = vpack.c.bf16 %v3422_v14, %v3422_v14  ;;  %v3686_v34 = vsel %vm1213_vm3, %v8664_v22, 0 }
0x1446   : > { %v3732_v4 = vsel %vm1213_vm3, %v8669_v28, 0 }
0x1448   : > { %v6453_v31 = vpop.f32.mrb[76].mxu0 }
0x1449   : > { %v3353_v63 = vpop.f32.mrb[77].mxu0  ;;  %v8642_v20 = vpack.c.bf16 %v6453_v31, %v6453_v31 }
0x144a   : > { %v8633_v32 = vpack.c.bf16 %v3353_v63, %v3353_v63  ;;  %v6454_v33 = vpop.f32.mrb[78].mxu0 }
0x144b   : > { %v3356_v15 = vpop.f32.mrb[79].mxu0  ;;  %v8647_v26 = vpack.c.bf16 %v6454_v33, %v6454_v33  ;;  %v3542_v62 = vsel %vm973_vm2, %v8642_v20, 0 }
0x144c   : > { %v8635_v13 = vpack.c.bf16 %v3356_v15, %v3356_v15  ;;  %v3450_v16 = vsel %vm973_vm2, %v8633_v32, 0 }
0x144d   : > { %6464 = vmatpush3.bf16.xpose.msra.mxu0 %v3450_v16  ;;  %v3588_v18 = vsel %vm973_vm2, %v8647_v26, 0 }
0x144e   : > { %v3496_v19 = vsel %vm973_vm2, %v8635_v13, 0  ;;  %6475 = vmatprep.subr.bf16.mxu0 %v7637_v2 }
0x144f   : > { %6470 = vmatpush3.bf16.xpose.msra.mxu1 %v3496_v19 }
0x1450   : > { %6481 = vmatprep.subr.bf16.mxu1 %v7637_v2 }
0x1454   : > { %6466 = vmatmul.mubr.msk.bf16.vlgmr.msra.gmra.mrb[80].mxu0 %vm973_vm2, %v8645_v23 }
0x1455   : > { %6476 = vmatpush3.bf16.xpose.msra.mxu0 %v3542_v62  ;;  %6477 = vmatprep.mubr.msk.bf16.mxu0 %vm7638_vm1, %v7637_v2 }
0x1456   : > { %6472 = vmatmul.mubr.msk.bf16.vlgmr.msra.gmra.mrb[84].mxu1 %vm973_vm2, %v8649_v17  ;;  %6487 = vmatprep.subr.bf16.mxu0 %v7637_v2 }
0x1457   : > { %6482 = vmatpush3.bf16.xpose.msra.mxu1 %v3588_v18  ;;  %6483 = vmatprep.mubr.msk.bf16.mxu1 %vm7638_vm1, %v7637_v2 }
0x1458   : > { %6493 = vmatprep.subr.bf16.mxu1 %v7637_v2 }
0x145c   : > { %6478 = vmatmul.mubr.msk.bf16.vlgmr.msra.gmra.mrb[84].mxu0 %vm973_vm2, %v8667_v21 }
0x145d   : > { %6488 = vmatpush3.bf16.msra.mxu0 %v3686_v34  ;;  %6489 = vmatprep.mubr.msk.bf16.mxu0 %vm7638_vm1, %v7637_v2 }
0x145e   : > { %6484 = vmatmul.mubr.msk.bf16.vlgmr.msra.gmra.mrb[88].mxu1 %vm973_vm2, %v8671_v30  ;;  %6499 = vmatprep.subr.bf16.mxu0 %v7637_v2 }
0x145f   : > { %6494 = vmatpush3.bf16.msra.mxu1 %v3732_v4  ;;  %6495 = vmatprep.mubr.msk.bf16.mxu1 %vm7638_vm1, %v7637_v2 }
0x1460   : > { %6505 = vmatprep.subr.bf16.mxu1 %v7637_v2 }
0x1527   : > { %v3486_v8 = vpop.f32.mrb[80].mxu0 }
0x1528   : > { %v3630_v37 = vmul.f32 0.35355338, %v3486_v8  ;;  %v6467_v38 = vpop.f32.mrb[81].mxu0 }
0x1529   : > { %v3489_v40 = vpop.f32.mrb[82].mxu0  ;;  %v3532_v41 = vpop.f32.mrb[84].mxu1 }
0x152a   : > { %v3631_v42 = vmul.f32 0.35355338, %v3532_v41  ;;  %v6468_v43 = vpop.f32.mrb[83].mxu0  ;;  %v6473_v44 = vpop.f32.mrb[85].mxu1  ;;  %v3634_v45 = vsel %vm973_vm2, %v3630_v37, -inf  ;;  %v8717_v41 = vpack.c.bf16 %v8631_v54, %v8631_v54 }
0x152b   : > { %3635 = vmax.xlane.f32.xlu0 %v3634_v45  ;;  %v3535_v46 = vpop.f32.mrb[86].mxu1 }
0x152c   : > { %v6474_v47 = vpop.f32.mrb[87].mxu1  ;;  %v3637_v48 = vsel %vm973_vm2, %v3631_v42, -inf }
0x152d   : > { %3638 = vmax.xlane.f32.xlu1 %v3637_v48 }
0x152f   : > { %v3578_v49 = vpop.f32.mrb[84].mxu0 }
0x1530   : > { %v3632_v50 = vmul.f32 0.35355338, %v3578_v49  ;;  %v6479_v51 = vpop.f32.mrb[85].mxu0 }
0x1531   : > { %v3581_v53 = vpop.f32.mrb[86].mxu0  ;;  %v3624_v55 = vpop.f32.mrb[88].mxu1 }
0x1532   : > { %v3633_v56 = vmul.f32 0.35355338, %v3624_v55  ;;  %v6480_v60 = vpop.f32.mrb[87].mxu0  ;;  %v6485_v61 = vpop.f32.mrb[89].mxu1  ;;  %v3640_v0 = vsel %vm973_vm2, %v3632_v50, -inf }
0x1533   : > { %3641 = vmax.xlane.f32.xlu0 %v3640_v0  ;;  %v3627_v1 = vpop.f32.mrb[90].mxu1 }
0x1534   : > { %v6486_v5 = vpop.f32.mrb[91].mxu1  ;;  %v3643_v6 = vsel %vm973_vm2, %v3633_v56, -inf }
0x1535   : > { %3644 = vmax.xlane.f32.xlu1 %v3643_v6 }
0x15b8   : > { %v3636_v7 = vpop.xlane.xlu0 %3635 }
0x15b9   : > { %v3646_v25 = vsub.f32 %v3630_v37, %v3636_v7  ;;  %v8713_v37 = vpack.c.bf16 %v8629_v39, %v8629_v39  ;;  %v3824_v39 = vsel %vm1213_vm3, %v8717_v41, 0 }
0x15ba   : > { %v3639_v10 = vpop.xlane.xlu1 %3638 }
0x15bb   : > { %v3650_v52 = vmul.f32 1.442695, %v3646_v25  ;;  %v3647_v24 = vsub.f32 %v3631_v42, %v3639_v10  ;;  %v3778_v44 = vsel %vm1213_vm3, %v8713_v37, 0 }
0x15bd   : > { %7051 = vpow2.f32 %v3650_v52  ;;  %v3652_v29 = vmul.f32 1.442695, %v3647_v24 }
0x15bf   : > { %7053 = vpow2.f32 %v3652_v29 }
0x15c0   : > { %v3642_v35 = vpop.xlane.xlu0 %3641 }
0x15c1   : > { %v3648_v36 = vsub.f32 %v3632_v50, %v3642_v35 }
0x15c2   : > { %v3645_v33 = vpop.xlane.xlu1 %3644 }
0x15c3   : > { %v3654_v3 = vmul.f32 1.442695, %v3648_v36  ;;  %v3649_v15 = vsub.f32 %v3633_v56, %v3645_v33 }
0x15c5   : > { %7055 = vpow2.f32 %v3654_v3  ;;  %v3656_v16 = vmul.f32 1.442695, %v3649_v15 }
0x15c7   : > { %v7052_v57 = vpop.eup %7051  ;;  %7057 = vpow2.f32 %v3656_v16 }
0x15c8   : > { %v3658_v11 = vsel %vm973_vm2, %v7052_v57, 0.0 }
0x15c9   : > { %v7054_v12 = vpop.eup %7053  ;;  %3659 = vadd.xlane.f32.xlu0 %v3658_v11 }
0x15ca   : > { %v3661_v14 = vsel %vm973_vm2, %v7054_v12, 0.0 }
0x15cb   : > { %3662 = vadd.xlane.f32.xlu1 %v3661_v14 }
0x15cf   : > { %v7056_v31 = vpop.eup %7055 }
0x15d0   : > { %v3664_v63 = vsel %vm973_vm2, %v7056_v31, 0.0 }
0x15d1   : > { %3665 = vadd.xlane.f32.xlu0 %v3664_v63  ;;  %v7058_v19 = vpop.eup %7057 }
0x15d2   : > { %v3667_v62 = vsel %vm973_vm2, %v7058_v19, 0.0 }
0x15dc   : > { %3922 = vrot.lane.b32.xlu1 %v8635_v13, %s7639_s27 }
0x15e0   : > { %3867 = vrot.lane.b32.xlu1 %v8645_v23, %s7639_s27 }
0x15e7   : > { %3870 = vrot.lane.b32.xlu0 %v8633_v32, %s7639_s27 }
0x15eb   : > { %3974 = vrot.lane.b32.xlu0 %v8642_v20, %s7639_s27 }
0x15ef   : > { %3971 = vrot.lane.b32.xlu0 %v8667_v21, %s7639_s27 }
0x1604   : > { %3668 = vadd.xlane.f32.xlu1 %v3667_v62 }
0x1615   : > { %3919 = vrot.lane.b32.xlu1 %v8649_v17, %s7639_s27 }
0x1619   : > { %4026 = vrot.lane.b32.xlu1 %v8647_v26, %s7639_s27 }
0x161d   : > { %4023 = vrot.lane.b32.xlu1 %v8671_v30, %s7639_s27 }
0x1656   : > { %v3660_v18 = vpop.xlane.xlu0 %3659 }
0x1657   : > { %7059 = vrcp.f32 %v3660_v18 }
0x1658   : > { %v3663_v34 = vpop.xlane.xlu1 %3662 }
0x1659   : > { %7061 = vrcp.f32 %v3663_v34 }
0x165c   : > { %v3923_v50 = vpop.permute.xlu1 %3922 }
0x165d   : > { %v3928_v6 = vsel %vm973_vm2, %v3923_v50, 0 }
0x165e   : > { %v3666_v4 = vpop.xlane.xlu0 %3665 }
0x165f   : > { %7063 = vrcp.f32 %v3666_v4 }
0x1660   : > { %v3868_v53 = vpop.permute.xlu1 %3867 }
0x1661   : > { %v7060_v8 = vpop.eup %7059 }
0x1662   : > { %v3674_v38 = vmul.f32 %v7060_v8, %v7052_v57  ;;  %v3871_v47 = vpop.permute.xlu0 %3870 }
0x1663   : > { %v7062_v40 = vpop.eup %7061  ;;  %v3876_v49 = vsel %vm973_vm2, %v3871_v47, 0 }
0x1664   : > { %v3675_v42 = vmul.f32 %v7062_v40, %v7054_v12  ;;  %v3678_v43 = vpack.c.bf16 %v3674_v38, %v3674_v38 }
0x1666   : > { %6490 = vmatmul.mubr.msk.bf16.vlgmr.msra.gmra.mrb[88].mxu0 %vm973_vm2, %v3678_v43  ;;  %v3679_v45 = vpack.c.bf16 %v3675_v42, %v3675_v42  ;;  %v3975_v51 = vpop.permute.xlu0 %3974 }
0x1667   : > { %6500 = vmatpush3.bf16.msra.mxu0 %v3778_v44  ;;  %6501 = vmatprep.mubr.msk.bf16.mxu0 %vm7638_vm1, %v7637_v2  ;;  %v3980_v55 = vsel %vm973_vm2, %v3975_v51, 0 }
0x1668   : > { %6496 = vmatmul.mubr.msk.bf16.vlgmr.msra.gmra.mrb[92].mxu1 %vm973_vm2, %v3679_v45  ;;  %6511 = vmatprep.subr.bf16.mxu0 %v7637_v2 }
0x1669   : > { %v7064_v54 = vpop.eup %7063  ;;  %6506 = vmatpush3.bf16.msra.mxu1 %v3824_v39  ;;  %6507 = vmatprep.mubr.msk.bf16.mxu1 %vm7638_vm1, %v7637_v2 }
0x166a   : > { %v3676_v46 = vmul.f32 %v7064_v54, %v7056_v31  ;;  %6517 = vmatprep.subr.bf16.mxu1 %v7637_v2  ;;  %v3972_v56 = vpop.permute.xlu0 %3971 }
0x166c   : > { %v3680_v48 = vpack.c.bf16 %v3676_v46, %v3676_v46 }
0x166e   : > { %6502 = vmatmul.mubr.msk.bf16.vlgmr.msra.gmra.mrb[92].mxu0 %vm973_vm2, %v3680_v48 }
0x166f   : > { %6513 = vmatprep.mubr.msk.bf16.mxu0 %vm7638_vm1, %v7637_v2 }
0x1670   : > { %6512 = vmatpush3.bf16.xpose.msra.mxu0 %v3876_v49 }
0x1671   : > { %6523 = vmatprep.subr.bf16.mxu0 %v7637_v2 }
0x1677   : > { %6514 = vmatmul.mubr.msk.bf16.vlgmr.msra.gmra.mrb[96].mxu0 %vm973_vm2, %v3868_v53 }
0x1678   : > { %6524 = vmatpush3.bf16.xpose.msra.mxu0 %v3980_v55  ;;  %6525 = vmatprep.mubr.msk.bf16.mxu0 %vm7638_vm1, %v7637_v2 }
0x1679   : > { %6535 = vmatprep.subr.bf16.mxu0 %v7637_v2 }
0x167f   : > { %6526 = vmatmul.mubr.msk.bf16.vlgmr.msra.gmra.mrb[100].mxu0 %vm973_vm2, %v3972_v56 }
0x1680   : > { %6537 = vmatprep.mubr.msk.bf16.mxu0 %vm7638_vm1, %v7637_v2 }
0x1691   : > { %v3669_v60 = vpop.xlane.xlu1 %3668 }
0x1692   : > { %7065 = vrcp.f32 %v3669_v60 }
0x1695   : > { %v3920_v5 = vpop.permute.xlu1 %3919 }
0x1699   : > { %v4027_v7 = vpop.permute.xlu1 %4026 }
0x169a   : > { %v4032_v25 = vsel %vm973_vm2, %v4027_v7, 0 }
0x169c   : > { %v7066_v61 = vpop.eup %7065 }
0x169d   : > { %v3677_v0 = vmul.f32 %v7066_v61, %v7058_v19  ;;  %v4024_v10 = vpop.permute.xlu1 %4023 }
0x169f   : > { %v3681_v1 = vpack.c.bf16 %v3677_v0, %v3677_v0 }
0x16a1   : > { %6508 = vmatmul.mubr.msk.bf16.vlgmr.msra.gmra.mrb[96].mxu1 %vm973_vm2, %v3681_v1 }
0x16a2   : > { %6518 = vmatpush3.bf16.xpose.msra.mxu1 %v3928_v6  ;;  %6519 = vmatprep.mubr.msk.bf16.mxu1 %vm7638_vm1, %v7637_v2 }
0x16a3   : > { %6529 = vmatprep.subr.bf16.mxu1 %v7637_v2 }
0x16a9   : > { %6520 = vmatmul.mubr.msk.bf16.vlgmr.msra.gmra.mrb[100].mxu1 %vm973_vm2, %v3920_v5 }
0x16aa   : > { %6530 = vmatpush3.bf16.xpose.msra.mxu1 %v4032_v25  ;;  %6531 = vmatprep.mubr.msk.bf16.mxu1 %vm7638_vm1, %v7637_v2 }
0x16ab   : > { %6541 = vmatprep.subr.bf16.mxu1 %v7637_v2 }
0x16b1   : > { %6532 = vmatmul.mubr.msk.bf16.vlgmr.msra.gmra.mrb[104].mxu1 %vm973_vm2, %v4024_v10 }
0x16b2   : > { %6543 = vmatprep.mubr.msk.bf16.mxu1 %vm7638_vm1, %v7637_v2 }
0x1739   : > { %v8757_v52 = vpop.f32.mrb[88].mxu0 }
0x173a   : > { %v6491_v24 = vpop.f32.mrb[89].mxu0 }
0x173b   : > { %v3725_v29 = vpop.f32.mrb[90].mxu0  ;;  %v8759_v35 = vpop.f32.mrb[92].mxu1 }
0x173c   : > { %v6492_v36 = vpop.f32.mrb[91].mxu0  ;;  %v6497_v3 = vpop.f32.mrb[93].mxu1 }
0x173d   : > { %v3771_v57 = vpop.f32.mrb[94].mxu1 }
0x173e   : > { %v6498_v11 = vpop.f32.mrb[95].mxu1 }
0x1741   : > { %v8761_v12 = vpop.f32.mrb[92].mxu0 }
0x1742   : > { %v6503_v14 = vpop.f32.mrb[93].mxu0 }
0x1743   : > { %v3817_v31 = vpop.f32.mrb[94].mxu0 }
0x1744   : > { %v6504_v63 = vpop.f32.mrb[95].mxu0 }
0x174a   : > { %v3912_v33 = vpop.f32.mrb[96].mxu0 }
0x174b   : > { %v4074_v15 = vmul.f32 0.35355338, %v3912_v33  ;;  %v6515_v16 = vpop.f32.mrb[97].mxu0 }
0x174c   : > { %v3915_v19 = vpop.f32.mrb[98].mxu0 }
0x174d   : > { %v6516_v62 = vpop.f32.mrb[99].mxu0  ;;  %v4078_v18 = vsel %vm973_vm2, %v4074_v15, -inf }
0x174e   : > { %4079 = vmax.xlane.f32.xlu0 %v4078_v18 }
0x1752   : > { %v4016_v34 = vpop.f32.mrb[100].mxu0 }
0x1753   : > { %v4076_v4 = vmul.f32 0.35355338, %v4016_v34  ;;  %v6527_v8 = vpop.f32.mrb[101].mxu0 }
0x1754   : > { %v4019_v38 = vpop.f32.mrb[102].mxu0 }
0x1755   : > { %v6528_v40 = vpop.f32.mrb[103].mxu0  ;;  %v4084_v42 = vsel %vm973_vm2, %v4076_v4, -inf }
0x1756   : > { %4085 = vmax.xlane.f32.xlu0 %v4084_v42 }
0x1774   : > { %v8765_v43 = vpop.f32.mrb[96].mxu1 }
0x1775   : > { %v6509_v44 = vpop.f32.mrb[97].mxu1 }
0x1776   : > { %v3863_v45 = vpop.f32.mrb[98].mxu1 }
0x1777   : > { %v6510_v39 = vpop.f32.mrb[99].mxu1 }
0x177c   : > { %v3964_v54 = vpop.f32.mrb[100].mxu1 }
0x177d   : > { %v4075_v46 = vmul.f32 0.35355338, %v3964_v54  ;;  %v6521_v47 = vpop.f32.mrb[101].mxu1 }
0x177e   : > { %v3967_v48 = vpop.f32.mrb[102].mxu1 }
0x177f   : > { %v6522_v49 = vpop.f32.mrb[103].mxu1  ;;  %v4081_v50 = vsel %vm973_vm2, %v4075_v46, -inf }
0x1780   : > { %4082 = vmax.xlane.f32.xlu1 %v4081_v50 }
0x1784   : > { %v4068_v51 = vpop.f32.mrb[104].mxu1 }
0x1785   : > { %v4077_v53 = vmul.f32 0.35355338, %v4068_v51  ;;  %v6533_v55 = vpop.f32.mrb[105].mxu1 }
0x1786   : > { %v4071_v56 = vpop.f32.mrb[106].mxu1 }
0x1787   : > { %v6534_v60 = vpop.f32.mrb[107].mxu1  ;;  %v4087_v61 = vsel %vm973_vm2, %v4077_v53, -inf }
0x1788   : > { %4088 = vmax.xlane.f32.xlu0 %v4087_v61 }
0x1791   : > { %4176 = vrot.lane.b32.xlu1 %v8669_v28, %s7639_s27 }
0x1795   : > { %4225 = vrot.lane.b32.xlu1 %v8713_v37, %s7639_s27 }
0x1799   : > { %4274 = vrot.lane.b32.xlu1 %v8717_v41, %s7639_s27 }
0x17db   : > { %v4080_v0 = vpop.xlane.xlu0 %4079 }
0x17dc   : > { %v4090_v1 = vsub.f32 %v4074_v15, %v4080_v0 }
0x17de   : > { %v4094_v5 = vmul.f32 1.442695, %v4090_v1 }
0x17e0   : > { %7067 = vpow2.f32 %v4094_v5 }
0x17e3   : > { %v4086_v25 = vpop.xlane.xlu0 %4085 }
0x17e4   : > { %v4092_v10 = vsub.f32 %v4076_v4, %v4086_v25 }
0x17e6   : > { %v4098_v36 = vmul.f32 1.442695, %v4092_v10 }
0x17ea   : > { %v7068_v6 = vpop.eup %7067 }
0x17eb   : > { %v4102_v7 = vsel %vm973_vm2, %v7068_v6, 0.0 }
0x17ec   : > { %4103 = vadd.xlane.f32.xlu0 %v4102_v7 }
0x1802   : > { %4127 = vrot.lane.b32.xlu0 %v8664_v22, %s7639_s27  ;;  %s9033_s27 = scalar_lea.hbm %s9159_s0, %s6014_s18 }
0x180d   : > { %v4083_v24 = vpop.xlane.xlu1 %4082 }
0x180e   : > { %v4091_v29 = vsub.f32 %v4075_v46, %v4083_v24 }
0x1810   : > { %v4096_v3 = vmul.f32 1.442695, %v4091_v29 }
0x1811   : > { %v4177_v57 = vpop.permute.xlu1 %4176 }
0x1812   : > { %7069 = vpow2.f32 %v4096_v3  ;;  %v4182_v11 = vsel %vm1213_vm3, %v4177_v57, 0 }
0x1813   : > { %7071 = vpow2.f32 %v4098_v36  ;;  %6542 = vmatpush3.bf16.msra.mxu1 %v4182_v11 }
0x1814   : > { %6553 = vmatprep.subr.bf16.mxu1 %v7637_v2 }
0x1815   : > { %v4089_v15 = vpop.xlane.xlu0 %4088  ;;  %v4226_v42 = vpop.permute.xlu1 %4225 }
0x1816   : > { %v4093_v16 = vsub.f32 %v4077_v53, %v4089_v15  ;;  %v4231_v45 = vsel %vm1213_vm3, %v4226_v42, 0 }
0x1818   : > { %v4100_v19 = vmul.f32 1.442695, %v4093_v16 }
0x1819   : > { %v4275_v39 = vpop.permute.xlu1 %4274 }
0x181a   : > { %7073 = vpow2.f32 %v4100_v19  ;;  %v4280_v55 = vsel %vm1213_vm3, %v4275_v39, 0 }
0x181c   : > { %v7070_v14 = vpop.eup %7069 }
0x181d   : > { %v7072_v31 = vpop.eup %7071  ;;  %v4105_v63 = vsel %vm973_vm2, %v7070_v14, 0.0 }
0x181e   : > { %4106 = vadd.xlane.f32.xlu1 %v4105_v63  ;;  %v4108_v33 = vsel %vm973_vm2, %v7072_v31, 0.0 }
0x1821   : > { %4109 = vadd.xlane.f32.xlu0 %v4108_v33 }
0x1824   : > { %v7074_v62 = vpop.eup %7073 }
0x1825   : > { %v4111_v18 = vsel %vm973_vm2, %v7074_v62, 0.0 }
0x182f   : > { %4374 = vrot.lane.b32.xlu1 %v8635_v13, %s7640_s21 }
0x1837   : > { %4324 = vrot.lane.b32.xlu0 %v8633_v32, %s7640_s21 }
0x183b   : > { %4322 = vrot.lane.b32.xlu0 %v8645_v23, %s7640_s21 }
0x183f   : > { %4424 = vrot.lane.b32.xlu0 %v8642_v20, %s7640_s21 }
0x1843   : > { %4422 = vrot.lane.b32.xlu0 %v8667_v21, %s7640_s21 }
0x1853   : > { %4112 = vadd.xlane.f32.xlu1 %v4111_v18 }
0x1864   : > { %4372 = vrot.lane.b32.xlu1 %v8649_v17, %s7640_s21 }
0x1868   : > { %4474 = vrot.lane.b32.xlu1 %v8647_v26, %s7640_s21 }
0x186c   : > { %4472 = vrot.lane.b32.xlu1 %v8671_v30, %s7640_s21 }
0x1879   : > { %v4104_v34 = vpop.xlane.xlu0 %4103 }
0x187a   : > { %7075 = vrcp.f32 %v4104_v34 }
0x187d   : > { %v4128_v4 = vpop.permute.xlu0 %4127 }
0x187e   : > { %v4133_v8 = vsel %vm1213_vm3, %v4128_v4, 0 }
0x187f   : > { %6536 = vmatpush3.bf16.msra.mxu0 %v4133_v8 }
0x1880   : > { %6547 = vmatprep.subr.bf16.mxu0 %v7637_v2 }
0x1884   : > { %v7076_v38 = vpop.eup %7075 }
0x1885   : > { %v4118_v40 = vmul.f32 %v7076_v38, %v7068_v6 }
0x1887   : > { %v4122_v44 = vpack.c.bf16 %v4118_v40, %v4118_v40 }
0x1889   : > { %6538 = vmatmul.mubr.msk.bf16.vlgmr.msra.gmra.mrb[104].mxu0 %vm973_vm2, %v4122_v44 }
0x188a   : > { %6548 = vmatpush3.bf16.msra.mxu0 %v4231_v45  ;;  %6549 = vmatprep.mubr.msk.bf16.mxu0 %vm7638_vm1, %v7637_v2 }
0x188b   : > { %6559 = vmatprep.subr.bf16.mxu0 %v7637_v2 }
0x18ab   : > { %v4107_v54 = vpop.xlane.xlu1 %4106 }
0x18ac   : > { %7077 = vrcp.f32 %v4107_v54 }
0x18ae   : > { %v4110_v46 = vpop.xlane.xlu0 %4109 }
0x18af   : > { %7079 = vrcp.f32 %v4110_v46  ;;  %v4375_v6 = vpop.permute.xlu1 %4374 }
0x18b0   : > { %v4380_v36 = vsel %vm973_vm2, %v4375_v6, 0 }
0x18b2   : > { %v4325_v49 = vpop.permute.xlu0 %4324 }
0x18b3   : > { %v4330_v61 = vsel %vm973_vm2, %v4325_v49, 0 }
0x18b6   : > { %v7078_v47 = vpop.eup %7077  ;;  %v4323_v60 = vpop.permute.xlu0 %4322 }
0x18b7   : > { %v4119_v48 = vmul.f32 %v7078_v47, %v7070_v14 }
0x18b9   : > { %v7080_v50 = vpop.eup %7079  ;;  %v4123_v51 = vpack.c.bf16 %v4119_v48, %v4119_v48 }
0x18ba   : > { %v4120_v53 = vmul.f32 %v7080_v50, %v7072_v31  ;;  %v4425_v0 = vpop.permute.xlu0 %4424 }
0x18bb   : > { %6544 = vmatmul.mubr.msk.bf16.vlgmr.msra.gmra.mrb[108].mxu1 %vm973_vm2, %v4123_v51  ;;  %v4430_v1 = vsel %vm973_vm2, %v4425_v0, 0 }
0x18bc   : > { %6554 = vmatpush3.bf16.msra.mxu1 %v4280_v55  ;;  %v4124_v56 = vpack.c.bf16 %v4120_v53, %v4120_v53  ;;  %6555 = vmatprep.mubr.msk.bf16.mxu1 %vm7638_vm1, %v7637_v2 }
0x18bd   : > { %6565 = vmatprep.subr.bf16.mxu1 %v7637_v2 }
0x18be   : > { %6550 = vmatmul.mubr.msk.bf16.vlgmr.msra.gmra.mrb[108].mxu0 %vm973_vm2, %v4124_v56  ;;  %v4423_v5 = vpop.permute.xlu0 %4422 }
0x18bf   : > { %6560 = vmatpush3.bf16.xpose.msra.mxu0 %v4330_v61  ;;  %6561 = vmatprep.mubr.msk.bf16.mxu0 %vm7638_vm1, %v7637_v2 }
0x18c0   : > { %6571 = vmatprep.subr.bf16.mxu0 %v7637_v2 }
0x18c6   : > { %6562 = vmatmul.mubr.msk.bf16.vlgmr.msra.gmra.mrb[112].mxu0 %vm973_vm2, %v4323_v60 }
0x18c7   : > { %6572 = vmatpush3.bf16.xpose.msra.mxu0 %v4430_v1  ;;  %6573 = vmatprep.mubr.msk.bf16.mxu0 %vm7638_vm1, %v7637_v2 }
0x18c8   : > { %6583 = vmatprep.subr.bf16.mxu0 %v7637_v2 }
0x18ce   : > { %6574 = vmatmul.mubr.msk.bf16.vlgmr.msra.gmra.mrb[116].mxu0 %vm973_vm2, %v4423_v5 }
0x18cf   : > { %6585 = vmatprep.mubr.msk.bf16.mxu0 %vm7638_vm1, %v7637_v2 }
0x18e0   : > { %v4113_v7 = vpop.xlane.xlu1 %4112 }
0x18e1   : > { %7081 = vrcp.f32 %v4113_v7 }
0x18e4   : > { %v4373_v29 = vpop.permute.xlu1 %4372 }
0x18e8   : > { %v4475_v3 = vpop.permute.xlu1 %4474 }
0x18e9   : > { %v4480_v57 = vsel %vm973_vm2, %v4475_v3, 0 }
0x18eb   : > { %v7082_v25 = vpop.eup %7081 }
0x18ec   : > { %v4121_v10 = vmul.f32 %v7082_v25, %v7074_v62  ;;  %v4473_v11 = vpop.permute.xlu1 %4472 }
0x18ee   : > { %v4125_v24 = vpack.c.bf16 %v4121_v10, %v4121_v10 }
0x18f0   : > { %6556 = vmatmul.mubr.msk.bf16.vlgmr.msra.gmra.mrb[112].mxu1 %vm973_vm2, %v4125_v24 }
0x18f1   : > { %6566 = vmatpush3.bf16.xpose.msra.mxu1 %v4380_v36  ;;  %6567 = vmatprep.mubr.msk.bf16.mxu1 %vm7638_vm1, %v7637_v2 }
0x18f2   : > { %6577 = vmatprep.subr.bf16.mxu1 %v7637_v2 }
0x18f8   : > { %6568 = vmatmul.mubr.msk.bf16.vlgmr.msra.gmra.mrb[116].mxu1 %vm973_vm2, %v4373_v29 }
0x18f9   : > { %6578 = vmatpush3.bf16.xpose.msra.mxu1 %v4480_v57  ;;  %6579 = vmatprep.mubr.msk.bf16.mxu1 %vm7638_vm1, %v7637_v2 }
0x18fa   : > { %6589 = vmatprep.subr.bf16.mxu1 %v7637_v2 }
0x1900   : > { %6580 = vmatmul.mubr.msk.bf16.vlgmr.msra.gmra.mrb[120].mxu1 %vm973_vm2, %v4473_v11 }
0x1901   : > { %6591 = vmatprep.mubr.msk.bf16.mxu1 %vm7638_vm1, %v7637_v2 }
0x195c   : > { %v8837_v14 = vpop.f32.mrb[104].mxu0 }
0x195d   : > { %v6539_v31 = vpop.f32.mrb[105].mxu0 }
0x195e   : > { %v4172_v63 = vpop.f32.mrb[106].mxu0 }
0x195f   : > { %v6540_v33 = vpop.f32.mrb[107].mxu0 }
0x198e   : > { %v8839_v15 = vpop.f32.mrb[108].mxu1 }
0x198f   : > { %v6905_v16 = vpack.i.bf16 %v8839_v15, %v8837_v14  ;;  %v6545_v19 = vpop.f32.mrb[109].mxu1 }
0x1990   : > { %v4221_v62 = vpop.f32.mrb[110].mxu1 }
0x1991   : > { %v8843_v18 = vpop.f32.mrb[108].mxu0  ;;  %v6546_v34 = vpop.f32.mrb[111].mxu1 }
0x1992   : > { %v6551_v4 = vpop.f32.mrb[109].mxu0 }
0x1993   : > { %v4270_v8 = vpop.f32.mrb[110].mxu0 }
0x1994   : > { %v6552_v38 = vpop.f32.mrb[111].mxu0 }
0x1999   : > { %v4366_v40 = vpop.f32.mrb[112].mxu0 }
0x199a   : > { %v4522_v42 = vmul.f32 0.35355338, %v4366_v40  ;;  %v6563_v44 = vpop.f32.mrb[113].mxu0 }
0x199b   : > { %v4369_v45 = vpop.f32.mrb[114].mxu0 }
0x199c   : > { %v6564_v39 = vpop.f32.mrb[115].mxu0  ;;  %v4526_v54 = vsel %vm973_vm2, %v4522_v42, -inf }
0x199d   : > { %4527 = vmax.xlane.f32.xlu0 %v4526_v54 }
0x19a1   : > { %v4466_v46 = vpop.f32.mrb[116].mxu0 }
0x19a2   : > { %v4524_v47 = vmul.f32 0.35355338, %v4466_v46  ;;  %v6575_v48 = vpop.f32.mrb[117].mxu0 }
0x19a3   : > { %v4469_v49 = vpop.f32.mrb[118].mxu0 }
0x19a4   : > { %v6576_v50 = vpop.f32.mrb[119].mxu0  ;;  %v4532_v51 = vsel %vm973_vm2, %v4524_v47, -inf }
0x19a5   : > { %4533 = vmax.xlane.f32.xlu0 %v4532_v51 }
0x19c3   : > { %v8847_v53 = vpop.f32.mrb[112].mxu1 }
0x19c4   : > { %v6910_v55 = vpack.i.bf16 %v8847_v53, %v8843_v18  ;;  %v6557_v56 = vpop.f32.mrb[113].mxu1 }
0x19c5   : > { %v4319_v60 = vpop.f32.mrb[114].mxu1 }
0x19c6   : > { %v6558_v61 = vpop.f32.mrb[115].mxu1 }
0x19cb   : > { %v4416_v0 = vpop.f32.mrb[116].mxu1 }
0x19cc   : > { %v4523_v1 = vmul.f32 0.35355338, %v4416_v0  ;;  %v6569_v5 = vpop.f32.mrb[117].mxu1 }
0x19cd   : > { %v4419_v6 = vpop.f32.mrb[118].mxu1 }
0x19ce   : > { %v6570_v7 = vpop.f32.mrb[119].mxu1  ;;  %v4529_v25 = vsel %vm973_vm2, %v4523_v1, -inf }
0x19cf   : > { %4530 = vmax.xlane.f32.xlu1 %v4529_v25 }
0x19d3   : > { %v4516_v10 = vpop.f32.mrb[120].mxu1 }
0x19d4   : > { %v4525_v24 = vmul.f32 0.35355338, %v4516_v10  ;;  %v6581_v29 = vpop.f32.mrb[121].mxu1 }
0x19d5   : > { %v4519_v36 = vpop.f32.mrb[122].mxu1 }
0x19d6   : > { %v6582_v3 = vpop.f32.mrb[123].mxu1  ;;  %v4535_v57 = vsel %vm973_vm2, %v4525_v24, -inf }
0x19d7   : > { %4536 = vmax.xlane.f32.xlu0 %v4535_v57 }
0x19e0   : > { %4622 = vrot.lane.b32.xlu1 %v8669_v28, %s7640_s21 }
0x19e4   : > { %4670 = vrot.lane.b32.xlu1 %v8713_v37, %s7640_s21 }
0x19e8   : > { %4718 = vrot.lane.b32.xlu1 %v8717_v41, %s7640_s21 }
0x1a2a   : > { %v4528_v11 = vpop.xlane.xlu0 %4527 }
0x1a2b   : > { %v4538_v31 = vsub.f32 %v4522_v42, %v4528_v11 }
0x1a2d   : > { %v4542_v63 = vmul.f32 1.442695, %v4538_v31 }
0x1a2f   : > { %7083 = vpow2.f32 %v4542_v63 }
0x1a32   : > { %v4534_v62 = vpop.xlane.xlu0 %4533 }
0x1a33   : > { %v4540_v34 = vsub.f32 %v4524_v47, %v4534_v62 }
0x1a35   : > { %v4546_v38 = vmul.f32 1.442695, %v4540_v34 }
0x1a39   : > { %v7084_v33 = vpop.eup %7083 }
0x1a3a   : > { %v4550_v19 = vsel %vm973_vm2, %v7084_v33, 0.0 }
0x1a3b   : > { %4551 = vadd.xlane.f32.xlu0 %v4550_v19 }
0x1a51   : > { %4574 = vrot.lane.b32.xlu0 %v8664_v22, %s7640_s21  ;;  %s7521_s21 = scalar_lea.vmem %s9027_s24, 512 }
0x1a52   : > { %p7522_p6 = scmp.ne.s32.totalorder %s9027_s24, %s7521_s21 }
0x1a54   : > { %p7523_p4 = pnand %p7522_p6, %p9160_p9 }
0x1a56   : > { %p7524_p3 = pneg %p7523_p4 }
0x1a5c   : > { %v4531_v4 = vpop.xlane.xlu1 %4530 }
0x1a5d   : > { %v4539_v8 = vsub.f32 %v4523_v1, %v4531_v4 }
0x1a5f   : > { %v4544_v40 = vmul.f32 1.442695, %v4539_v8 }
0x1a60   : > { %v4623_v44 = vpop.permute.xlu1 %4622 }
0x1a61   : > { %7085 = vpow2.f32 %v4544_v40  ;;  %v4628_v45 = vsel %vm1213_vm3, %v4623_v44, 0 }
0x1a62   : > { %7087 = vpow2.f32 %v4546_v38  ;;  %6590 = vmatpush3.bf16.msra.mxu1 %v4628_v45 }
0x1a63   : > { %6601 = vmatprep.subr.bf16.mxu1 %v7637_v2 }
0x1a64   : > { %v4537_v47 = vpop.xlane.xlu0 %4536  ;;  %v4671_v56 = vpop.permute.xlu1 %4670 }
0x1a65   : > { %v4541_v48 = vsub.f32 %v4525_v24, %v4537_v47 }
0x1a67   : > { %v4548_v49 = vmul.f32 1.442695, %v4541_v48 }
0x1a69   : > { %7089 = vpow2.f32 %v4548_v49 }
0x1a6b   : > { %v7086_v42 = vpop.eup %7085 }
0x1a6c   : > { %v7088_v39 = vpop.eup %7087  ;;  %v4553_v54 = vsel %vm973_vm2, %v7086_v42, 0.0 }
0x1a6d   : > { %4554 = vadd.xlane.f32.xlu1 %v4553_v54  ;;  %v4556_v46 = vsel %vm973_vm2, %v7088_v39, 0.0 }
0x1a70   : > { %4557 = vadd.xlane.f32.xlu0 %v4556_v46 }
0x1a73   : > { %v7090_v50 = vpop.eup %7089 }
0x1a74   : > { %v4559_v51 = vsel %vm973_vm2, %v7090_v50, 0.0 }
0x1a7e   : > { %4818 = vrot.lane.b32.xlu1 %v8635_v13, %s7641_s3 }
0x1a86   : > { %4768 = vrot.lane.b32.xlu0 %v8633_v32, %s7641_s3 }
0x1a8a   : > { %4766 = vrot.lane.b32.xlu0 %v8645_v23, %s7641_s3 }
0x1a8e   : > { %4868 = vrot.lane.b32.xlu0 %v8642_v20, %s7641_s3 }
0x1a92   : > { %4866 = vrot.lane.b32.xlu0 %v8667_v21, %s7641_s3 }
0x1aa2   : > { %4560 = vadd.xlane.f32.xlu1 %v4559_v51 }
0x1ab3   : > { %4816 = vrot.lane.b32.xlu1 %v8649_v17, %s7641_s3  ;;  %v4676_v17 = vsel %vm1213_vm3, %v4671_v56, 0 }
0x1ab7   : > { %4918 = vrot.lane.b32.xlu1 %v8647_v26, %s7641_s3  ;;  %v4719_v26 = vpop.permute.xlu1 %4718 }
0x1ab8   : > { %v4724_v10 = vsel %vm1213_vm3, %v4719_v26, 0 }
0x1abb   : > { %4916 = vrot.lane.b32.xlu1 %v8671_v30, %s7641_s3 }
0x1ac8   : > { %v4552_v32 = vpop.xlane.xlu0 %4551 }
0x1ac9   : > { %7091 = vrcp.f32 %v4552_v32 }
0x1acc   : > { %v4575_v13 = vpop.permute.xlu0 %4574 }
0x1acd   : > { %v4580_v20 = vsel %vm1213_vm3, %v4575_v13, 0 }
0x1ace   : > { %6584 = vmatpush3.bf16.msra.mxu0 %v4580_v20 }
0x1acf   : > { %6595 = vmatprep.subr.bf16.mxu0 %v7637_v2 }
0x1ad3   : > { %v7092_v23 = vpop.eup %7091 }
0x1ad4   : > { %v4566_v21 = vmul.f32 %v7092_v23, %v7084_v33 }
0x1ad6   : > { %v4570_v60 = vpack.c.bf16 %v4566_v21, %v4566_v21 }
0x1ad8   : > { %6586 = vmatmul.mubr.msk.bf16.vlgmr.msra.gmra.mrb[120].mxu0 %vm973_vm2, %v4570_v60 }
0x1ad9   : > { %6596 = vmatpush3.bf16.msra.mxu0 %v4676_v17  ;;  %6597 = vmatprep.mubr.msk.bf16.mxu0 %vm7638_vm1, %v7637_v2 }
0x1ada   : > { %6607 = vmatprep.subr.bf16.mxu0 %v7637_v2 }
0x1afa   : > { %v4555_v30 = vpop.xlane.xlu1 %4554 }
0x1afb   : > { %7093 = vrcp.f32 %v4555_v30 }
0x1afd   : > { %v4558_v61 = vpop.xlane.xlu0 %4557 }
0x1afe   : > { %7095 = vrcp.f32 %v4558_v61  ;;  %v4819_v31 = vpop.permute.xlu1 %4818 }
0x1aff   : > { %v4824_v4 = vsel %vm973_vm2, %v4819_v31, 0 }
0x1b01   : > { %v4769_v5 = vpop.permute.xlu0 %4768 }
0x1b02   : > { %v4774_v36 = vsel %vm973_vm2, %v4769_v5, 0 }
0x1b05   : > { %v7094_v0 = vpop.eup %7093  ;;  %v4767_v29 = vpop.permute.xlu0 %4766 }
0x1b06   : > { %v4567_v1 = vmul.f32 %v7094_v0, %v7086_v42 }
0x1b08   : > { %v7096_v6 = vpop.eup %7095  ;;  %v4571_v7 = vpack.c.bf16 %v4567_v1, %v4567_v1 }
0x1b09   : > { %v4568_v25 = vmul.f32 %v7096_v6, %v7088_v39  ;;  %v4869_v3 = vpop.permute.xlu0 %4868 }
0x1b0a   : > { %6592 = vmatmul.mubr.msk.bf16.vlgmr.msra.gmra.mrb[124].mxu1 %vm973_vm2, %v4571_v7  ;;  %v4874_v57 = vsel %vm973_vm2, %v4869_v3, 0 }
0x1b0b   : > { %6602 = vmatpush3.bf16.msra.mxu1 %v4724_v10  ;;  %v4572_v24 = vpack.c.bf16 %v4568_v25, %v4568_v25  ;;  %6603 = vmatprep.mubr.msk.bf16.mxu1 %vm7638_vm1, %v7637_v2 }
0x1b0c   : > { %6613 = vmatprep.subr.bf16.mxu1 %v7637_v2 }
0x1b0d   : > { %6598 = vmatmul.mubr.msk.bf16.vlgmr.msra.gmra.mrb[124].mxu0 %vm973_vm2, %v4572_v24  ;;  %v4867_v11 = vpop.permute.xlu0 %4866 }
0x1b0e   : > { %6608 = vmatpush3.bf16.xpose.msra.mxu0 %v4774_v36  ;;  %6609 = vmatprep.mubr.msk.bf16.mxu0 %vm7638_vm1, %v7637_v2 }
0x1b0f   : > { %6619 = vmatprep.subr.bf16.mxu0 %v7637_v2 }
0x1b15   : > { %6610 = vmatmul.mubr.msk.bf16.vlgmr.msra.gmra.mrb[128].mxu0 %vm973_vm2, %v4767_v29 }
0x1b16   : > { %6620 = vmatpush3.bf16.xpose.msra.mxu0 %v4874_v57  ;;  %6621 = vmatprep.mubr.msk.bf16.mxu0 %vm7638_vm1, %v7637_v2 }
0x1b17   : > { %6631 = vmatprep.subr.bf16.mxu0 %v7637_v2 }
0x1b1d   : > { %6622 = vmatmul.mubr.msk.bf16.vlgmr.msra.gmra.mrb[132].mxu0 %vm973_vm2, %v4867_v11 }
0x1b1e   : > { %6633 = vmatprep.mubr.msk.bf16.mxu0 %vm7638_vm1, %v7637_v2 }
0x1b2f   : > { %v4561_v63 = vpop.xlane.xlu1 %4560 }
0x1b30   : > { %7097 = vrcp.f32 %v4561_v63 }
0x1b33   : > { %v4817_v34 = vpop.permute.xlu1 %4816 }
0x1b37   : > { %v4919_v8 = vpop.permute.xlu1 %4918 }
0x1b38   : > { %v4924_v38 = vsel %vm973_vm2, %v4919_v8, 0 }
0x1b3a   : > { %v7098_v33 = vpop.eup %7097 }
0x1b3b   : > { %v4569_v19 = vmul.f32 %v7098_v33, %v7090_v50  ;;  %v4917_v40 = vpop.permute.xlu1 %4916 }
0x1b3d   : > { %v4573_v62 = vpack.c.bf16 %v4569_v19, %v4569_v19 }
0x1b3f   : > { %6604 = vmatmul.mubr.msk.bf16.vlgmr.msra.gmra.mrb[128].mxu1 %vm973_vm2, %v4573_v62 }
0x1b40   : > { %6614 = vmatpush3.bf16.xpose.msra.mxu1 %v4824_v4  ;;  %6615 = vmatprep.mubr.msk.bf16.mxu1 %vm7638_vm1, %v7637_v2 }
0x1b41   : > { %6625 = vmatprep.subr.bf16.mxu1 %v7637_v2 }
0x1b47   : > { %6616 = vmatmul.mubr.msk.bf16.vlgmr.msra.gmra.mrb[132].mxu1 %vm973_vm2, %v4817_v34 }
0x1b48   : > { %6626 = vmatpush3.bf16.xpose.msra.mxu1 %v4924_v38  ;;  %6627 = vmatprep.mubr.msk.bf16.mxu1 %vm7638_vm1, %v7637_v2 }
0x1b49   : > { %6637 = vmatprep.subr.bf16.mxu1 %v7637_v2 }
0x1b4f   : > { %6628 = vmatmul.mubr.msk.bf16.vlgmr.msra.gmra.mrb[136].mxu1 %vm973_vm2, %v4917_v40 }
0x1b50   : > { %6639 = vmatprep.mubr.msk.bf16.mxu1 %vm7638_vm1, %v7637_v2 }
0x1bab   : > { %v8921_v44 = vpop.f32.mrb[120].mxu0 }
0x1bac   : > { %v6587_v45 = vpop.f32.mrb[121].mxu0 }
0x1bad   : > { %v4619_v42 = vpop.f32.mrb[122].mxu0 }
0x1bae   : > { %v6588_v39 = vpop.f32.mrb[123].mxu0 }
0x1bdd   : > { %v4664_v54 = vpop.f32.mrb[124].mxu1 }
0x1bde   : > { %v6915_v46 = vpack.i.bf16 %v4664_v54, %v8921_v44  ;;  %v6593_v47 = vpop.f32.mrb[125].mxu1 }
0x1bdf   : > { %v4667_v48 = vpop.f32.mrb[126].mxu1 }
0x1be0   : > { %v8924_v49 = vpop.f32.mrb[124].mxu0  ;;  %v6594_v50 = vpop.f32.mrb[127].mxu1 }
0x1be1   : > { %v6599_v51 = vpop.f32.mrb[125].mxu0 }
0x1be2   : > { %v4715_v32 = vpop.f32.mrb[126].mxu0 }
0x1be3   : > { %v6600_v13 = vpop.f32.mrb[127].mxu0 }
0x1be8   : > { %v4810_v20 = vpop.f32.mrb[128].mxu0 }
0x1be9   : > { %v4966_v23 = vmul.f32 0.35355338, %v4810_v20  ;;  %v6611_v21 = vpop.f32.mrb[129].mxu0 }
0x1bea   : > { %v4813_v56 = vpop.f32.mrb[130].mxu0 }
0x1beb   : > { %v6612_v60 = vpop.f32.mrb[131].mxu0  ;;  %v4970_v17 = vsel %vm973_vm2, %v4966_v23, -inf }
0x1bec   : > { %4971 = vmax.xlane.f32.xlu0 %v4970_v17 }
0x1bf0   : > { %v4910_v26 = vpop.f32.mrb[132].mxu0 }
0x1bf1   : > { %v4968_v30 = vmul.f32 0.35355338, %v4910_v26  ;;  %v6623_v61 = vpop.f32.mrb[133].mxu0 }
0x1bf2   : > { %v4913_v0 = vpop.f32.mrb[134].mxu0 }
0x1bf3   : > { %v6624_v1 = vpop.f32.mrb[135].mxu0  ;;  %v4976_v5 = vsel %vm973_vm2, %v4968_v30, -inf }
0x1bf4   : > { %4977 = vmax.xlane.f32.xlu0 %v4976_v5 }
0x1c12   : > { %v4760_v6 = vpop.f32.mrb[128].mxu1 }
0x1c13   : > { %v6920_v7 = vpack.i.bf16 %v4760_v6, %v8924_v49  ;;  %v6605_v25 = vpop.f32.mrb[129].mxu1 }
0x1c14   : > { %v4763_v10 = vpop.f32.mrb[130].mxu1 }
0x1c15   : > { %v6606_v24 = vpop.f32.mrb[131].mxu1 }
0x1c1a   : > { %v4860_v29 = vpop.f32.mrb[132].mxu1 }
0x1c1b   : > { %v4967_v36 = vmul.f32 0.35355338, %v4860_v29  ;;  %v6617_v3 = vpop.f32.mrb[133].mxu1 }
0x1c1c   : > { %v4863_v57 = vpop.f32.mrb[134].mxu1 }
0x1c1d   : > { %v6618_v11 = vpop.f32.mrb[135].mxu1  ;;  %v4973_v31 = vsel %vm973_vm2, %v4967_v36, -inf }
0x1c1e   : > { %4974 = vmax.xlane.f32.xlu1 %v4973_v31  ;;  %v6955_v31 = vld [vmem:[#allocation13 + $0x10] sm:$0xff]  }
0x1c22   : > { %v4960_v63 = vpop.f32.mrb[136].mxu1 }
0x1c23   : > { %v4969_v33 = vmul.f32 0.35355338, %v4960_v63  ;;  %v6629_v19 = vpop.f32.mrb[137].mxu1 }
0x1c24   : > { %v4963_v62 = vpop.f32.mrb[138].mxu1 }
0x1c25   : > { %v6630_v34 = vpop.f32.mrb[139].mxu1  ;;  %v4979_v4 = vsel %vm973_vm2, %v4969_v33, -inf }
0x1c26   : > { %4980 = vmax.xlane.f32.xlu0 %v4979_v4 }
0x1c79   : > { %v4972_v8 = vpop.xlane.xlu0 %4971 }
0x1c7a   : > { %v4982_v38 = vsub.f32 %v4966_v23, %v4972_v8 }
0x1c7c   : > { %v4986_v40 = vmul.f32 1.442695, %v4982_v38 }
0x1c7e   : > { %7099 = vpow2.f32 %v4986_v40  ;;  %v6956_v40 = vld [vmem:[#allocation13 + $0x18] sm:$0xff]  }
0x1c81   : > { %v4978_v44 = vpop.xlane.xlu0 %4977 }
0x1c82   : > { %v4984_v45 = vsub.f32 %v4968_v30, %v4978_v44 }
0x1c84   : > { %v4990_v42 = vmul.f32 1.442695, %v4984_v45 }
0x1c86   : > { %7101 = vpow2.f32 %v4990_v42 }
0x1c88   : > { %v7100_v39 = vpop.eup %7099 }
0x1c89   : > { %v4994_v54 = vsel %vm973_vm2, %v7100_v39, 0.0 }
0x1c8a   : > { %4995 = vadd.xlane.f32.xlu0 %v4994_v54 }
0x1c90   : > { %v7102_v47 = vpop.eup %7101 }
0x1c91   : > { %v5000_v48 = vsel %vm973_vm2, %v7102_v47, 0.0 }
0x1c92   : > { %5001 = vadd.xlane.f32.xlu0 %v5000_v48 }
0x1ca8   : > { %5018 = vrot.lane.b32.xlu0 %v8664_v22, %s7641_s3 }
0x1cab   : > { %v4975_v49 = vpop.xlane.xlu1 %4974 }
0x1cac   : > { %v4983_v50 = vsub.f32 %v4967_v36, %v4975_v49  ;;  %6906 = vrot.lane.b32.xlu0 %v6905_v16, %s7642_s1 }
0x1cae   : > { %v4988_v51 = vmul.f32 1.442695, %v4983_v50 }
0x1cb0   : > { %7103 = vpow2.f32 %v4988_v51  ;;  %6916 = vrot.lane.b32.xlu0 %v6915_v46, %s7643_s2 }
0x1cb3   : > { %v4981_v22 = vpop.xlane.xlu0 %4980 }
0x1cb4   : > { %v4985_v20 = vsub.f32 %v4969_v33, %v4981_v22 }
0x1cb6   : > { %v4992_v23 = vmul.f32 1.442695, %v4985_v20 }
0x1cb8   : > { %7105 = vpow2.f32 %v4992_v23 }
0x1cba   : > { %v7104_v32 = vpop.eup %7103 }
0x1cbb   : > { %v4997_v13 = vsel %vm973_vm2, %v7104_v32, 0.0 }
0x1cbc   : > { %4998 = vadd.xlane.f32.xlu1 %v4997_v13 }
0x1cc2   : > { %v7106_v14 = vpop.eup %7105 }
0x1cc3   : > { %v5003_v15 = vsel %vm973_vm2, %v7106_v14, 0.0 }
0x1ccd   : > { %5066 = vrot.lane.b32.xlu1 %v8669_v28, %s7641_s3 }
0x1cd1   : > { %5114 = vrot.lane.b32.xlu1 %v8713_v37, %s7641_s3 }
0x1cf5   : > { %5004 = vadd.xlane.f32.xlu1 %v5003_v15 }
0x1d06   : > { %5162 = vrot.lane.b32.xlu1 %v8717_v41, %s7641_s3  ;;  %s7645_s3 = smov [#allocation25]  }
0x1d0a   : > { %6911 = vrot.lane.b32.xlu1 %v6910_v55, %s7642_s1 }
0x1d0e   : > { %6921 = vrot.lane.b32.xlu1 %v6920_v7, %s7643_s2  ;;  %s7525_s2 = sshll.u32 %s7645_s3, 4  ;;  %s7526_s2 = int_to_ptr.vmem [resolvable:$false] %s7525_s2 }
0x1d0f   : > { %p7528_p0 = scmp.lt.s32.totalorder %s9027_s24, %s7526_s2 }
0x1d17   : > { %v4996_v28 = vpop.xlane.xlu0 %4995 }
0x1d18   : > { %7107 = vrcp.f32 %v4996_v28 }
0x1d1f   : > { %v5002_v37 = vpop.xlane.xlu0 %5001 }
0x1d20   : > { %7109 = vrcp.f32 %v5002_v37 }
0x1d22   : > { %v7108_v16 = vpop.eup %7107 }
0x1d23   : > { %v5010_v46 = vmul.f32 %v7108_v16, %v7100_v39  ;;  %v5019_v21 = vpop.permute.xlu0 %5018 }
0x1d24   : > { %v5024_v56 = vsel %vm1213_vm3, %v5019_v21, 0 }
0x1d25   : > { %6632 = vmatpush3.bf16.msra.mxu0 %v5024_v56  ;;  %v5014_v60 = vpack.c.bf16 %v5010_v46, %v5010_v46 }
0x1d26   : > { %6643 = vmatprep.subr.bf16.mxu0 %v7637_v2 }
0x1d28   : > { %6634 = vmatmul.mubr.msk.bf16.vlgmr.msra.gmra.mrb[136].mxu0 %vm973_vm2, %v5014_v60 }
0x1d29   : > { %6645 = vmatprep.mubr.msk.bf16.mxu0 %vm7638_vm1, %v7637_v2 }
0x1d2a   : > { %v7110_v18 = vpop.eup %7109 }
0x1d2b   : > { %v5012_v17 = vmul.f32 %v7110_v18, %v7102_v47  ;;  %v6907_v47 = vpop.permute.xlu0 %6906 }
0x1d2c   : > { %v6909_v49 = vunpack.i.h.bf16 %v6907_v47  ;;  %v6908_v50 = vunpack.i.l.bf16 %v6907_v47 }
0x1d2d   : > { %v5016_v0 = vpack.c.bf16 %v5012_v17, %v5012_v17 }
0x1d2e   : > { %v5259_v22 = vsel %vm973_vm2, %v8759_v35, %v6909_v49  ;;  %v5258_v20 = vsel %vm973_vm2, %v8757_v52, %v6908_v50 }
0x1d2f   : > { %v6917_v48 = vpop.permute.xlu0 %6916 }
0x1d30   : > { %v6919_v51 = vunpack.i.h.bf16 %v6917_v48 }
0x1d32   : > { %v5263_v28 = vsel %vm2791_vm4, %v5259_v22, %v6919_v51  ;;  %v6959_v22 = vld [vmem:[#allocation22 + $0x20] sm:$0xff]  }
0x1d49   : > { %v4999_v41 = vpop.xlane.xlu1 %4998 }
0x1d4a   : > { %7111 = vrcp.f32 %v4999_v41 }
0x1d4d   : > { %v5067_v53 = vpop.permute.xlu1 %5066 }
0x1d4e   : > { %v5072_v55 = vsel %vm1213_vm3, %v5067_v53, 0 }
0x1d4f   : > { %6638 = vmatpush3.bf16.msra.mxu1 %v5072_v55 }
0x1d50   : > { %6649 = vmatprep.subr.bf16.mxu1 %v7637_v2 }
0x1d51   : > { %v5115_v26 = vpop.permute.xlu1 %5114 }
0x1d52   : > { %v5120_v30 = vsel %vm1213_vm3, %v5115_v26, 0 }
0x1d53   : > { %6644 = vmatpush3.bf16.msra.mxu0 %v5120_v30 }
0x1d54   : > { %v7112_v61 = vpop.eup %7111  ;;  %6655 = vmatprep.subr.bf16.mxu0 %v6955_v31 }
0x1d55   : > { %v5011_v1 = vmul.f32 %v7112_v61, %v7104_v32  ;;  %v6918_v32 = vunpack.i.l.bf16 %v6917_v48 }
0x1d56   : > { %6646 = vmatmul.mubr.msk.bf16.vlgmr.msra.gmra.mrb[140].mxu0 %vm973_vm2, %v5016_v0 }
0x1d57   : > { %v5015_v5 = vpack.c.bf16 %v5011_v1, %v5011_v1  ;;  %6656 = vmatpush3.bf16.msra.mxu0 %v6955_v31  ;;  %v5262_v15 = vsel %vm2791_vm4, %v5258_v20, %v6918_v32  ;;  %v6957_v32 = vld [vmem:[#allocation19 + $0x10] sm:$0xff]  }
0x1d58   : > { %6657 = vmatprep.subr.bf16.mxu0 %v6956_v40  ;;  %v6960_v20 = vld [vmem:[#allocation22 + $0x28] sm:$0xff]  }
0x1d59   : > { %6640 = vmatmul.mubr.msk.bf16.vlgmr.msra.gmra.mrb[140].mxu1 %vm973_vm2, %v5015_v5 }
0x1d5a   : > { %6651 = vmatprep.mubr.msk.bf16.mxu1 %vm7638_vm1, %v7637_v2 }
0x1d5b   : > { %6658 = vmatpush3.bf16.msra.mxu0 %v6956_v40 }
0x1d5c   : > { %6671 = vmatprep.subr.bf16.mxu0 %v6959_v22 }
0x1d82   : > { %v5005_v6 = vpop.xlane.xlu1 %5004 }
0x1d83   : > { %7113 = vrcp.f32 %v5005_v6 }
0x1d86   : > { %v5163_v7 = vpop.permute.xlu1 %5162 }
0x1d87   : > { %v5168_v25 = vsel %vm1213_vm3, %v5163_v7, 0  ;;  %v5993_v7 = vld [vmem:[#allocation14 + $0x1] ss:$0 sm:$0xff] }
0x1d88   : > { %6650 = vmatpush3.bf16.msra.mxu1 %v5168_v25 }
0x1d89   : > { %6663 = vmatprep.subr.bf16.mxu1 %v6957_v32 }
0x1d8a   : > { %v6912_v21 = vpop.permute.xlu1 %6911 }
0x1d8b   : > { %v6914_v60 = vunpack.i.h.bf16 %v6912_v21  ;;  %v6913_v35 = vunpack.i.l.bf16 %v6912_v21 }
0x1d8d   : > { %v7114_v10 = vpop.eup %7113  ;;  %v5261_v53 = vsel %vm973_vm2, %v8765_v43, %v6914_v60  ;;  %v5260_v55 = vsel %vm973_vm2, %v8761_v12, %v6913_v35 }
0x1d8e   : > { %v5013_v24 = vmul.f32 %v7114_v10, %v7106_v14  ;;  %v6922_v56 = vpop.permute.xlu1 %6921 }
0x1d8f   : > { %v6924_v41 = vunpack.i.h.bf16 %v6922_v56  ;;  %v6923_v18 = vunpack.i.l.bf16 %v6922_v56 }
0x1d90   : > { %v5017_v29 = vpack.c.bf16 %v5013_v24, %v5013_v24 }
0x1d91   : > { %v5264_v30 = vsel %vm2791_vm4, %v5260_v55, %v6923_v18  ;;  %v5265_v61 = vsel %vm2791_vm4, %v5261_v53, %v6924_v41 }
0x1d92   : > { %6652 = vmatmul.mubr.msk.bf16.vlgmr.msra.gmra.mrb[144].mxu1 %vm973_vm2, %v5017_v29 }
0x1d93   : > { %6664 = vmatpush3.bf16.msra.mxu1 %v6957_v32 }
0x1dfb   : > { %v5060_v36 = vpop.f32.mrb[136].mxu0 }
0x1dfc   : > { %v6635_v3 = vpop.f32.mrb[137].mxu0 }
0x1dfd   : > { %v5063_v57 = vpop.f32.mrb[138].mxu0 }
0x1dfe   : > { %v6636_v11 = vpop.f32.mrb[139].mxu0 }
0x1e29   : > { %v5156_v63 = vpop.f32.mrb[140].mxu0 }
0x1e2a   : > { %v6647_v33 = vpop.f32.mrb[141].mxu0 }
0x1e2b   : > { %v5159_v2 = vpop.f32.mrb[142].mxu0 }
0x1e2c   : > { %v5108_v19 = vpop.f32.mrb[140].mxu1  ;;  %v6648_v62 = vpop.f32.mrb[143].mxu0 }
0x1e2d   : > { %v6925_v34 = vpack.i.bf16 %v5108_v19, %v5060_v36  ;;  %v6641_v4 = vpop.f32.mrb[141].mxu1 }
0x1e2e   : > { %v5111_v8 = vpop.f32.mrb[142].mxu1 }
0x1e2f   : > { %6926 = vrot.lane.b32.xlu0 %v6925_v34, %s7644_s23  ;;  %v6642_v38 = vpop.f32.mrb[143].mxu1 }
0x1e65   : > { %v5204_v44 = vpop.f32.mrb[144].mxu1 }
0x1e66   : > { %v6930_v45 = vpack.i.bf16 %v5204_v44, %v5156_v63  ;;  %v6653_v42 = vpop.f32.mrb[145].mxu1 }
0x1e67   : > { %v5207_v39 = vpop.f32.mrb[146].mxu1 }
0x1e68   : > { %6931 = vrot.lane.b32.xlu1 %v6930_v45, %s7644_s23  ;;  %v6654_v54 = vpop.f32.mrb[147].mxu1  ;;  %s7527_s23 = scalar_lea.vmem %s7526_s2, 1024 }
0x1e69   : > { %p7529_p5 = scmp.lt.s32.totalorder %s7527_s23, %s7521_s21 }
0x1e6b   : > { %p7530_p2 = por %p7529_p5, %p7528_p0 }
0x1e6d   : > { %p7531_p7 = pnand %p7530_p2, %p7524_p3 }
0x1ea1   : > { %v6927_v13 = vpop.permute.xlu0 %6926 }
0x1ea2   : > { %v6929_v23 = vunpack.i.h.bf16 %v6927_v13  ;;  %v6928_v14 = vunpack.i.l.bf16 %v6927_v13  ;;  %v6958_v13 = vld [vmem:[#allocation19 + $0x18] sm:$0xff]  }
0x1ea3   : > { %6665 = vmatprep.subr.bf16.mxu1 %v6958_v13 }
0x1ea4   : > { %v5267_v37 = vsel %vm2796_vm5, %v5263_v28, %v6929_v23  ;;  %v5266_v16 = vsel %vm2796_vm5, %v5262_v15, %v6928_v14  ;;  %6666 = vmatpush3.bf16.msra.mxu1 %v6958_v13 }
0x1ea5   : > { %v5275_v46 = vpack.c.bf16 %v5267_v37, %v5266_v16 }
0x1ea7   : > { %6659 = vmatprep.mubr.msk.bf16.mxu0 %vm684_vm0, %v5275_v46 }
0x1eda   : > { %v6932_v52 = vpop.permute.xlu1 %6931 }
0x1edb   : > { %v6934_v17 = vunpack.i.h.bf16 %v6932_v52  ;;  %v6933_v26 = vunpack.i.l.bf16 %v6932_v52  ;;  %v5994_v52 = vld [vmem:[#allocation16 + $0x1] ss:$0 sm:$0xff] }
0x1edd   : > { %v5269_v0 = vsel %vm2796_vm5, %v5265_v61, %v6934_v17  ;;  %v5268_v1 = vsel %vm2796_vm5, %v5264_v30, %v6933_v26  ;;  %v5995_v61 = vld [vmem:[#allocation17 + $0x1] ss:$0 sm:$0xff] }
0x1ede   : > { %v5276_v5 = vpack.c.bf16 %v5269_v0, %v5268_v1 }
0x1ee0   : > { %6660 = vmatmul.mubr.msk.bf16.vlgmr.msra.gmra.mrb[144].mxu0 %vm684_vm0, %v5276_v5 }
0x1ee1   : > { %6672 = vmatpush3.bf16.msra.mxu0 %v6959_v22 }
0x1ee2   : > { %6673 = vmatprep.subr.bf16.mxu0 %v6960_v20 }
0x1ee5   : > { %6674 = vmatpush3.bf16.msra.mxu0 %v6960_v20 }
0x1fb3   : > { %v6661_v6 = vpop.f32.mrb[144].mxu0 }
0x1fb4   : > { %v5329_v25 = vpop.f32.mrb[145].mxu0  ;;  %v5346_v43 = vadd.f32 %v6661_v6, %v8595_v58 }
0x1fb5   : > { %v5344_v12 = vadd.f32 %v5329_v25, %v8591_v9  ;;  %v6662_v10 = vpop.f32.mrb[146].mxu0 }
0x1fb6   : > { %v5332_v24 = vpop.f32.mrb[147].mxu0  ;;  %v8992_v3 = vadd.f32 %v5993_v7, %v5346_v43  ;;  %v5347_v57 = vadd.f32 %v6662_v10, %v8601_v59 }
0x1fb7   : > { %v8989_v29 = vadd.f32 %v5993_v7, %v5344_v12  ;;  %v5345_v36 = vadd.f32 %v5332_v24, %v8597_v27 }
0x1fb8   : > { %v9001_v9 = vadd.f32 %v5993_v7, %v5347_v57  ;;  %v5370_v63 = vsel %vm684_vm0, %v8992_v3, 0.0 }
0x1fb9   : > { %v8995_v11 = vadd.f32 %v5993_v7, %v5345_v36  ;;  %v5364_v31 = vsel %vm684_vm0, %v8989_v29, 0.0 }
0x1fba   : > { %5365 = vadd.xlane.f32.xlu0 %v5364_v31  ;;  %v5373_v27 = vsel %vm684_vm0, %v9001_v9, 0.0  ;;  %v6961_v31 = vld [vmem:[#allocation22 + $0x30] sm:$0xff]  }
0x1fbb   : > { %v5367_v58 = vsel %vm684_vm0, %v8995_v11, 0.0  ;;  %6675 = vmatprep.subr.bf16.mxu0 %v6961_v31 }
0x1fbc   : > { %5368 = vadd.xlane.f32.xlu1 %v5367_v58  ;;  %6676 = vmatpush3.bf16.msra.mxu0 %v6961_v31  ;;  %v6962_v58 = vld [vmem:[#allocation22 + $0x38] sm:$0xff]  }
0x1fbd   : > { %6677 = vmatprep.subr.bf16.mxu0 %v6962_v58 }
0x1fbe   : > { %5371 = vadd.xlane.f32.xlu0 %v5370_v63  ;;  %v5996_v63 = vld [vmem:[#allocation20 + $0x1] ss:$0 sm:$0xff] }
0x1fc0   : > { %6678 = vmatpush3.bf16.msra.mxu0 %v6962_v58 }
0x1fc2   : > { %5374 = vadd.xlane.f32.xlu0 %v5373_v27 }
0x2047   : > { %v5366_v59 = vpop.xlane.xlu0 %5365 }
0x2048   : > { %v5376_v33 = vmul.f32 0.03125, %v5366_v59 }
0x2049   : > { %v5369_v2 = vpop.xlane.xlu1 %5368 }
0x204a   : > { %v5380_v19 = vsub.f32 %v8989_v29, %v5376_v33  ;;  %v5377_v62 = vmul.f32 0.03125, %v5369_v2 }
0x204b   : > { %v5372_v34 = vpop.xlane.xlu0 %5371 }
0x204c   : > { %v5381_v4 = vsub.f32 %v8995_v11, %v5377_v62  ;;  %v5378_v8 = vmul.f32 0.03125, %v5372_v34  ;;  %v5384_v38 = vmul.f32 %v5380_v19, %v5380_v19 }
0x204e   : > { %v5382_v40 = vsub.f32 %v8992_v3, %v5378_v8  ;;  %v5388_v44 = vsel %vm684_vm0, %v5384_v38, 0.0  ;;  %v5385_v45 = vmul.f32 %v5381_v4, %v5381_v4 }
0x204f   : > { %5389 = vadd.xlane.f32.xlu0 %v5388_v44  ;;  %v5375_v42 = vpop.xlane.xlu0 %5374 }
0x2050   : > { %v5379_v39 = vmul.f32 0.03125, %v5375_v42  ;;  %v5391_v54 = vsel %vm684_vm0, %v5385_v45, 0.0  ;;  %v5386_v47 = vmul.f32 %v5382_v40, %v5382_v40 }
0x2051   : > { %5392 = vadd.xlane.f32.xlu1 %v5391_v54  ;;  %v6007_v54 = vld [vmem:[#allocation23 + $0x1] ss:$0 sm:$0xff] }
0x2052   : > { %v5383_v48 = vsub.f32 %v9001_v9, %v5379_v39  ;;  %v5394_v49 = vsel %vm684_vm0, %v5386_v47, 0.0 }
0x2053   : > { %5395 = vadd.xlane.f32.xlu0 %v5394_v49 }
0x2054   : > { %v5387_v50 = vmul.f32 %v5383_v48, %v5383_v48 }
0x2056   : > { %v5397_v51 = vsel %vm684_vm0, %v5387_v50, 0.0 }
0x2057   : > { %5398 = vadd.xlane.f32.xlu1 %v5397_v51 }
0x20dc   : > { %v5390_v23 = vpop.xlane.xlu0 %5389 }
0x20dd   : > { %v5400_v14 = vmul.f32 0.03125, %v5390_v23 }
0x20de   : > { %v5393_v15 = vpop.xlane.xlu1 %5392 }
0x20df   : > { %v5404_v28 = vadd.f32 1e-05, %v5400_v14  ;;  %v5401_v37 = vmul.f32 0.03125, %v5393_v15 }
0x20e0   : > { %v5396_v16 = vpop.xlane.xlu0 %5395 }
0x20e1   : > { %7115 = vrsqrt.f32 %v5404_v28  ;;  %v5405_v46 = vadd.f32 1e-05, %v5401_v37  ;;  %v5402_v21 = vmul.f32 0.03125, %v5396_v16 }
0x20e3   : > { %7117 = vrsqrt.f32 %v5405_v46  ;;  %v5406_v56 = vadd.f32 1e-05, %v5402_v21 }
0x20e4   : > { %v5399_v60 = vpop.xlane.xlu1 %5398 }
0x20e5   : > { %7119 = vrsqrt.f32 %v5406_v56  ;;  %v5403_v35 = vmul.f32 0.03125, %v5399_v60 }
0x20e7   : > { %v5407_v41 = vadd.f32 1e-05, %v5403_v35 }
0x20e9   : > { %7121 = vrsqrt.f32 %v5407_v41 }
0x20eb   : > { %v7116_v18 = vpop.eup %7115 }
0x20ec   : > { %v5412_v53 = vmul.f32 %v7116_v18, %v5380_v19 }
0x20ed   : > { %v7118_v55 = vpop.eup %7117 }
0x20ee   : > { %v5413_v17 = vmul.f32 %v7118_v55, %v5381_v4  ;;  %v5422_v26 = vmul.f32 %v5994_v52, %v5412_v53 }
0x20ef   : > { %v7120_v30 = vpop.eup %7119 }
0x20f0   : > { %v5414_v0 = vmul.f32 %v7120_v30, %v5382_v40  ;;  %v5423_v1 = vmul.f32 %v5994_v52, %v5413_v17  ;;  %v5432_v5 = vadd.f32 %v5995_v61, %v5422_v26 }
0x20f2   : > { %v5433_v6 = vadd.f32 %v5995_v61, %v5423_v1  ;;  %v5424_v25 = vmul.f32 %v5994_v52, %v5414_v0 }
0x20f3   : > { %v7122_v7 = vpop.eup %7121 }
0x20f4   : > { %v5415_v43 = vmul.f32 %v7122_v7, %v5383_v48  ;;  %v5441_v12 = vpack.c.bf16 %v5433_v6, %v5432_v5  ;;  %v5434_v24 = vadd.f32 %v5995_v61, %v5424_v25 }
0x20f6   : > { %v5425_v10 = vmul.f32 %v5994_v52, %v5415_v43  ;;  %6667 = vmatprep.mubr.msk.bf16.mxu1 %vm684_vm0, %v5441_v12 }
0x20f8   : > { %v5435_v36 = vadd.f32 %v5995_v61, %v5425_v10 }
0x20fa   : > { %v5442_v57 = vpack.c.bf16 %v5435_v36, %v5434_v24 }
0x20fc   : > { %6668 = vmatmul.mubr.msk.bf16.vlgmr.msra.gmra.mrb[148].mxu1 %vm684_vm0, %v5442_v57 }
0x21cf   : > { %v6669_v27 = vpop.f32.mrb[148].mxu1 }
0x21d0   : > { %v5512_v59 = vadd.f32 %v6669_v27, %v5996_v63  ;;  %v5503_v33 = vpop.f32.mrb[149].mxu1 }
0x21d1   : > { %v5504_v2 = vadd.f32 %v5996_v63, %v5503_v33  ;;  %v6670_v19 = vpop.f32.mrb[150].mxu1 }
0x21d2   : > { %v5515_v62 = vadd.f32 %v6670_v19, %v5996_v63  ;;  %v5506_v34 = vpop.f32.mrb[151].mxu1  ;;  %v5520_v8 = vmax.f32 %v5512_v59, 0.0 }
0x21d3   : > { %v5507_v4 = vadd.f32 %v5996_v63, %v5506_v34  ;;  %v5518_v40 = vmax.f32 %v5504_v2, 0.0 }
0x21d4   : > { %v5521_v38 = vmax.f32 %v5515_v62, 0.0 }
0x21d5   : > { %v5519_v44 = vmax.f32 %v5507_v4, 0.0 }
0x21d6   : > { %v5532_v45 = vpack.c.bf16 %v5521_v38, %v5520_v8 }
0x21d7   : > { %v5531_v42 = vpack.c.bf16 %v5519_v44, %v5518_v40 }
0x21d9   : > { %6679 = vmatprep.mubr.msk.bf16.mxu0 %vm3081_vm6, %v5531_v42 }
0x21da   : > { %6680 = vmatmul.mubr.msk.bf16.vlgmr.msra.gmra.mrb[148].mxu0 %vm3081_vm6, %v5532_v45 }
0x22ad   : > { %v6681_v39 = vpop.f32.mrb[148].mxu0 }
0x22ae   : > { %v5614_v47 = vadd.f32 %v6681_v39, %v8992_v3  ;;  %v5597_v48 = vpop.f32.mrb[149].mxu0 }
0x22af   : > { %v5612_v49 = vadd.f32 %v5597_v48, %v8989_v29  ;;  %v6682_v50 = vpop.f32.mrb[150].mxu0 }
0x22b0   : > { %v5626_v51 = vadd.f32 %v6007_v54, %v5614_v47  ;;  %v5615_v32 = vadd.f32 %v6682_v50, %v9001_v9  ;;  %v5600_v13 = vpop.f32.mrb[151].mxu0 }
0x22b1   : > { %v5624_v22 = vadd.f32 %v6007_v54, %v5612_v49  ;;  %v5613_v20 = vadd.f32 %v5600_v13, %v8995_v11 }
0x22b2   : > { %5630 = vst.msk [vmem:[%s674_s14 + $0x10] sm:$0xff] %vm684_vm0, %v5626_v51  ;;  %v5627_v3 = vadd.f32 %v6007_v54, %v5615_v32 }
0x22b3   : > { %5628 = vst.msk [vmem:[%s674_s14] sm:$0xff] %vm684_vm0, %v5624_v22  ;;  %v5625_v29 = vadd.f32 %v6007_v54, %v5613_v20 }
0x22b4   : > { %5631 = vst.msk [vmem:[%s674_s14 + $0x18] sm:$0xff] %vm684_vm0, %v5627_v3 }
0x22b5   : > { %5629 = vst.msk [vmem:[%s674_s14 + $0x8] sm:$0xff] %vm684_vm0, %v5625_v29 }
0x22b6   : > { %7534 = shalt.err (!%p7531_p7)
}
0x22b7   : > { %s7535_s14 = scalar_lea.hbm %s9033_s27, 512  ;;  %s7539_s29 = scalar_lea.hbm %s9159_s0, 1024 }
0x22b8   : > { %p7536_p10 = scmp.ne.s32.totalorder %s9033_s27, %s7535_s14  ;;  %p7540_p12 = scmp.lt.u32.totalorder %s9033_s27, %s9159_s0 }
0x22b9   : > { %p7541_p13 = scmp.lt.u32.totalorder %s7539_s29, %s7535_s14  ;;  %p7543_p6 = scmp.lt.u32.totalorder %s7535_s14, %s9033_s27 }
0x22ba   : > { %p7537_p1 = pnand %p7536_p10, %p9160_p9 }
0x22bb   : > { %p7542_p8 = por %p7541_p13, %p7540_p12 }
0x22bc   : > { %p7538_p11 = pneg %p7537_p1 }
0x22bd   : > { %p7544_p4 = por %p7543_p6, %p7542_p8 }
0x22bf   : > { %p7545_p3 = pnand %p7544_p4, %p7538_p11 }
0x22c1   : > { %7548 = shalt.err (!%p7545_p3)
}
0x22c2   : > { %s7646_s21 = smov 128  }
0x22c3   : > { %6737 = dma.vmem_to_hbm [thread:$0]  (%p9160_p9), %s9027_s24, 512, %s9033_s27, %s5633_s17, %s7646_s21, %s7646_s21, %s7642_s1  }
0x22c4 PF: > { %s9161_s23 = sld [smem:[#allocation35_spill]]  ;;  %p9162_p0 = scmp.ne.s32.totalorder %s9138_s30, 0 }
0x22c5   : > { %p9163_p5 = scmp.ge.s32.totalorder %s7615_s16, 2 }
0x22c7   : > { %p6784_p2 = pnand %p9163_p5, %p9162_p0 }
0x22ca   : > { %s5661_s18 = sand.u32 1, %s9161_s23  }
0x22cb   : > { %s5662_s14 = scalar_lea.sflag [#allocation4], %s5661_s18 }
0x22cc   : > { %7598 = dma.done.wait (!%p6784_p2), %s5662_s14, 512  }
0x22cd   : > { %7600 = vsyncadd (!%p6784_p2), %s5662_s14, 4294966784  ;;  %s9164_s29 = sld [smem:[#allocation36_spill]]  ;;  %p34_p7 = scmp.ge.s32.totalorder %s8059_s28, 4  }
0x22ce   : > { %s9165_s30 = smov %s7611_s15  ;;  %s9166_s15 = smov %s8071_s25 }
0x22cf   : > { %s9167_s16 = smov %s8059_s28  ;;  %36 = sbr.rel (!%p34_p7) target bundleno = 18 (0x12), region = 186 }
0x22d6   :  { %5667 = vsyncpa [#allocation3], 1 }
0x22d7   :  { %5669 = vsyncpa [#allocation3 + $0x1], 1 }
0x22d8   :  { %5670 = vsyncpa [#allocation6], 1 }
0x22d9   :  { %5671 = vsyncpa [#allocation9], 1 }
0x22da   :  { %5672 = vsyncpa [#allocation12], 1 }
0x22db   :  { %5673 = vsyncpa [#allocation15], 1 }
0x22dc   :  { %5674 = vsyncpa [#allocation18], 1 }
0x22dd   :  { %5675 = vsyncpa [#allocation21], 1 }
0x22de   :  { %5676 = vsyncpa [#allocation24], 1 }
0x22df   :  { %5677 = vsyncpa [#allocation4], 1 }
0x22e0   :  { %5679 = vsyncpa [#allocation4 + $0x1], 1 }

</bundles_post_ra>
